<compile_context>
chip_gen: v6e
topology: v6e:2x2x1
jax: 0.10.0
libtpu: 0.0.40
codegen_flags: <defaults>
</compile_context>

<pallas_src>
import math

import jax
import jax.numpy as jnp
import numpy as np
from jax.experimental import pallas as pl
from jax.experimental.pallas import tpu as pltpu

# ----------------------------- problem sizes ---------------------------------
B, S, H = 2, 8, 32          # batch, seq, hidden_dim
N_TOK = B * S               # rows processed at once (flattened batch*seq)
NUM_HEADS = 4
HEAD_DIM = H // NUM_HEADS
SCALE = 1.0 / math.sqrt(HEAD_DIM)
NQ = 8                      # n_qubits
NL = 2                      # n_layers of the quantum circuit
DIMQ = 2 ** NQ              # 256 statevector amplitudes
LN_EPS = 1e-5
_SQRT1_2 = 1.0 / math.sqrt(2.0)

# --------------------- packed-constant slab layout (built offline) ------------
# slab 1 "c128": (160, 128) f32 -- everything that is <= 128 lanes wide
R_WQKV, R_WO, R_WIN, R_W1, R_MASK, R_VEC = 0, 32, 64, 96, 128, 144
(V_BQKV, V_BO, V_G1, V_BB1, V_G3, V_BB3, V_BINQ, V_BOUT,
 V_B1F, V_B2F, V_G2, V_BB2) = range(12)
CONST128_ROWS = 160
# slab 2 "c32": (384, 32) f32 -- w2 (rows 0:128) and folded zsign@wout (rows 128:384)
CONST32_ROWS = 4 * H + DIMQ
# slab 3 "wub": (256, 512) bf16 -- [Re(U^T) | Im(U^T)], manually DMA'd / overlapped


def _unpack_consts(c128, c32, *, is_ref):
    """Carve the packed slabs into named pieces.

    For the kernel (is_ref=True) this returns zero-cost Ref views (`.at[...]`),
    loaded at point of use via `p[name][...]` -> short vreg live ranges.
    For the pure-XLA reference (is_ref=False) it returns plain array slices
    (on which `[...]` is a no-op), so the same math code serves both paths.
    """
    def slc(o, r0, nr, c0, nc):
        if is_ref:
            return o.at[r0:r0 + nr, c0:c0 + nc]
        return o[r0:r0 + nr, c0:c0 + nc]

    def vec(v, w):
        return slc(c128, R_VEC + v, 1, 0, w)

    return {
        "wqkv":  slc(c128, R_WQKV, H, 0, 3 * H),
        "wo":    slc(c128, R_WO, H, 0, H),
        "win":   slc(c128, R_WIN, H, 0, NQ),
        "w1":    slc(c128, R_W1, H, 0, 4 * H),
        "maskb": slc(c128, R_MASK, N_TOK, 0, N_TOK),
        "bqkv":  vec(V_BQKV, 3 * H), "bo": vec(V_BO, H),
        "g1": vec(V_G1, H), "bb1": vec(V_BB1, H),
        "g3": vec(V_G3, H), "bb3": vec(V_BB3, H),
        "binq": vec(V_BINQ, NQ), "bout": vec(V_BOUT, H),
        "b1f": vec(V_B1F, 4 * H), "b2f": vec(V_B2F, H),
        "g2": vec(V_G2, H), "bb2": vec(V_BB2, H),
        "w2":    slc(c32, 0, 4 * H, 0, H),
        "wzout": slc(c32, 4 * H, DIMQ, 0, H),
    }


# --------------------- shared math (kernel + XLA reference) -------------------
def _recip(x, approx):
    # EUP approximate reciprocal inside the kernel; exact divide in the reference.
    if approx:
        return pl.reciprocal(x, approx=True)
    return 1.0 / x


def _layernorm(z, gamma, beta):
    mu = jnp.mean(z, axis=-1, keepdims=True)
    d = z - mu
    var = jnp.mean(d * d, axis=-1, keepdims=True)
    return d * jax.lax.rsqrt(var + LN_EPS) * gamma + beta


def _erf(z, approx):
    # Abramowitz & Stegun 7.1.26, |error| < 1.5e-7.
    # TODO(synk): switch to lax.erf once its Mosaic lowering is guaranteed;
    #             PyTorch nn.GELU default is the exact erf form.
    a1, a2, a3, a4, a5 = 0.254829592, -0.284496736, 1.421413741, -1.453152027, 1.061405429
    pc = 0.3275911
    sgn = jnp.where(z >= 0.0, 1.0, -1.0)
    za = sgn * z
    t = _recip(1.0 + pc * za, approx)
    poly = ((((a5 * t + a4) * t + a3) * t + a2) * t + a1) * t
    return sgn * (1.0 - poly * jnp.exp(-za * za))


def _gelu(z, approx):
    return 0.5 * z * (1.0 + _erf(z * _SQRT1_2, approx))


def _attention(x, p, approx):
    """Multi-head self-attention over all B*S rows with a baked block-diag mask."""
    qkv = jnp.dot(x, p["wqkv"][...], preferred_element_type=jnp.float32) + p["bqkv"][...]
    q, k, v = qkv[:, 0:H], qkv[:, H:2 * H], qkv[:, 2 * H:3 * H]
    kt = k.T                                        # single (16,32)->(32,16) transpose
    maskb = p["maskb"][...]                         # (N_TOK, N_TOK) additive 0 / -1e30
    parts = []
    for h in range(NUM_HEADS):                      # unrolled (4 heads)
        lo = h * HEAD_DIM
        sc = jnp.dot(q[:, lo:lo + HEAD_DIM], kt[lo:lo + HEAD_DIM, :],
                     preferred_element_type=jnp.float32) * SCALE + maskb
        sc = sc - jnp.max(sc, axis=-1, keepdims=True)
        e = jnp.exp(sc)
        pr = e * _recip(jnp.sum(e, axis=-1, keepdims=True), approx)
        parts.append(jnp.dot(pr, v[:, lo:lo + HEAD_DIM],
                             preferred_element_type=jnp.float32))
    ctx = jnp.concatenate(parts, axis=-1)           # (N_TOK, H) concat-over-heads
    return jnp.dot(ctx, p["wo"][...], preferred_element_type=jnp.float32) + p["bo"][...]


def _quantum_state(xn, p):
    """Exact RZ(a)RX(a)|0> product state for 8 qubits -> (psi_r, psi_i) of shape (n,256)."""
    ang = jnp.dot(xn, p["win"][...], preferred_element_type=jnp.float32) + p["binq"][...]
    half = 0.5 * ang
    c, s = jnp.cos(half), jnp.sin(half)
    c2, s2, cs = c * c, s * s, c * s
    d2 = s2 - c2                                     # hoisted out of the qubit loop
    lane = jax.lax.broadcasted_iota(jnp.int32, (1, DIMQ), 1)   # basis-state index

    def factor(qb):
        # amplitude per basis state: bit==0 -> c^2 - i*c*s ; bit==1 -> s^2 - i*c*s
        bit = ((lane >> (NQ - 1 - qb)) & 1).astype(jnp.float32)        # wire0 = MSB
        fr = c2[:, qb:qb + 1] + d2[:, qb:qb + 1] * bit                 # (n, 256)
        fi = -cs[:, qb:qb + 1]                                         # (n, 1) column
        return fr, fi

    def cmul(a, b):
        ar, ai = a
        br, bi = b
        return ar * br - ai * bi, ar * bi + ai * br

    # depth-3 pairwise tree (8 -> 4 -> 2 -> 1 complex multiplies)
    pairs = [cmul(factor(2 * i), factor(2 * i + 1)) for i in range(NQ // 2)]
    quads = [cmul(pairs[0], pairs[1]), cmul(pairs[2], pairs[3])]
    return cmul(quads[0], quads[1])


def _forward_tail(y1, psi_r, psi_i, wub, p, approx):
    """Apply the folded unitary, take |amp|^2, <Z>/output_proj, then FFN + norm2."""
    # [fr | fi] via two bf16 matmuls against [Re(U^T) | Im(U^T)]  (f32 accumulate).
    # NOTE: bf16 psi/weights square a ~2^-8 relative error into the probabilities;
    # fine at the 2e-2 tolerance used here (kernel and reference share the math).
    pr16 = psi_r.astype(jnp.bfloat16)
    pi16 = psi_i.astype(jnp.bfloat16)
    ffr = jnp.dot(pr16, wub, preferred_element_type=jnp.float32)      # (n, 512)
    ffi = jnp.dot(pi16, wub, preferred_element_type=jnp.float32)      # (n, 512)
    fre = ffr[:, 0:DIMQ] - ffi[:, DIMQ:2 * DIMQ]
    fim = ffr[:, DIMQ:2 * DIMQ] + ffi[:, 0:DIMQ]
    probs = fre * fre + fim * fim                                     # (n, 256)
    # <Z_q> reduction + output projection folded offline into one (256, H) matrix
    q_out = jnp.dot(probs, p["wzout"][...],
                    preferred_element_type=jnp.float32) + p["bout"][...]

    x2 = y1 + q_out
    hdn = jnp.dot(x2, p["w1"][...], preferred_element_type=jnp.float32) + p["b1f"][...]
    g = _gelu(hdn, approx)
    f = jnp.dot(g, p["w2"][...], preferred_element_type=jnp.float32) + p["b2f"][...]
    return _layernorm(x2 + f, p["g2"][...], p["bb2"][...])


# ------------------------------- fused kernel ---------------------------------
def fused_layer_kernel(x_ref, c128_ref, c32_ref, wub_hbm, o_ref, wub_vmem, dma_sem):
    # Start the 256 KiB unitary-weight DMA immediately; it overlaps with the
    # attention, LayerNorms and RX/RZ angle / product-state math below.
    cp = pltpu.make_async_copy(wub_hbm, wub_vmem, dma_sem)
    cp.start()

    p = _unpack_consts(c128_ref, c32_ref, is_ref=True)
    x = x_ref[...]

    attn = _attention(x, p, approx=True)
    y1 = _layernorm(x + attn, p["g1"][...], p["bb1"][...])            # norm1
    xn = _layernorm(y1, p["g3"][...], p["bb3"][...])                  # norm3
    psi_r, psi_i = _quantum_state(xn, p)

    cp.wait()                                                          # weight ready
    o_ref[...] = _forward_tail(y1, psi_r, psi_i, wub_vmem[...], p, approx=True)


@jax.jit
def quantum_encoder_layer(x, c128, c32, wub):
    b, s, h = x.shape
    n = b * s
    x2d = x.reshape(n, h)
    # Single grid-less call: whole-array VMEM blocks (~1 MiB total incl. the bf16
    # unitary scratch) fit the default scoped-VMEM limit on v5e/v6e/v7x.
    # TODO(synk): if this layer runs in a stack, prefetch the next layer's unitary
    #             via a cross-call DMA future instead of per-call loads.
    out2d = pl.pallas_call(
        fused_layer_kernel,
        out_shape=jax.ShapeDtypeStruct((n, h), jnp.float32),
        in_specs=[
            pl.BlockSpec(memory_space=pltpu.MemorySpace.VMEM),   # x (16,32)
            pl.BlockSpec(memory_space=pltpu.MemorySpace.VMEM),   # c128 slab (160,128)
            pl.BlockSpec(memory_space=pltpu.MemorySpace.VMEM),   # c32 slab  (384,32)
            pl.BlockSpec(memory_space=pl.ANY),                   # wub stays in HBM
        ],
        out_specs=pl.BlockSpec(memory_space=pltpu.MemorySpace.VMEM),
        scratch_shapes=[
            pltpu.VMEM((DIMQ, 2 * DIMQ), jnp.bfloat16),          # unitary landing buf
            pltpu.SemaphoreType.DMA(()),
        ],
    )(x2d, c128, c32, wub)
    return out2d.reshape(b, s, h)


# --------------------- pure-XLA reference (same math, no Pallas) ---------------
def reference_forward(x2d, c128, c32, wub):
    p = _unpack_consts(c128, c32, is_ref=False)
    attn = _attention(x2d, p, approx=False)
    y1 = _layernorm(x2d + attn, p["g1"][...], p["bb1"][...])
    xn = _layernorm(y1, p["g3"][...], p["bb3"][...])
    psi_r, psi_i = _quantum_state(xn, p)
    return _forward_tail(y1, psi_r, psi_i, wub, p, approx=False)


# ------------------------- quantum circuit (setup glue) ------------------------
def _rx(t):
    c, s = np.cos(t / 2.0), np.sin(t / 2.0)
    return np.array([[c, -1j * s], [-1j * s, c]], dtype=np.complex128)


def _rz(t):
    return np.array([[np.exp(-1j * t / 2.0), 0.0], [0.0, np.exp(1j * t / 2.0)]],
                    dtype=np.complex128)


_CNOT = np.array([[1, 0, 0, 0],
                  [0, 1, 0, 0],
                  [0, 0, 0, 1],
                  [0, 0, 1, 0]], dtype=np.complex128)


def build_fixed_unitary(qweights):
    """Fold the data-independent RX/RZ weight layers + CNOT chain into one 256x256 U."""
    op = np.eye(DIMQ, dtype=np.complex128).reshape((2,) * (2 * NQ))

    def ap1(o, g, w):
        o = np.tensordot(g, o, axes=[[1], [w]])
        return np.moveaxis(o, 0, w)

    def ap2(o, g, w0, w1):
        g = g.reshape(2, 2, 2, 2)
        o = np.tensordot(g, o, axes=[[2, 3], [w0, w1]])
        return np.moveaxis(o, [0, 1], [w0, w1])

    for l in range(NL):
        for i in range(NQ):
            op = ap1(op, _rx(qweights[l, 0, i]), i)
            op = ap1(op, _rz(qweights[l, 1, i]), i)
        for i in range(NQ - 1):
            op = ap2(op, _CNOT, i, i + 1)
    return op.reshape(DIMQ, DIMQ)


# ------------------------------ parameters ------------------------------------
def _kaiming_uniform(key, shape, fan_in):
    bound = math.sqrt(6.0 / fan_in)
    return jax.random.uniform(key, shape, jnp.float32, -bound, bound)


def make_params(key):
    ks = jax.random.split(key, 7)
    wqkv = _kaiming_uniform(ks[0], (H, 3 * H), H)
    wo = _kaiming_uniform(ks[1], (H, H), H)
    win = _kaiming_uniform(ks[2], (H, NQ), H)
    wout = _kaiming_uniform(ks[3], (NQ, H), NQ)
    w1 = _kaiming_uniform(ks[4], (H, 4 * H), H)
    w2 = _kaiming_uniform(ks[5], (4 * H, H), 4 * H)
    # TorchLayer default init: uniform [0, 2*pi); folded offline into a fixed unitary
    qw = jax.random.uniform(ks[6], (NL, 2, NQ), jnp.float32, 0.0, 2.0 * math.pi)

    # fold <Z_q> reduction + output projection:  probs @ (zsign @ wout)
    idx = np.arange(DIMQ)
    bits = ((idx[None, :] >> (NQ - 1 - np.arange(NQ)[:, None])) & 1).astype(np.float64)
    zsign = (1.0 - 2.0 * bits).T                                   # (256, NQ), +/-1
    wzout = (zsign @ np.asarray(wout, np.float64)).astype(np.float32)

    # ---- packed f32 slab 1 (width 128) ----
    c128 = np.zeros((CONST128_ROWS, 128), np.float32)
    c128[R_WQKV:R_WQKV + H, 0:3 * H] = np.asarray(wqkv)
    c128[R_WO:R_WO + H, 0:H] = np.asarray(wo)
    c128[R_WIN:R_WIN + H, 0:NQ] = np.asarray(win)
    c128[R_W1:R_W1 + H, 0:4 * H] = np.asarray(w1)
    seq = np.arange(N_TOK) // S                                     # block-diag mask
    c128[R_MASK:R_MASK + N_TOK, 0:N_TOK] = np.where(
        seq[:, None] == seq[None, :], 0.0, -1e30).astype(np.float32)
    # biases are zero (PyTorch init), LayerNorm gamma=1 / beta=0
    c128[R_VEC + V_G1, 0:H] = 1.0
    c128[R_VEC + V_G2, 0:H] = 1.0
    c128[R_VEC + V_G3, 0:H] = 1.0

    # ---- packed f32 slab 2 (width 32) ----
    c32 = np.zeros((CONST32_ROWS, H), np.float32)
    c32[0:4 * H, :] = np.asarray(w2)
    c32[4 * H:4 * H + DIMQ, :] = wzout

    # ---- block-structured folded unitary, bf16: [Re(U^T) | Im(U^T)] ----
    u = build_fixed_unitary(np.asarray(qw, np.float64))
    ut = u.T                                                        # final = psi @ U^T
    wub = np.concatenate([ut.real, ut.imag], axis=1).astype(np.float32)

    return (jnp.asarray(c128), jnp.asarray(c32), jnp.asarray(wub, jnp.bfloat16))


# --------------------------------- main ----------------------------------------
if __name__ == "__main__":
    key = jax.random.PRNGKey(0)
    kx, kp = jax.random.split(key)
    x = jax.random.normal(kx, (B, S, H), jnp.float32)
    c128, c32, wub = make_params(kp)

    out = quantum_encoder_layer(x, c128, c32, wub)
    out = jax.block_until_ready(out)
    assert out.shape == (B, S, H)
    assert bool(jnp.all(jnp.isfinite(out)))

    # cross-check against the identical math run as plain XLA ops
    ref = reference_forward(x.reshape(N_TOK, H), c128, c32, wub).reshape(B, S, H)
    np.testing.assert_allclose(np.asarray(out), np.asarray(ref), rtol=2e-2, atol=2e-2)
    print("KERNEL_OK")
</pallas_src>

<mosaic_0001>
module attributes {stable_mosaic.version = 11 : i64} {
  func.func @fused_layer_kernel(%arg0: memref<16x32xf32, #tpu.memory_space<vmem>>, %arg1: memref<160x128xf32, #tpu.memory_space<vmem>>, %arg2: memref<384x32xf32, #tpu.memory_space<vmem>>, %arg3: memref<256x512xbf16, #tpu.memory_space<any>>, %arg4: memref<16x32xf32, #tpu.memory_space<vmem>>, %arg5: memref<256x512xbf16, #tpu.memory_space<vmem>>, %arg6: memref<!tpu.dma_semaphore, #tpu.memory_space<semaphore_mem>>) attributes {dimension_semantics = [], scalar_prefetch = 0 : i64, scratch_operands = 2 : i64, tpu.core_type = #tpu.core_type<tc>} {
    tpu.enqueue_dma source(%arg3 : memref<256x512xbf16, #tpu.memory_space<any>>) target(%arg5 : memref<256x512xbf16, #tpu.memory_space<vmem>>) target_semaphore(%arg6 : memref<!tpu.dma_semaphore, #tpu.memory_space<semaphore_mem>>)
    %c0 = arith.constant 0 : index
    %c0_0 = arith.constant 0 : index
    %0 = vector.load %arg0[%c0, %c0_0] : memref<16x32xf32, #tpu.memory_space<vmem>>, vector<16x32xf32>
    %c0_1 = arith.constant 0 : index
    %c0_2 = arith.constant 0 : index
    %1 = vector.load %arg1[%c0_1, %c0_2] : memref<160x128xf32, #tpu.memory_space<vmem>>, vector<32x96xf32>
    %cst = arith.constant dense<0.000000e+00> : vector<16x96xf32>
    %2 = tpu.matmul %0, %1, %cst {dimension_numbers = #tpu.dot_dimension_numbers<[1], [0], [0], [1], [0, 0, 1, 1], [], []>} : vector<16x32xf32>, vector<32x96xf32>, vector<16x96xf32> -> vector<16x96xf32>
    %c144 = arith.constant 144 : index
    %c0_3 = arith.constant 0 : index
    %3 = vector.load %arg1[%c144, %c0_3] : memref<160x128xf32, #tpu.memory_space<vmem>>, vector<1x96xf32>
    %4 = vector.broadcast %3 : vector<1x96xf32> to vector<16x96xf32>
    %5 = arith.addf %2, %4 : vector<16x96xf32>
    %6 = vector.extract_strided_slice %5 {offsets = [0, 0], sizes = [16, 32], strides = [1, 1]} : vector<16x96xf32> to vector<16x32xf32>
    %7 = vector.extract_strided_slice %5 {offsets = [0, 32], sizes = [16, 32], strides = [1, 1]} : vector<16x96xf32> to vector<16x32xf32>
    %8 = vector.extract_strided_slice %5 {offsets = [0, 64], sizes = [16, 32], strides = [1, 1]} : vector<16x96xf32> to vector<16x32xf32>
    %9 = tpu.transpose %7, [1, 0] : vector<16x32xf32> -> vector<32x16xf32>
    %c128 = arith.constant 128 : index
    %c0_4 = arith.constant 0 : index
    %10 = vector.load %arg1[%c128, %c0_4] : memref<160x128xf32, #tpu.memory_space<vmem>>, vector<16x16xf32>
    %11 = vector.extract_strided_slice %6 {offsets = [0, 0], sizes = [16, 8], strides = [1, 1]} : vector<16x32xf32> to vector<16x8xf32>
    %12 = vector.extract_strided_slice %9 {offsets = [0, 0], sizes = [8, 16], strides = [1, 1]} : vector<32x16xf32> to vector<8x16xf32>
    %cst_5 = arith.constant dense<0.000000e+00> : vector<16x16xf32>
    %13 = tpu.matmul %11, %12, %cst_5 {dimension_numbers = #tpu.dot_dimension_numbers<[1], [0], [0], [1], [0, 0, 1, 1], [], []>} : vector<16x8xf32>, vector<8x16xf32>, vector<16x16xf32> -> vector<16x16xf32>
    %cst_6 = arith.constant 0.353553385 : f32
    %14 = vector.broadcast %cst_6 : f32 to vector<16x16xf32>
    %15 = arith.mulf %13, %14 : vector<16x16xf32>
    %16 = arith.addf %15, %10 : vector<16x16xf32>
    %cst_7 = arith.constant dense<0xFF800000> : vector<16xf32>
    %17 = vector.multi_reduction <maximumf>, %16, %cst_7 [1] : vector<16x16xf32> to vector<16xf32>
    %18 = vector.shape_cast %17 : vector<16xf32> to vector<16x1xf32>
    %19 = vector.broadcast %18 : vector<16x1xf32> to vector<16x16xf32>
    %20 = arith.subf %16, %19 : vector<16x16xf32>
    %21 = math.exp %20 : vector<16x16xf32>
    %cst_8 = arith.constant dense<0.000000e+00> : vector<16xf32>
    %22 = vector.multi_reduction <add>, %21, %cst_8 [1] : vector<16x16xf32> to vector<16xf32>
    %23 = vector.shape_cast %22 : vector<16xf32> to vector<16x1xf32>
    %24 = tpu.reciprocal %23 {approx = true} : vector<16x1xf32> -> vector<16x1xf32>
    %25 = vector.broadcast %24 : vector<16x1xf32> to vector<16x16xf32>
    %26 = arith.mulf %21, %25 : vector<16x16xf32>
    %27 = vector.extract_strided_slice %8 {offsets = [0, 0], sizes = [16, 8], strides = [1, 1]} : vector<16x32xf32> to vector<16x8xf32>
    %cst_9 = arith.constant dense<0.000000e+00> : vector<16x8xf32>
    %28 = tpu.matmul %26, %27, %cst_9 {dimension_numbers = #tpu.dot_dimension_numbers<[1], [0], [0], [1], [0, 0, 1, 1], [], []>} : vector<16x16xf32>, vector<16x8xf32>, vector<16x8xf32> -> vector<16x8xf32>
    %29 = vector.extract_strided_slice %6 {offsets = [0, 8], sizes = [16, 8], strides = [1, 1]} : vector<16x32xf32> to vector<16x8xf32>
    %30 = vector.extract_strided_slice %9 {offsets = [8, 0], sizes = [8, 16], strides = [1, 1]} : vector<32x16xf32> to vector<8x16xf32>
    %cst_10 = arith.constant dense<0.000000e+00> : vector<16x16xf32>
    %31 = tpu.matmul %29, %30, %cst_10 {dimension_numbers = #tpu.dot_dimension_numbers<[1], [0], [0], [1], [0, 0, 1, 1], [], []>} : vector<16x8xf32>, vector<8x16xf32>, vector<16x16xf32> -> vector<16x16xf32>
    %cst_11 = arith.constant 0.353553385 : f32
    %32 = vector.broadcast %cst_11 : f32 to vector<16x16xf32>
    %33 = arith.mulf %31, %32 : vector<16x16xf32>
    %34 = arith.addf %33, %10 : vector<16x16xf32>
    %cst_12 = arith.constant dense<0xFF800000> : vector<16xf32>
    %35 = vector.multi_reduction <maximumf>, %34, %cst_12 [1] : vector<16x16xf32> to vector<16xf32>
    %36 = vector.shape_cast %35 : vector<16xf32> to vector<16x1xf32>
    %37 = vector.broadcast %36 : vector<16x1xf32> to vector<16x16xf32>
    %38 = arith.subf %34, %37 : vector<16x16xf32>
    %39 = math.exp %38 : vector<16x16xf32>
    %cst_13 = arith.constant dense<0.000000e+00> : vector<16xf32>
    %40 = vector.multi_reduction <add>, %39, %cst_13 [1] : vector<16x16xf32> to vector<16xf32>
    %41 = vector.shape_cast %40 : vector<16xf32> to vector<16x1xf32>
    %42 = tpu.reciprocal %41 {approx = true} : vector<16x1xf32> -> vector<16x1xf32>
    %43 = vector.broadcast %42 : vector<16x1xf32> to vector<16x16xf32>
    %44 = arith.mulf %39, %43 : vector<16x16xf32>
    %45 = vector.extract_strided_slice %8 {offsets = [0, 8], sizes = [16, 8], strides = [1, 1]} : vector<16x32xf32> to vector<16x8xf32>
    %cst_14 = arith.constant dense<0.000000e+00> : vector<16x8xf32>
    %46 = tpu.matmul %44, %45, %cst_14 {dimension_numbers = #tpu.dot_dimension_numbers<[1], [0], [0], [1], [0, 0, 1, 1], [], []>} : vector<16x16xf32>, vector<16x8xf32>, vector<16x8xf32> -> vector<16x8xf32>
    %47 = vector.extract_strided_slice %6 {offsets = [0, 16], sizes = [16, 8], strides = [1, 1]} : vector<16x32xf32> to vector<16x8xf32>
    %48 = vector.extract_strided_slice %9 {offsets = [16, 0], sizes = [8, 16], strides = [1, 1]} : vector<32x16xf32> to vector<8x16xf32>
    %cst_15 = arith.constant dense<0.000000e+00> : vector<16x16xf32>
    %49 = tpu.matmul %47, %48, %cst_15 {dimension_numbers = #tpu.dot_dimension_numbers<[1], [0], [0], [1], [0, 0, 1, 1], [], []>} : vector<16x8xf32>, vector<8x16xf32>, vector<16x16xf32> -> vector<16x16xf32>
    %cst_16 = arith.constant 0.353553385 : f32
    %50 = vector.broadcast %cst_16 : f32 to vector<16x16xf32>
    %51 = arith.mulf %49, %50 : vector<16x16xf32>
    %52 = arith.addf %51, %10 : vector<16x16xf32>
    %cst_17 = arith.constant dense<0xFF800000> : vector<16xf32>
    %53 = vector.multi_reduction <maximumf>, %52, %cst_17 [1] : vector<16x16xf32> to vector<16xf32>
    %54 = vector.shape_cast %53 : vector<16xf32> to vector<16x1xf32>
    %55 = vector.broadcast %54 : vector<16x1xf32> to vector<16x16xf32>
    %56 = arith.subf %52, %55 : vector<16x16xf32>
    %57 = math.exp %56 : vector<16x16xf32>
    %cst_18 = arith.constant dense<0.000000e+00> : vector<16xf32>
    %58 = vector.multi_reduction <add>, %57, %cst_18 [1] : vector<16x16xf32> to vector<16xf32>
    %59 = vector.shape_cast %58 : vector<16xf32> to vector<16x1xf32>
    %60 = tpu.reciprocal %59 {approx = true} : vector<16x1xf32> -> vector<16x1xf32>
    %61 = vector.broadcast %60 : vector<16x1xf32> to vector<16x16xf32>
    %62 = arith.mulf %57, %61 : vector<16x16xf32>
    %63 = vector.extract_strided_slice %8 {offsets = [0, 16], sizes = [16, 8], strides = [1, 1]} : vector<16x32xf32> to vector<16x8xf32>
    %cst_19 = arith.constant dense<0.000000e+00> : vector<16x8xf32>
    %64 = tpu.matmul %62, %63, %cst_19 {dimension_numbers = #tpu.dot_dimension_numbers<[1], [0], [0], [1], [0, 0, 1, 1], [], []>} : vector<16x16xf32>, vector<16x8xf32>, vector<16x8xf32> -> vector<16x8xf32>
    %65 = vector.extract_strided_slice %6 {offsets = [0, 24], sizes = [16, 8], strides = [1, 1]} : vector<16x32xf32> to vector<16x8xf32>
    %66 = vector.extract_strided_slice %9 {offsets = [24, 0], sizes = [8, 16], strides = [1, 1]} : vector<32x16xf32> to vector<8x16xf32>
    %cst_20 = arith.constant dense<0.000000e+00> : vector<16x16xf32>
    %67 = tpu.matmul %65, %66, %cst_20 {dimension_numbers = #tpu.dot_dimension_numbers<[1], [0], [0], [1], [0, 0, 1, 1], [], []>} : vector<16x8xf32>, vector<8x16xf32>, vector<16x16xf32> -> vector<16x16xf32>
    %cst_21 = arith.constant 0.353553385 : f32
    %68 = vector.broadcast %cst_21 : f32 to vector<16x16xf32>
    %69 = arith.mulf %67, %68 : vector<16x16xf32>
    %70 = arith.addf %69, %10 : vector<16x16xf32>
    %cst_22 = arith.constant dense<0xFF800000> : vector<16xf32>
    %71 = vector.multi_reduction <maximumf>, %70, %cst_22 [1] : vector<16x16xf32> to vector<16xf32>
    %72 = vector.shape_cast %71 : vector<16xf32> to vector<16x1xf32>
    %73 = vector.broadcast %72 : vector<16x1xf32> to vector<16x16xf32>
    %74 = arith.subf %70, %73 : vector<16x16xf32>
    %75 = math.exp %74 : vector<16x16xf32>
    %cst_23 = arith.constant dense<0.000000e+00> : vector<16xf32>
    %76 = vector.multi_reduction <add>, %75, %cst_23 [1] : vector<16x16xf32> to vector<16xf32>
    %77 = vector.shape_cast %76 : vector<16xf32> to vector<16x1xf32>
    %78 = tpu.reciprocal %77 {approx = true} : vector<16x1xf32> -> vector<16x1xf32>
    %79 = vector.broadcast %78 : vector<16x1xf32> to vector<16x16xf32>
    %80 = arith.mulf %75, %79 : vector<16x16xf32>
    %81 = vector.extract_strided_slice %8 {offsets = [0, 24], sizes = [16, 8], strides = [1, 1]} : vector<16x32xf32> to vector<16x8xf32>
    %cst_24 = arith.constant dense<0.000000e+00> : vector<16x8xf32>
    %82 = tpu.matmul %80, %81, %cst_24 {dimension_numbers = #tpu.dot_dimension_numbers<[1], [0], [0], [1], [0, 0, 1, 1], [], []>} : vector<16x16xf32>, vector<16x8xf32>, vector<16x8xf32> -> vector<16x8xf32>
    %83 = tpu.concatenate %28, %46, %64, %82 in 1 : vector<16x8xf32>, vector<16x8xf32>, vector<16x8xf32>, vector<16x8xf32> -> vector<16x32xf32>
    %c32 = arith.constant 32 : index
    %c0_25 = arith.constant 0 : index
    %84 = vector.load %arg1[%c32, %c0_25] : memref<160x128xf32, #tpu.memory_space<vmem>>, vector<32x32xf32>
    %cst_26 = arith.constant dense<0.000000e+00> : vector<16x32xf32>
    %85 = tpu.matmul %83, %84, %cst_26 {dimension_numbers = #tpu.dot_dimension_numbers<[1], [0], [0], [1], [0, 0, 1, 1], [], []>} : vector<16x32xf32>, vector<32x32xf32>, vector<16x32xf32> -> vector<16x32xf32>
    %c145 = arith.constant 145 : index
    %c0_27 = arith.constant 0 : index
    %86 = vector.load %arg1[%c145, %c0_27] : memref<160x128xf32, #tpu.memory_space<vmem>>, vector<1x32xf32>
    %87 = vector.broadcast %86 : vector<1x32xf32> to vector<16x32xf32>
    %88 = arith.addf %85, %87 : vector<16x32xf32>
    %89 = arith.addf %0, %88 : vector<16x32xf32>
    %c146 = arith.constant 146 : index
    %c0_28 = arith.constant 0 : index
    %90 = vector.load %arg1[%c146, %c0_28] : memref<160x128xf32, #tpu.memory_space<vmem>>, vector<1x32xf32>
    %c147 = arith.constant 147 : index
    %c0_29 = arith.constant 0 : index
    %91 = vector.load %arg1[%c147, %c0_29] : memref<160x128xf32, #tpu.memory_space<vmem>>, vector<1x32xf32>
    %cst_30 = arith.constant dense<0.000000e+00> : vector<16xf32>
    %92 = vector.multi_reduction <add>, %89, %cst_30 [1] : vector<16x32xf32> to vector<16xf32>
    %93 = vector.shape_cast %92 : vector<16xf32> to vector<16x1xf32>
    %cst_31 = arith.constant 3.200000e+01 : f32
    %94 = vector.broadcast %cst_31 : f32 to vector<16x1xf32>
    %95 = arith.divf %93, %94 : vector<16x1xf32>
    %96 = vector.broadcast %95 : vector<16x1xf32> to vector<16x32xf32>
    %97 = arith.subf %89, %96 : vector<16x32xf32>
    %98 = arith.mulf %97, %97 : vector<16x32xf32>
    %cst_32 = arith.constant dense<0.000000e+00> : vector<16xf32>
    %99 = vector.multi_reduction <add>, %98, %cst_32 [1] : vector<16x32xf32> to vector<16xf32>
    %100 = vector.shape_cast %99 : vector<16xf32> to vector<16x1xf32>
    %cst_33 = arith.constant 3.200000e+01 : f32
    %101 = vector.broadcast %cst_33 : f32 to vector<16x1xf32>
    %102 = arith.divf %100, %101 : vector<16x1xf32>
    %cst_34 = arith.constant 9.99999974E-6 : f32
    %103 = vector.broadcast %cst_34 : f32 to vector<16x1xf32>
    %104 = arith.addf %102, %103 : vector<16x1xf32>
    %105 = math.rsqrt %104 : vector<16x1xf32>
    %106 = vector.broadcast %105 : vector<16x1xf32> to vector<16x32xf32>
    %107 = arith.mulf %97, %106 : vector<16x32xf32>
    %108 = vector.broadcast %90 : vector<1x32xf32> to vector<16x32xf32>
    %109 = arith.mulf %107, %108 : vector<16x32xf32>
    %110 = vector.broadcast %91 : vector<1x32xf32> to vector<16x32xf32>
    %111 = arith.addf %109, %110 : vector<16x32xf32>
    %c148 = arith.constant 148 : index
    %c0_35 = arith.constant 0 : index
    %112 = vector.load %arg1[%c148, %c0_35] : memref<160x128xf32, #tpu.memory_space<vmem>>, vector<1x32xf32>
    %c149 = arith.constant 149 : index
    %c0_36 = arith.constant 0 : index
    %113 = vector.load %arg1[%c149, %c0_36] : memref<160x128xf32, #tpu.memory_space<vmem>>, vector<1x32xf32>
    %cst_37 = arith.constant dense<0.000000e+00> : vector<16xf32>
    %114 = vector.multi_reduction <add>, %111, %cst_37 [1] : vector<16x32xf32> to vector<16xf32>
    %115 = vector.shape_cast %114 : vector<16xf32> to vector<16x1xf32>
    %cst_38 = arith.constant 3.200000e+01 : f32
    %116 = vector.broadcast %cst_38 : f32 to vector<16x1xf32>
    %117 = arith.divf %115, %116 : vector<16x1xf32>
    %118 = vector.broadcast %117 : vector<16x1xf32> to vector<16x32xf32>
    %119 = arith.subf %111, %118 : vector<16x32xf32>
    %120 = arith.mulf %119, %119 : vector<16x32xf32>
    %cst_39 = arith.constant dense<0.000000e+00> : vector<16xf32>
    %121 = vector.multi_reduction <add>, %120, %cst_39 [1] : vector<16x32xf32> to vector<16xf32>
    %122 = vector.shape_cast %121 : vector<16xf32> to vector<16x1xf32>
    %cst_40 = arith.constant 3.200000e+01 : f32
    %123 = vector.broadcast %cst_40 : f32 to vector<16x1xf32>
    %124 = arith.divf %122, %123 : vector<16x1xf32>
    %cst_41 = arith.constant 9.99999974E-6 : f32
    %125 = vector.broadcast %cst_41 : f32 to vector<16x1xf32>
    %126 = arith.addf %124, %125 : vector<16x1xf32>
    %127 = math.rsqrt %126 : vector<16x1xf32>
    %128 = vector.broadcast %127 : vector<16x1xf32> to vector<16x32xf32>
    %129 = arith.mulf %119, %128 : vector<16x32xf32>
    %130 = vector.broadcast %112 : vector<1x32xf32> to vector<16x32xf32>
    %131 = arith.mulf %129, %130 : vector<16x32xf32>
    %132 = vector.broadcast %113 : vector<1x32xf32> to vector<16x32xf32>
    %133 = arith.addf %131, %132 : vector<16x32xf32>
    %c64 = arith.constant 64 : index
    %c0_42 = arith.constant 0 : index
    %134 = vector.load %arg1[%c64, %c0_42] : memref<160x128xf32, #tpu.memory_space<vmem>>, vector<32x8xf32>
    %cst_43 = arith.constant dense<0.000000e+00> : vector<16x8xf32>
    %135 = tpu.matmul %133, %134, %cst_43 {dimension_numbers = #tpu.dot_dimension_numbers<[1], [0], [0], [1], [0, 0, 1, 1], [], []>} : vector<16x32xf32>, vector<32x8xf32>, vector<16x8xf32> -> vector<16x8xf32>
    %c150 = arith.constant 150 : index
    %c0_44 = arith.constant 0 : index
    %136 = vector.load %arg1[%c150, %c0_44] : memref<160x128xf32, #tpu.memory_space<vmem>>, vector<1x8xf32>
    %137 = vector.broadcast %136 : vector<1x8xf32> to vector<16x8xf32>
    %138 = arith.addf %135, %137 : vector<16x8xf32>
    %cst_45 = arith.constant 5.000000e-01 : f32
    %139 = vector.broadcast %cst_45 : f32 to vector<16x8xf32>
    %140 = arith.mulf %139, %138 : vector<16x8xf32>
    %141 = math.cos %140 : vector<16x8xf32>
    %142 = math.sin %140 : vector<16x8xf32>
    %143 = arith.mulf %141, %141 : vector<16x8xf32>
    %144 = arith.mulf %142, %142 : vector<16x8xf32>
    %145 = arith.mulf %141, %142 : vector<16x8xf32>
    %146 = arith.subf %144, %143 : vector<16x8xf32>
    %147 = tpu.iota {dimensions = array<i32: 1>} : vector<1x256xi32>
    %c7_i32 = arith.constant 7 : i32
    %148 = vector.broadcast %c7_i32 : i32 to vector<1x256xi32>
    %149 = arith.shrsi %147, %148 : vector<1x256xi32>
    %c1_i32 = arith.constant 1 : i32
    %150 = vector.broadcast %c1_i32 : i32 to vector<1x256xi32>
    %151 = arith.andi %149, %150 : vector<1x256xi32>
    %152 = arith.sitofp %151 : vector<1x256xi32> to vector<1x256xf32>
    %153 = vector.extract_strided_slice %143 {offsets = [0, 0], sizes = [16, 1], strides = [1, 1]} : vector<16x8xf32> to vector<16x1xf32>
    %154 = vector.extract_strided_slice %146 {offsets = [0, 0], sizes = [16, 1], strides = [1, 1]} : vector<16x8xf32> to vector<16x1xf32>
    %155 = vector.broadcast %154 : vector<16x1xf32> to vector<16x256xf32>
    %156 = vector.broadcast %152 : vector<1x256xf32> to vector<16x256xf32>
    %157 = arith.mulf %155, %156 : vector<16x256xf32>
    %158 = vector.broadcast %153 : vector<16x1xf32> to vector<16x256xf32>
    %159 = arith.addf %158, %157 : vector<16x256xf32>
    %160 = vector.extract_strided_slice %145 {offsets = [0, 0], sizes = [16, 1], strides = [1, 1]} : vector<16x8xf32> to vector<16x1xf32>
    %cst_46 = arith.constant 0.000000e+00 : f32
    %161 = vector.broadcast %cst_46 : f32 to vector<16x1xf32>
    %162 = arith.subf %161, %160 : vector<16x1xf32>
    %c6_i32 = arith.constant 6 : i32
    %163 = vector.broadcast %c6_i32 : i32 to vector<1x256xi32>
    %164 = arith.shrsi %147, %163 : vector<1x256xi32>
    %c1_i32_47 = arith.constant 1 : i32
    %165 = vector.broadcast %c1_i32_47 : i32 to vector<1x256xi32>
    %166 = arith.andi %164, %165 : vector<1x256xi32>
    %167 = arith.sitofp %166 : vector<1x256xi32> to vector<1x256xf32>
    %168 = vector.extract_strided_slice %143 {offsets = [0, 1], sizes = [16, 1], strides = [1, 1]} : vector<16x8xf32> to vector<16x1xf32>
    %169 = vector.extract_strided_slice %146 {offsets = [0, 1], sizes = [16, 1], strides = [1, 1]} : vector<16x8xf32> to vector<16x1xf32>
    %170 = vector.broadcast %169 : vector<16x1xf32> to vector<16x256xf32>
    %171 = vector.broadcast %167 : vector<1x256xf32> to vector<16x256xf32>
    %172 = arith.mulf %170, %171 : vector<16x256xf32>
    %173 = vector.broadcast %168 : vector<16x1xf32> to vector<16x256xf32>
    %174 = arith.addf %173, %172 : vector<16x256xf32>
    %175 = vector.extract_strided_slice %145 {offsets = [0, 1], sizes = [16, 1], strides = [1, 1]} : vector<16x8xf32> to vector<16x1xf32>
    %cst_48 = arith.constant 0.000000e+00 : f32
    %176 = vector.broadcast %cst_48 : f32 to vector<16x1xf32>
    %177 = arith.subf %176, %175 : vector<16x1xf32>
    %178 = arith.mulf %159, %174 : vector<16x256xf32>
    %179 = arith.mulf %162, %177 : vector<16x1xf32>
    %180 = vector.broadcast %179 : vector<16x1xf32> to vector<16x256xf32>
    %181 = arith.subf %178, %180 : vector<16x256xf32>
    %182 = vector.broadcast %177 : vector<16x1xf32> to vector<16x256xf32>
    %183 = arith.mulf %159, %182 : vector<16x256xf32>
    %184 = vector.broadcast %162 : vector<16x1xf32> to vector<16x256xf32>
    %185 = arith.mulf %184, %174 : vector<16x256xf32>
    %186 = arith.addf %183, %185 : vector<16x256xf32>
    %c5_i32 = arith.constant 5 : i32
    %187 = vector.broadcast %c5_i32 : i32 to vector<1x256xi32>
    %188 = arith.shrsi %147, %187 : vector<1x256xi32>
    %c1_i32_49 = arith.constant 1 : i32
    %189 = vector.broadcast %c1_i32_49 : i32 to vector<1x256xi32>
    %190 = arith.andi %188, %189 : vector<1x256xi32>
    %191 = arith.sitofp %190 : vector<1x256xi32> to vector<1x256xf32>
    %192 = vector.extract_strided_slice %143 {offsets = [0, 2], sizes = [16, 1], strides = [1, 1]} : vector<16x8xf32> to vector<16x1xf32>
    %193 = vector.extract_strided_slice %146 {offsets = [0, 2], sizes = [16, 1], strides = [1, 1]} : vector<16x8xf32> to vector<16x1xf32>
    %194 = vector.broadcast %193 : vector<16x1xf32> to vector<16x256xf32>
    %195 = vector.broadcast %191 : vector<1x256xf32> to vector<16x256xf32>
    %196 = arith.mulf %194, %195 : vector<16x256xf32>
    %197 = vector.broadcast %192 : vector<16x1xf32> to vector<16x256xf32>
    %198 = arith.addf %197, %196 : vector<16x256xf32>
    %199 = vector.extract_strided_slice %145 {offsets = [0, 2], sizes = [16, 1], strides = [1, 1]} : vector<16x8xf32> to vector<16x1xf32>
    %cst_50 = arith.constant 0.000000e+00 : f32
    %200 = vector.broadcast %cst_50 : f32 to vector<16x1xf32>
    %201 = arith.subf %200, %199 : vector<16x1xf32>
    %c4_i32 = arith.constant 4 : i32
    %202 = vector.broadcast %c4_i32 : i32 to vector<1x256xi32>
    %203 = arith.shrsi %147, %202 : vector<1x256xi32>
    %c1_i32_51 = arith.constant 1 : i32
    %204 = vector.broadcast %c1_i32_51 : i32 to vector<1x256xi32>
    %205 = arith.andi %203, %204 : vector<1x256xi32>
    %206 = arith.sitofp %205 : vector<1x256xi32> to vector<1x256xf32>
    %207 = vector.extract_strided_slice %143 {offsets = [0, 3], sizes = [16, 1], strides = [1, 1]} : vector<16x8xf32> to vector<16x1xf32>
    %208 = vector.extract_strided_slice %146 {offsets = [0, 3], sizes = [16, 1], strides = [1, 1]} : vector<16x8xf32> to vector<16x1xf32>
    %209 = vector.broadcast %208 : vector<16x1xf32> to vector<16x256xf32>
    %210 = vector.broadcast %206 : vector<1x256xf32> to vector<16x256xf32>
    %211 = arith.mulf %209, %210 : vector<16x256xf32>
    %212 = vector.broadcast %207 : vector<16x1xf32> to vector<16x256xf32>
    %213 = arith.addf %212, %211 : vector<16x256xf32>
    %214 = vector.extract_strided_slice %145 {offsets = [0, 3], sizes = [16, 1], strides = [1, 1]} : vector<16x8xf32> to vector<16x1xf32>
    %cst_52 = arith.constant 0.000000e+00 : f32
    %215 = vector.broadcast %cst_52 : f32 to vector<16x1xf32>
    %216 = arith.subf %215, %214 : vector<16x1xf32>
    %217 = arith.mulf %198, %213 : vector<16x256xf32>
    %218 = arith.mulf %201, %216 : vector<16x1xf32>
    %219 = vector.broadcast %218 : vector<16x1xf32> to vector<16x256xf32>
    %220 = arith.subf %217, %219 : vector<16x256xf32>
    %221 = vector.broadcast %216 : vector<16x1xf32> to vector<16x256xf32>
    %222 = arith.mulf %198, %221 : vector<16x256xf32>
    %223 = vector.broadcast %201 : vector<16x1xf32> to vector<16x256xf32>
    %224 = arith.mulf %223, %213 : vector<16x256xf32>
    %225 = arith.addf %222, %224 : vector<16x256xf32>
    %c3_i32 = arith.constant 3 : i32
    %226 = vector.broadcast %c3_i32 : i32 to vector<1x256xi32>
    %227 = arith.shrsi %147, %226 : vector<1x256xi32>
    %c1_i32_53 = arith.constant 1 : i32
    %228 = vector.broadcast %c1_i32_53 : i32 to vector<1x256xi32>
    %229 = arith.andi %227, %228 : vector<1x256xi32>
    %230 = arith.sitofp %229 : vector<1x256xi32> to vector<1x256xf32>
    %231 = vector.extract_strided_slice %143 {offsets = [0, 4], sizes = [16, 1], strides = [1, 1]} : vector<16x8xf32> to vector<16x1xf32>
    %232 = vector.extract_strided_slice %146 {offsets = [0, 4], sizes = [16, 1], strides = [1, 1]} : vector<16x8xf32> to vector<16x1xf32>
    %233 = vector.broadcast %232 : vector<16x1xf32> to vector<16x256xf32>
    %234 = vector.broadcast %230 : vector<1x256xf32> to vector<16x256xf32>
    %235 = arith.mulf %233, %234 : vector<16x256xf32>
    %236 = vector.broadcast %231 : vector<16x1xf32> to vector<16x256xf32>
    %237 = arith.addf %236, %235 : vector<16x256xf32>
    %238 = vector.extract_strided_slice %145 {offsets = [0, 4], sizes = [16, 1], strides = [1, 1]} : vector<16x8xf32> to vector<16x1xf32>
    %cst_54 = arith.constant 0.000000e+00 : f32
    %239 = vector.broadcast %cst_54 : f32 to vector<16x1xf32>
    %240 = arith.subf %239, %238 : vector<16x1xf32>
    %c2_i32 = arith.constant 2 : i32
    %241 = vector.broadcast %c2_i32 : i32 to vector<1x256xi32>
    %242 = arith.shrsi %147, %241 : vector<1x256xi32>
    %c1_i32_55 = arith.constant 1 : i32
    %243 = vector.broadcast %c1_i32_55 : i32 to vector<1x256xi32>
    %244 = arith.andi %242, %243 : vector<1x256xi32>
    %245 = arith.sitofp %244 : vector<1x256xi32> to vector<1x256xf32>
    %246 = vector.extract_strided_slice %143 {offsets = [0, 5], sizes = [16, 1], strides = [1, 1]} : vector<16x8xf32> to vector<16x1xf32>
    %247 = vector.extract_strided_slice %146 {offsets = [0, 5], sizes = [16, 1], strides = [1, 1]} : vector<16x8xf32> to vector<16x1xf32>
    %248 = vector.broadcast %247 : vector<16x1xf32> to vector<16x256xf32>
    %249 = vector.broadcast %245 : vector<1x256xf32> to vector<16x256xf32>
    %250 = arith.mulf %248, %249 : vector<16x256xf32>
    %251 = vector.broadcast %246 : vector<16x1xf32> to vector<16x256xf32>
    %252 = arith.addf %251, %250 : vector<16x256xf32>
    %253 = vector.extract_strided_slice %145 {offsets = [0, 5], sizes = [16, 1], strides = [1, 1]} : vector<16x8xf32> to vector<16x1xf32>
    %cst_56 = arith.constant 0.000000e+00 : f32
    %254 = vector.broadcast %cst_56 : f32 to vector<16x1xf32>
    %255 = arith.subf %254, %253 : vector<16x1xf32>
    %256 = arith.mulf %237, %252 : vector<16x256xf32>
    %257 = arith.mulf %240, %255 : vector<16x1xf32>
    %258 = vector.broadcast %257 : vector<16x1xf32> to vector<16x256xf32>
    %259 = arith.subf %256, %258 : vector<16x256xf32>
    %260 = vector.broadcast %255 : vector<16x1xf32> to vector<16x256xf32>
    %261 = arith.mulf %237, %260 : vector<16x256xf32>
    %262 = vector.broadcast %240 : vector<16x1xf32> to vector<16x256xf32>
    %263 = arith.mulf %262, %252 : vector<16x256xf32>
    %264 = arith.addf %261, %263 : vector<16x256xf32>
    %c1_i32_57 = arith.constant 1 : i32
    %265 = vector.broadcast %c1_i32_57 : i32 to vector<1x256xi32>
    %266 = arith.shrsi %147, %265 : vector<1x256xi32>
    %c1_i32_58 = arith.constant 1 : i32
    %267 = vector.broadcast %c1_i32_58 : i32 to vector<1x256xi32>
    %268 = arith.andi %266, %267 : vector<1x256xi32>
    %269 = arith.sitofp %268 : vector<1x256xi32> to vector<1x256xf32>
    %270 = vector.extract_strided_slice %143 {offsets = [0, 6], sizes = [16, 1], strides = [1, 1]} : vector<16x8xf32> to vector<16x1xf32>
    %271 = vector.extract_strided_slice %146 {offsets = [0, 6], sizes = [16, 1], strides = [1, 1]} : vector<16x8xf32> to vector<16x1xf32>
    %272 = vector.broadcast %271 : vector<16x1xf32> to vector<16x256xf32>
    %273 = vector.broadcast %269 : vector<1x256xf32> to vector<16x256xf32>
    %274 = arith.mulf %272, %273 : vector<16x256xf32>
    %275 = vector.broadcast %270 : vector<16x1xf32> to vector<16x256xf32>
    %276 = arith.addf %275, %274 : vector<16x256xf32>
    %277 = vector.extract_strided_slice %145 {offsets = [0, 6], sizes = [16, 1], strides = [1, 1]} : vector<16x8xf32> to vector<16x1xf32>
    %cst_59 = arith.constant 0.000000e+00 : f32
    %278 = vector.broadcast %cst_59 : f32 to vector<16x1xf32>
    %279 = arith.subf %278, %277 : vector<16x1xf32>
    %c0_i32 = arith.constant 0 : i32
    %280 = vector.broadcast %c0_i32 : i32 to vector<1x256xi32>
    %281 = arith.shrsi %147, %280 : vector<1x256xi32>
    %c1_i32_60 = arith.constant 1 : i32
    %282 = vector.broadcast %c1_i32_60 : i32 to vector<1x256xi32>
    %283 = arith.andi %281, %282 : vector<1x256xi32>
    %284 = arith.sitofp %283 : vector<1x256xi32> to vector<1x256xf32>
    %285 = vector.extract_strided_slice %143 {offsets = [0, 7], sizes = [16, 1], strides = [1, 1]} : vector<16x8xf32> to vector<16x1xf32>
    %286 = vector.extract_strided_slice %146 {offsets = [0, 7], sizes = [16, 1], strides = [1, 1]} : vector<16x8xf32> to vector<16x1xf32>
    %287 = vector.broadcast %286 : vector<16x1xf32> to vector<16x256xf32>
    %288 = vector.broadcast %284 : vector<1x256xf32> to vector<16x256xf32>
    %289 = arith.mulf %287, %288 : vector<16x256xf32>
    %290 = vector.broadcast %285 : vector<16x1xf32> to vector<16x256xf32>
    %291 = arith.addf %290, %289 : vector<16x256xf32>
    %292 = vector.extract_strided_slice %145 {offsets = [0, 7], sizes = [16, 1], strides = [1, 1]} : vector<16x8xf32> to vector<16x1xf32>
    %cst_61 = arith.constant 0.000000e+00 : f32
    %293 = vector.broadcast %cst_61 : f32 to vector<16x1xf32>
    %294 = arith.subf %293, %292 : vector<16x1xf32>
    %295 = arith.mulf %276, %291 : vector<16x256xf32>
    %296 = arith.mulf %279, %294 : vector<16x1xf32>
    %297 = vector.broadcast %296 : vector<16x1xf32> to vector<16x256xf32>
    %298 = arith.subf %295, %297 : vector<16x256xf32>
    %299 = vector.broadcast %294 : vector<16x1xf32> to vector<16x256xf32>
    %300 = arith.mulf %276, %299 : vector<16x256xf32>
    %301 = vector.broadcast %279 : vector<16x1xf32> to vector<16x256xf32>
    %302 = arith.mulf %301, %291 : vector<16x256xf32>
    %303 = arith.addf %300, %302 : vector<16x256xf32>
    %304 = arith.mulf %181, %220 : vector<16x256xf32>
    %305 = arith.mulf %186, %225 : vector<16x256xf32>
    %306 = arith.subf %304, %305 : vector<16x256xf32>
    %307 = arith.mulf %181, %225 : vector<16x256xf32>
    %308 = arith.mulf %186, %220 : vector<16x256xf32>
    %309 = arith.addf %307, %308 : vector<16x256xf32>
    %310 = arith.mulf %259, %298 : vector<16x256xf32>
    %311 = arith.mulf %264, %303 : vector<16x256xf32>
    %312 = arith.subf %310, %311 : vector<16x256xf32>
    %313 = arith.mulf %259, %303 : vector<16x256xf32>
    %314 = arith.mulf %264, %298 : vector<16x256xf32>
    %315 = arith.addf %313, %314 : vector<16x256xf32>
    %316 = arith.mulf %306, %312 : vector<16x256xf32>
    %317 = arith.mulf %309, %315 : vector<16x256xf32>
    %318 = arith.subf %316, %317 : vector<16x256xf32>
    %319 = arith.mulf %306, %315 : vector<16x256xf32>
    %320 = arith.mulf %309, %312 : vector<16x256xf32>
    %321 = arith.addf %319, %320 : vector<16x256xf32>
    tpu.wait_dma2 semaphore(%arg6 : memref<!tpu.dma_semaphore, #tpu.memory_space<semaphore_mem>>) src(%arg3 : memref<256x512xbf16, #tpu.memory_space<any>>) dst(%arg5 : memref<256x512xbf16, #tpu.memory_space<vmem>>)
    %c0_62 = arith.constant 0 : index
    %c0_63 = arith.constant 0 : index
    %322 = vector.load %arg5[%c0_62, %c0_63] : memref<256x512xbf16, #tpu.memory_space<vmem>>, vector<256x512xbf16>
    %323 = arith.truncf %318 : vector<16x256xf32> to vector<16x256xbf16>
    %324 = arith.truncf %321 : vector<16x256xf32> to vector<16x256xbf16>
    %cst_64 = arith.constant dense<0.000000e+00> : vector<16x512xf32>
    %325 = tpu.matmul %323, %322, %cst_64 {dimension_numbers = #tpu.dot_dimension_numbers<[1], [0], [0], [1], [0, 0, 1, 1], [], []>} : vector<16x256xbf16>, vector<256x512xbf16>, vector<16x512xf32> -> vector<16x512xf32>
    %cst_65 = arith.constant dense<0.000000e+00> : vector<16x512xf32>
    %326 = tpu.matmul %324, %322, %cst_65 {dimension_numbers = #tpu.dot_dimension_numbers<[1], [0], [0], [1], [0, 0, 1, 1], [], []>} : vector<16x256xbf16>, vector<256x512xbf16>, vector<16x512xf32> -> vector<16x512xf32>
    %327 = vector.extract_strided_slice %325 {offsets = [0, 0], sizes = [16, 256], strides = [1, 1]} : vector<16x512xf32> to vector<16x256xf32>
    %328 = vector.extract_strided_slice %326 {offsets = [0, 256], sizes = [16, 256], strides = [1, 1]} : vector<16x512xf32> to vector<16x256xf32>
    %329 = arith.subf %327, %328 : vector<16x256xf32>
    %330 = vector.extract_strided_slice %325 {offsets = [0, 256], sizes = [16, 256], strides = [1, 1]} : vector<16x512xf32> to vector<16x256xf32>
    %331 = vector.extract_strided_slice %326 {offsets = [0, 0], sizes = [16, 256], strides = [1, 1]} : vector<16x512xf32> to vector<16x256xf32>
    %332 = arith.addf %330, %331 : vector<16x256xf32>
    %333 = arith.mulf %329, %329 : vector<16x256xf32>
    %334 = arith.mulf %332, %332 : vector<16x256xf32>
    %335 = arith.addf %333, %334 : vector<16x256xf32>
    %c128_66 = arith.constant 128 : index
    %c0_67 = arith.constant 0 : index
    %336 = vector.load %arg2[%c128_66, %c0_67] : memref<384x32xf32, #tpu.memory_space<vmem>>, vector<256x32xf32>
    %cst_68 = arith.constant dense<0.000000e+00> : vector<16x32xf32>
    %337 = tpu.matmul %335, %336, %cst_68 {dimension_numbers = #tpu.dot_dimension_numbers<[1], [0], [0], [1], [0, 0, 1, 1], [], []>} : vector<16x256xf32>, vector<256x32xf32>, vector<16x32xf32> -> vector<16x32xf32>
    %c151 = arith.constant 151 : index
    %c0_69 = arith.constant 0 : index
    %338 = vector.load %arg1[%c151, %c0_69] : memref<160x128xf32, #tpu.memory_space<vmem>>, vector<1x32xf32>
    %339 = vector.broadcast %338 : vector<1x32xf32> to vector<16x32xf32>
    %340 = arith.addf %337, %339 : vector<16x32xf32>
    %341 = arith.addf %111, %340 : vector<16x32xf32>
    %c96 = arith.constant 96 : index
    %c0_70 = arith.constant 0 : index
    %342 = vector.load %arg1[%c96, %c0_70] : memref<160x128xf32, #tpu.memory_space<vmem>>, vector<32x128xf32>
    %cst_71 = arith.constant dense<0.000000e+00> : vector<16x128xf32>
    %343 = tpu.matmul %341, %342, %cst_71 {dimension_numbers = #tpu.dot_dimension_numbers<[1], [0], [0], [1], [0, 0, 1, 1], [], []>} : vector<16x32xf32>, vector<32x128xf32>, vector<16x128xf32> -> vector<16x128xf32>
    %c152 = arith.constant 152 : index
    %c0_72 = arith.constant 0 : index
    %344 = vector.load %arg1[%c152, %c0_72] : memref<160x128xf32, #tpu.memory_space<vmem>>, vector<1x128xf32>
    %345 = vector.broadcast %344 : vector<1x128xf32> to vector<16x128xf32>
    %346 = arith.addf %343, %345 : vector<16x128xf32>
    %cst_73 = arith.constant 5.000000e-01 : f32
    %347 = vector.broadcast %cst_73 : f32 to vector<16x128xf32>
    %348 = arith.mulf %347, %346 : vector<16x128xf32>
    %cst_74 = arith.constant 0.707106769 : f32
    %349 = vector.broadcast %cst_74 : f32 to vector<16x128xf32>
    %350 = arith.mulf %346, %349 : vector<16x128xf32>
    %cst_75 = arith.constant 0.000000e+00 : f32
    %351 = vector.broadcast %cst_75 : f32 to vector<16x128xf32>
    %352 = arith.cmpf oge, %350, %351 : vector<16x128xf32>
    %cst_76 = arith.constant 1.000000e+00 : f32
    %cst_77 = arith.constant -1.000000e+00 : f32
    %353 = vector.broadcast %cst_76 : f32 to vector<16x128xf32>
    %354 = vector.broadcast %cst_77 : f32 to vector<16x128xf32>
    %355 = arith.select %352, %353, %354 : vector<16x128xi1>, vector<16x128xf32>
    %356 = arith.mulf %355, %350 : vector<16x128xf32>
    %cst_78 = arith.constant 0.327591091 : f32
    %357 = vector.broadcast %cst_78 : f32 to vector<16x128xf32>
    %358 = arith.mulf %357, %356 : vector<16x128xf32>
    %cst_79 = arith.constant 1.000000e+00 : f32
    %359 = vector.broadcast %cst_79 : f32 to vector<16x128xf32>
    %360 = arith.addf %359, %358 : vector<16x128xf32>
    %361 = tpu.reciprocal %360 {approx = true} : vector<16x128xf32> -> vector<16x128xf32>
    %cst_80 = arith.constant 1.06140542 : f32
    %362 = vector.broadcast %cst_80 : f32 to vector<16x128xf32>
    %363 = arith.mulf %362, %361 : vector<16x128xf32>
    %cst_81 = arith.constant -1.45315206 : f32
    %364 = vector.broadcast %cst_81 : f32 to vector<16x128xf32>
    %365 = arith.addf %363, %364 : vector<16x128xf32>
    %366 = arith.mulf %365, %361 : vector<16x128xf32>
    %cst_82 = arith.constant 1.42141378 : f32
    %367 = vector.broadcast %cst_82 : f32 to vector<16x128xf32>
    %368 = arith.addf %366, %367 : vector<16x128xf32>
    %369 = arith.mulf %368, %361 : vector<16x128xf32>
    %cst_83 = arith.constant -0.284496725 : f32
    %370 = vector.broadcast %cst_83 : f32 to vector<16x128xf32>
    %371 = arith.addf %369, %370 : vector<16x128xf32>
    %372 = arith.mulf %371, %361 : vector<16x128xf32>
    %cst_84 = arith.constant 0.254829586 : f32
    %373 = vector.broadcast %cst_84 : f32 to vector<16x128xf32>
    %374 = arith.addf %372, %373 : vector<16x128xf32>
    %375 = arith.mulf %374, %361 : vector<16x128xf32>
    %cst_85 = arith.constant 0.000000e+00 : f32
    %376 = vector.broadcast %cst_85 : f32 to vector<16x128xf32>
    %377 = arith.subf %376, %356 : vector<16x128xf32>
    %378 = arith.mulf %377, %356 : vector<16x128xf32>
    %379 = math.exp %378 : vector<16x128xf32>
    %380 = arith.mulf %375, %379 : vector<16x128xf32>
    %cst_86 = arith.constant 1.000000e+00 : f32
    %381 = vector.broadcast %cst_86 : f32 to vector<16x128xf32>
    %382 = arith.subf %381, %380 : vector<16x128xf32>
    %383 = arith.mulf %355, %382 : vector<16x128xf32>
    %cst_87 = arith.constant 1.000000e+00 : f32
    %384 = vector.broadcast %cst_87 : f32 to vector<16x128xf32>
    %385 = arith.addf %384, %383 : vector<16x128xf32>
    %386 = arith.mulf %348, %385 : vector<16x128xf32>
    %c0_88 = arith.constant 0 : index
    %c0_89 = arith.constant 0 : index
    %387 = vector.load %arg2[%c0_88, %c0_89] : memref<384x32xf32, #tpu.memory_space<vmem>>, vector<128x32xf32>
    %cst_90 = arith.constant dense<0.000000e+00> : vector<16x32xf32>
    %388 = tpu.matmul %386, %387, %cst_90 {dimension_numbers = #tpu.dot_dimension_numbers<[1], [0], [0], [1], [0, 0, 1, 1], [], []>} : vector<16x128xf32>, vector<128x32xf32>, vector<16x32xf32> -> vector<16x32xf32>
    %c153 = arith.constant 153 : index
    %c0_91 = arith.constant 0 : index
    %389 = vector.load %arg1[%c153, %c0_91] : memref<160x128xf32, #tpu.memory_space<vmem>>, vector<1x32xf32>
    %390 = vector.broadcast %389 : vector<1x32xf32> to vector<16x32xf32>
    %391 = arith.addf %388, %390 : vector<16x32xf32>
    %392 = arith.addf %341, %391 : vector<16x32xf32>
    %c154 = arith.constant 154 : index
    %c0_92 = arith.constant 0 : index
    %393 = vector.load %arg1[%c154, %c0_92] : memref<160x128xf32, #tpu.memory_space<vmem>>, vector<1x32xf32>
    %c155 = arith.constant 155 : index
    %c0_93 = arith.constant 0 : index
    %394 = vector.load %arg1[%c155, %c0_93] : memref<160x128xf32, #tpu.memory_space<vmem>>, vector<1x32xf32>
    %cst_94 = arith.constant dense<0.000000e+00> : vector<16xf32>
    %395 = vector.multi_reduction <add>, %392, %cst_94 [1] : vector<16x32xf32> to vector<16xf32>
    %396 = vector.shape_cast %395 : vector<16xf32> to vector<16x1xf32>
    %cst_95 = arith.constant 3.200000e+01 : f32
    %397 = vector.broadcast %cst_95 : f32 to vector<16x1xf32>
    %398 = arith.divf %396, %397 : vector<16x1xf32>
    %399 = vector.broadcast %398 : vector<16x1xf32> to vector<16x32xf32>
    %400 = arith.subf %392, %399 : vector<16x32xf32>
    %401 = arith.mulf %400, %400 : vector<16x32xf32>
    %cst_96 = arith.constant dense<0.000000e+00> : vector<16xf32>
    %402 = vector.multi_reduction <add>, %401, %cst_96 [1] : vector<16x32xf32> to vector<16xf32>
    %403 = vector.shape_cast %402 : vector<16xf32> to vector<16x1xf32>
    %cst_97 = arith.constant 3.200000e+01 : f32
    %404 = vector.broadcast %cst_97 : f32 to vector<16x1xf32>
    %405 = arith.divf %403, %404 : vector<16x1xf32>
    %cst_98 = arith.constant 9.99999974E-6 : f32
    %406 = vector.broadcast %cst_98 : f32 to vector<16x1xf32>
    %407 = arith.addf %405, %406 : vector<16x1xf32>
    %408 = math.rsqrt %407 : vector<16x1xf32>
    %409 = vector.broadcast %408 : vector<16x1xf32> to vector<16x32xf32>
    %410 = arith.mulf %400, %409 : vector<16x32xf32>
    %411 = vector.broadcast %393 : vector<1x32xf32> to vector<16x32xf32>
    %412 = arith.mulf %410, %411 : vector<16x32xf32>
    %413 = vector.broadcast %394 : vector<1x32xf32> to vector<16x32xf32>
    %414 = arith.addf %412, %413 : vector<16x32xf32>
    %c0_99 = arith.constant 0 : index
    %c0_100 = arith.constant 0 : index
    %415 = vector.load %arg4[%c0_99, %c0_100] : memref<16x32xf32, #tpu.memory_space<vmem>>, vector<16x32xf32>
    tpu.vector_store %arg4[%c0_99, %c0_100], %414 {strides = array<i32>} : memref<16x32xf32, #tpu.memory_space<vmem>>, vector<16x32xf32>,
    return
  }
}

</mosaic_0001>

<bundles_post_ra>
// kernel: quantum_encoder_layer.1
= control target key start
LH: loop header
LB: loop body
LE: loop exit
PB: predicated region body
PF: predicated region fallthrough
CT: control target
= control target key end

     0   :  { %vm38_vm0 = vcmask 261120   ;;  %s5099_s0 = inlined_call_operand.vmem [shape: f32[16,32], index: 0, kind: input, shape index: {}]   ;;  %s5100_s1 = inlined_call_operand.vmem [shape: f32[160,128], index: 1, kind: input, shape index: {}]   ;;  %s5101_s2 = inlined_call_operand.vmem [shape: f32[384,32], index: 2, kind: input, shape index: {}]   ;;  %s5102_s3 = inlined_call_operand.hbm [shape: bf16[256,512], index: 3, kind: input, shape index: {}]   ;;  %s5103_s4 = inlined_call_operand.hbm [shape: f32[16,32], index: 4, kind: output, shape index: {}]  }
   0x1   :  { %v32_v0 = vld [vmem:[%s5100_s1 + $0x18] sm:$0xff]  ;;  %v31_v1 = vld [vmem:[%s5100_s1 + $0x10] sm:$0xff]  ;;  %v3891_v2 = vld [vmem:[%s5099_s0] sm:$0xff] }
   0x2   :  { %3402 = vmatprep.subr.mxu0 %v32_v0  ;;  %v30_v3 = vld [vmem:[%s5100_s1 + $0x8] sm:$0xff]  ;;  %3410 = vmatprep.mubr.msk.f32.mxu0 %vm38_vm0, %v3891_v2 }
   0x3   :  { %3403 = vmatpush3.msra.mxu0 %v32_v0 }
   0x4   :  { %9 = vsyncpa [#allocation5], 0  ;;  %3404 = vmatprep.subr.mxu0 %v31_v1  ;;  %v29_v4 = vld [vmem:[%s5100_s1] sm:$0xff]  ;;  %v3904_v5 = vld [vmem:[%s5099_s0 + $0x8] sm:$0xff]  ;;  %vm128_vm1 = vcmask 64512   ;;  %s3824_s29 = smov 88  }
   0x5   :  { %3405 = vmatpush3.msra.mxu0 %v31_v1  ;;  %v3165_v6 = vld [vmem:[%s5100_s1 + $0x90] ss:$0 sm:$0xff]  ;;  %s3825_s0 = smov 96   ;;  %s3826_s30 = smov 120   ;;  %v3938_v18 = vld [vmem:[%s5100_s1 + $0x88] sm:$0xff]  ;;  %vm216_vm2 = vcmask 130048  }
   0x6   :  { %3406 = vmatprep.subr.mxu0 %v30_v3  ;;  %v3943_v21 = vld [vmem:[%s5100_s1 + $0x80] sm:$0xff]  ;;  %s3827_s9 = smov 64   ;;  %s3828_s10 = smov 56   ;;  %vm966_vm3 = vcmask 195584  }
   0x7   :  { %3407 = vmatpush3.msra.mxu0 %v30_v3  ;;  %s3829_s11 = smov 80   ;;  %s3830_s12 = smov 112  }
   0x8   :  { %3408 = vmatprep.subr.mxu0 %v29_v4  ;;  %s3831_s13 = smov 48   ;;  %s3832_s14 = smov 72  }
   0x9   :  { %3409 = vmatpush3.msra.mxu0 %v29_v4  ;;  %s3833_s15 = smov 104   ;;  %s3834_s16 = smov 40  }
   0xa   :  { %3411 = vmatmul.mubr.msk.f32.vlgmr.msra.gmra.mxu0 %vm38_vm0, %v3904_v5  ;;  %s3835_s17 = smov 8   ;;  %s3836_s18 = smov 16  }
   0xb   :  { %s3837_s27 = smov 24   ;;  %s3852_s22 = smov 127  }
   0xc   :  { %s3853_s23 = smov [#allocation2]  }
   0xd   :  { %s23_s24 = sshll.u32 %s3853_s23, 4  ;;  %s24_s24 = int_to_ptr.vmem [resolvable:$true] %s23_s24 }
   0xe   :  { %s3788_s25 = scalar_lea.vmem %s24_s24, 8192  ;;  %p3793_p1 = scmp.lt.s32.totalorder %s24_s24, %s24_s24 }
   0xf   :  { %p3789_p0 = scmp.ne.s32.totalorder %s24_s24, %s3788_s25  ;;  %p3794_p2 = scmp.lt.s32.totalorder %s3788_s25, %s3788_s25 }
  0x11   :  { %p3795_p3 = por %p3794_p2, %p3793_p1 }
  0x13   :  { %p3796_p4 = pnand %p3795_p3, %p3789_p0 }
  0xca   :  { %v3412_v7 = vpop.f32.mrf.mxu0 }
  0xcb   :  { %v3911_v8 = vadd.f32 %v3412_v7, %v3165_v6 }
  0xcc   :  { %v111_v9 = vpop.f32.mrf.mxu0 }
  0xcd   :  { %v3913_v10 = vadd.f32 %v3165_v6, %v111_v9  ;;  %332 = vrot.lane.b32.xlu1 %v3911_v8, %s3824_s29  ;;  %126 = vrot.lane.b32.xlu0 %v3911_v8, %s3825_s0 }
  0xcf   :  { %3417 = vmatprep.mubr.msk.f32.mxu1 %vm128_vm1, %v3913_v10 }
  0xd1   :  { %330 = vrot.lane.b32.xlu1 %v3913_v10, %s3824_s29  ;;  %124 = vrot.lane.b32.xlu0 %v3913_v10, %s3825_s0 }
  0xd5   :  { %328 = vrot.lane.b32.xlu1 %v3911_v8, %s3826_s30  ;;  %326 = vrot.lane.b32.xlu0 %v3913_v10, %s3826_s30 }
 0x13f   :  { %v127_v11 = vpop.permute.xlu0 %126  ;;  %v333_v12 = vpop.permute.xlu1 %332 }
 0x140   :  { %3413 = vmatprep.subr.msk.mxu1 %vm128_vm1, %v127_v11 }
 0x141   :  { %3414 = vmatpush3.xpose.msk.msra.mxu1 %vm128_vm1, %v127_v11 }
 0x143   :  { %v125_v13 = vpop.permute.xlu0 %124  ;;  %v331_v15 = vpop.permute.xlu1 %330 }
 0x144   :  { %3415 = vmatprep.subr.msk.mxu1 %vm128_vm1, %v125_v13 }
 0x145   :  { %3416 = vmatpush3.xpose.msk.msra.mxu1 %vm128_vm1, %v125_v13 }
 0x146   :  { %3427 = vmatprep.subr.msk.mxu1 %vm128_vm1, %v333_v12 }
 0x147   :  { %v327_v14 = vpop.permute.xlu0 %326  ;;  %v329_v16 = vpop.permute.xlu1 %328 }
 0x148   :  { %3418 = vmatmul.mubr.msk.f32.vlgmr.msra.gmra.mxu1 %vm128_vm1, %v3911_v8 }
 0x149   :  { %3428 = vmatpush3.xpose.msk.msra.mxu1 %vm128_vm1, %v333_v12  ;;  %3431 = vmatprep.mubr.msk.f32.mxu1 %vm128_vm1, %v327_v14 }
 0x14a   :  { %3429 = vmatprep.subr.msk.mxu1 %vm128_vm1, %v331_v15 }
 0x14d   :  { %3430 = vmatpush3.xpose.msk.msra.mxu1 %vm128_vm1, %v331_v15 }
 0x150   :  { %3432 = vmatmul.mubr.msk.f32.vlgmr.msra.gmra.mxu1 %vm128_vm1, %v329_v16 }
 0x208   :  { %v3419_v17 = vpop.f32.mrf.mxu1 }
 0x209   :  { %v213_v19 = vmul.f32 0.35355338, %v3419_v17 }
 0x20a   :  { %v203_v20 = vpop.f32.mrf.mxu1 }
 0x20b   :  { %v212_v22 = vmul.f32 0.35355338, %v203_v20  ;;  %v215_v23 = vadd.f32 %v213_v19, %v3938_v18 }
 0x20d   :  { %v220_v24 = vsel %vm216_vm2, %v215_v23, -inf  ;;  %v214_v25 = vadd.f32 %v212_v22, %v3943_v21 }
 0x20e   :  { %221 = vmax.xlane.f32.xlu1 %v220_v24 }
 0x20f   :  { %v217_v26 = vsel %vm216_vm2, %v214_v25, -inf }
 0x210   :  { %v3433_v27 = vpop.f32.mrf.mxu1  ;;  %218 = vmax.xlane.f32.xlu0 %v217_v26 }
 0x211   :  { %v418_v29 = vmul.f32 0.35355338, %v3433_v27 }
 0x212   :  { %v408_v28 = vpop.f32.mrf.mxu1 }
 0x213   :  { %v417_v30 = vmul.f32 0.35355338, %v408_v28  ;;  %v420_v33 = vadd.f32 %v418_v29, %v3938_v18 }
 0x215   :  { %v419_v31 = vadd.f32 %v417_v30, %v3943_v21  ;;  %v424_v34 = vsel %vm216_vm2, %v420_v33, -inf }
 0x217   :  { %v421_v32 = vsel %vm216_vm2, %v419_v31, -inf }
 0x218   :  { %422 = vmax.xlane.f32.xlu0 %v421_v32 }
 0x21c   :  { %425 = vmax.xlane.f32.xlu0 %v424_v34 }
 0x21f   :  { %241 = vrot.lane.b32.xlu1 %v3911_v8, %s3827_s9 }
 0x223   :  { %445 = vrot.lane.b32.xlu1 %v3911_v8, %s3828_s10 }
 0x227   :  { %443 = vrot.lane.b32.xlu1 %v3913_v10, %s3828_s10 }
 0x232   :  { %239 = vrot.lane.b32.xlu0 %v3913_v10, %s3827_s9 }
 0x297   :  { %v222_v35 = vpop.xlane.xlu1 %221 }
 0x298   :  { %v224_v36 = vsub.f32 %v215_v23, %v222_v35 }
 0x299   :  { %v219_v37 = vpop.xlane.xlu0 %218 }
 0x29a   :  { %v227_v38 = vmul.f32 1.442695, %v224_v36  ;;  %v223_v39 = vsub.f32 %v214_v25, %v219_v37 }
 0x29b   :  { %v242_v40 = vpop.permute.xlu1 %241 }
 0x29c   :  { %3624 = vpow2.f32 %v227_v38  ;;  %v225_v41 = vmul.f32 1.442695, %v223_v39  ;;  %3420 = vmatprep.subr.mxu0 %v242_v40 }
 0x29d   :  { %3421 = vmatpush3.msra.mxu0 %v242_v40 }
 0x29e   :  { %3626 = vpow2.f32 %v225_v41 }
 0x29f   :  { %v446_v50 = vpop.permute.xlu1 %445 }
 0x2a1   :  { %v423_v42 = vpop.xlane.xlu0 %422 }
 0x2a2   :  { %v427_v54 = vsub.f32 %v419_v31, %v423_v42 }
 0x2a3   :  { %v444_v58 = vpop.permute.xlu1 %443 }
 0x2a4   :  { %v429_v55 = vmul.f32 1.442695, %v427_v54 }
 0x2a5   :  { %v426_v43 = vpop.xlane.xlu0 %425 }
 0x2a6   :  { %v428_v44 = vsub.f32 %v420_v33, %v426_v43 }
 0x2a8   :  { %v431_v45 = vmul.f32 1.442695, %v428_v44 }
 0x2a9   :  { %v3625_v46 = vpop.eup %3624  ;;  %v240_v47 = vpop.permute.xlu0 %239 }
 0x2aa   :  { %3628 = vpow2.f32 %v431_v45  ;;  %3422 = vmatprep.subr.mxu0 %v240_v47  ;;  %v232_v48 = vsel %vm216_vm2, %v3625_v46, 0.0 }
 0x2ab   :  { %v3627_v49 = vpop.eup %3626  ;;  %233 = vadd.xlane.f32.xlu0 %v232_v48  ;;  %3423 = vmatpush3.msra.mxu0 %v240_v47  ;;  %3630 = vpow2.f32 %v429_v55 }
 0x2ac   :  { %3434 = vmatprep.subr.mxu0 %v446_v50  ;;  %v229_v51 = vsel %vm216_vm2, %v3627_v49, 0.0 }
 0x2ad   :  { %230 = vadd.xlane.f32.xlu1 %v229_v51 }
 0x2b7   :  { %v3629_v52 = vpop.eup %3628 }
 0x2b8   :  { %v436_v53 = vsel %vm216_vm2, %v3629_v52, 0.0  ;;  %v3631_v56 = vpop.eup %3630 }
 0x2b9   :  { %437 = vadd.xlane.f32.xlu0 %v436_v53  ;;  %v433_v57 = vsel %vm216_vm2, %v3631_v56, 0.0 }
 0x2be   :  { %534 = vrot.lane.b32.xlu1 %v3913_v10, %s3829_s11 }
 0x2cf   :  { %536 = vrot.lane.b32.xlu0 %v3911_v8, %s3829_s11 }
 0x2d3   :  { %530 = vrot.lane.b32.xlu0 %v3913_v10, %s3830_s12 }
 0x2e2   :  { %434 = vadd.xlane.f32.xlu1 %v433_v57 }
 0x2f3   :  { %532 = vrot.lane.b32.xlu1 %v3911_v8, %s3830_s12 }
 0x334   :  { %v234_v59 = vpop.xlane.xlu0 %233 }
 0x335   :  { %3632 = vrcp.f32 %v234_v59 }
 0x336   :  { %v231_v60 = vpop.xlane.xlu1 %230 }
 0x337   :  { %3634 = vrcp.f32 %v231_v60 }
 0x33a   :  { %v535_v4 = vpop.permute.xlu1 %534 }
 0x342   :  { %v3633_v61 = vpop.eup %3632  ;;  %v438_v63 = vpop.xlane.xlu0 %437 }
 0x343   :  { %v238_v1 = vmul.f32 %v3633_v61, %v3625_v46  ;;  %3636 = vrcp.f32 %v438_v63 }
 0x344   :  { %v3635_v62 = vpop.eup %3634 }
 0x345   :  { %v237_v0 = vmul.f32 %v3635_v62, %v3627_v49 }
 0x346   :  { %v537_v3 = vpop.permute.xlu0 %536 }
 0x347   :  { %3424 = vmatprep.mubr.msk.f32.mxu0 %vm216_vm2, %v237_v0 }
 0x348   :  { %3425 = vmatmul.mubr.msk.f32.vlgmr.msra.gmra.mxu0 %vm216_vm2, %v238_v1 }
 0x349   :  { %3435 = vmatpush3.msra.mxu0 %v446_v50 }
 0x34a   :  { %3436 = vmatprep.subr.mxu0 %v444_v58  ;;  %v531_v13 = vpop.permute.xlu0 %530 }
 0x34b   :  { %3437 = vmatpush3.msra.mxu0 %v444_v58 }
 0x34c   :  { %3441 = vmatprep.subr.msk.mxu0 %vm128_vm1, %v537_v3 }
 0x350   :  { %v3637_v7 = vpop.eup %3636 }
 0x351   :  { %v442_v12 = vmul.f32 %v3637_v7, %v3629_v52 }
 0x36b   :  { %v435_v6 = vpop.xlane.xlu1 %434 }
 0x36c   :  { %3638 = vrcp.f32 %v435_v6 }
 0x36f   :  { %v533_v14 = vpop.permute.xlu1 %532 }
 0x379   :  { %v3639_v9 = vpop.eup %3638 }
 0x37a   :  { %v441_v11 = vmul.f32 %v3639_v9, %v3631_v56 }
 0x37c   :  { %3438 = vmatprep.mubr.msk.f32.mxu0 %vm216_vm2, %v441_v11 }
 0x37d   :  { %3439 = vmatmul.mubr.msk.f32.vlgmr.msra.gmra.mxu0 %vm216_vm2, %v442_v12 }
 0x37e   :  { %3442 = vmatpush3.xpose.msk.msra.mxu0 %vm128_vm1, %v537_v3  ;;  %3445 = vmatprep.mubr.msk.f32.mxu0 %vm128_vm1, %v531_v13 }
 0x37f   :  { %3443 = vmatprep.subr.msk.mxu0 %vm128_vm1, %v535_v4 }
 0x382   :  { %3444 = vmatpush3.xpose.msk.msra.mxu0 %vm128_vm1, %v535_v4 }
 0x385   :  { %3446 = vmatmul.mubr.msk.f32.vlgmr.msra.gmra.mxu0 %vm128_vm1, %v533_v14 }
 0x408   :  { %v3975_v15 = vpop.f32.mrf.mxu0 }
 0x40a   :  { %v3977_v16 = vpop.f32.mrf.mxu0 }
 0x43d   :  { %v3979_v17 = vpop.f32.mrf.mxu0 }
 0x43f   :  { %v3981_v19 = vpop.f32.mrf.mxu0 }
 0x445   :  { %v3447_v20 = vpop.f32.mrf.mxu0 }
 0x446   :  { %v622_v22 = vmul.f32 0.35355338, %v3447_v20  ;;  %v970_v20 = vld [vmem:[%s5100_s1 + $0x28] sm:$0xff] }
 0x447   :  { %v612_v23 = vpop.f32.mrf.mxu0 }
 0x448   :  { %v621_v24 = vmul.f32 0.35355338, %v612_v23  ;;  %v624_v25 = vadd.f32 %v622_v22, %v3938_v18  ;;  %v969_v22 = vld [vmem:[%s5100_s1 + $0x20] sm:$0xff] }
 0x44a   :  { %v628_v26 = vsel %vm216_vm2, %v624_v25, -inf  ;;  %v623_v27 = vadd.f32 %v621_v24, %v3943_v21 }
 0x44b   :  { %629 = vmax.xlane.f32.xlu1 %v628_v26 }
 0x44c   :  { %v625_v28 = vsel %vm216_vm2, %v623_v27, -inf }
 0x44d   :  { %626 = vmax.xlane.f32.xlu0 %v625_v28 }
 0x45c   :  { %649 = vrot.lane.b32.xlu1 %v3911_v8, %s3831_s13 }
 0x460   :  { %740 = vrot.lane.b32.xlu1 %v3911_v8, %s3832_s14 }
 0x464   :  { %738 = vrot.lane.b32.xlu1 %v3913_v10, %s3832_s14 }
 0x468   :  { %736 = vrot.lane.b32.xlu1 %v3911_v8, %s3833_s15 }
 0x4d4   :  { %v630_v29 = vpop.xlane.xlu1 %629 }
 0x4d5   :  { %v632_v30 = vsub.f32 %v624_v25, %v630_v29 }
 0x4d6   :  { %v627_v31 = vpop.xlane.xlu0 %626 }
 0x4d7   :  { %v635_v32 = vmul.f32 1.442695, %v632_v30  ;;  %v631_v33 = vsub.f32 %v623_v27, %v627_v31 }
 0x4d8   :  { %v650_v34 = vpop.permute.xlu1 %649 }
 0x4d9   :  { %3640 = vpow2.f32 %v635_v32  ;;  %v633_v35 = vmul.f32 1.442695, %v631_v33  ;;  %3448 = vmatprep.subr.mxu1 %v650_v34 }
 0x4da   :  { %3449 = vmatpush3.msra.mxu1 %v650_v34 }
 0x4db   :  { %3642 = vpow2.f32 %v633_v35 }
 0x4dc   :  { %v741_v43 = vpop.permute.xlu1 %740 }
 0x4e0   :  { %v739_v49 = vpop.permute.xlu1 %738 }
 0x4e4   :  { %v737_v50 = vpop.permute.xlu1 %736 }
 0x4e6   :  { %v3641_v36 = vpop.eup %3640 }
 0x4e7   :  { %v640_v37 = vsel %vm216_vm2, %v3641_v36, 0.0 }
 0x4e8   :  { %v3643_v38 = vpop.eup %3642  ;;  %641 = vadd.xlane.f32.xlu0 %v640_v37 }
 0x4e9   :  { %v637_v39 = vsel %vm216_vm2, %v3643_v38, 0.0 }
 0x4ec   :  { %638 = vadd.xlane.f32.xlu0 %v637_v39 }
 0x502   :  { %647 = vrot.lane.b32.xlu0 %v3913_v10, %s3831_s13 }
 0x506   :  { %734 = vrot.lane.b32.xlu0 %v3913_v10, %s3833_s15 }
 0x571   :  { %v642_v40 = vpop.xlane.xlu0 %641 }
 0x572   :  { %3644 = vrcp.f32 %v642_v40 }
 0x575   :  { %v639_v41 = vpop.xlane.xlu0 %638 }
 0x576   :  { %3646 = vrcp.f32 %v639_v41 }
 0x579   :  { %v648_v42 = vpop.permute.xlu0 %647 }
 0x57a   :  { %3450 = vmatprep.subr.mxu1 %v648_v42 }
 0x57b   :  { %3451 = vmatpush3.msra.mxu1 %v648_v42 }
 0x57c   :  { %3455 = vmatprep.subr.msk.mxu1 %vm128_vm1, %v741_v43 }
 0x57d   :  { %v735_v48 = vpop.permute.xlu0 %734 }
 0x57f   :  { %v3645_v44 = vpop.eup %3644 }
 0x580   :  { %v646_v47 = vmul.f32 %v3645_v44, %v3641_v36 }
 0x583   :  { %v3647_v45 = vpop.eup %3646 }
 0x584   :  { %v645_v46 = vmul.f32 %v3647_v45, %v3643_v38 }
 0x586   :  { %3452 = vmatprep.mubr.msk.f32.mxu1 %vm216_vm2, %v645_v46 }
 0x587   :  { %3453 = vmatmul.mubr.msk.f32.vlgmr.msra.gmra.mxu1 %vm216_vm2, %v646_v47 }
 0x588   :  { %3456 = vmatpush3.xpose.msk.msra.mxu1 %vm128_vm1, %v741_v43  ;;  %3459 = vmatprep.mubr.msk.f32.mxu1 %vm128_vm1, %v735_v48 }
 0x589   :  { %3457 = vmatprep.subr.msk.mxu1 %vm128_vm1, %v739_v49 }
 0x58c   :  { %3458 = vmatpush3.xpose.msk.msra.mxu1 %vm128_vm1, %v739_v49 }
 0x58f   :  { %3460 = vmatmul.mubr.msk.f32.vlgmr.msra.gmra.mxu1 %vm128_vm1, %v737_v50 }
 0x647   :  { %v3454_v51 = vpop.f32.mrf.mxu1 }
 0x649   :  { %v725_v52 = vpop.f32.mrf.mxu1 }
 0x64f   :  { %v3461_v53 = vpop.f32.mrf.mxu1 }
 0x650   :  { %v826_v54 = vmul.f32 0.35355338, %v3461_v53 }
 0x651   :  { %v816_v55 = vpop.f32.mrf.mxu1 }
 0x652   :  { %v825_v56 = vmul.f32 0.35355338, %v816_v55  ;;  %v828_v57 = vadd.f32 %v826_v54, %v3938_v18 }
 0x654   :  { %v832_v58 = vsel %vm216_vm2, %v828_v57, -inf  ;;  %v827_v59 = vadd.f32 %v825_v56, %v3943_v21 }
 0x655   :  { %833 = vmax.xlane.f32.xlu1 %v832_v58 }
 0x656   :  { %v829_v60 = vsel %vm216_vm2, %v827_v59, -inf }
 0x657   :  { %830 = vmax.xlane.f32.xlu0 %v829_v60 }
 0x666   :  { %853 = vrot.lane.b32.xlu1 %v3911_v8, %s3834_s16 }
 0x66a   :  { %940 = vrot.lane.b32.xlu1 %v3981_v19, %s3835_s17  ;;  %v971_v19 = vld [vmem:[%s5100_s1 + $0x30] sm:$0xff] }
 0x66e   :  { %942 = vrot.lane.b32.xlu1 %v3979_v17, %s3835_s17 }
 0x672   :  { %950 = vrot.lane.b32.xlu1 %v3454_v51, %s3836_s18 }
 0x6de   :  { %v834_v18 = vpop.xlane.xlu1 %833 }
 0x6df   :  { %v836_v61 = vsub.f32 %v828_v57, %v834_v18  ;;  %v3196_v18 = vld [vmem:[%s5100_s1 + $0x93] ss:$0 sm:$0xff] }
 0x6e0   :  { %v831_v62 = vpop.xlane.xlu0 %830 }
 0x6e1   :  { %v839_v21 = vmul.f32 1.442695, %v836_v61  ;;  %v835_v63 = vsub.f32 %v827_v59, %v831_v62  ;;  %v3195_v59 = vld [vmem:[%s5100_s1 + $0x92] ss:$0 sm:$0xff] }
 0x6e2   :  { %v854_v0 = vpop.permute.xlu1 %853 }
 0x6e3   :  { %3648 = vpow2.f32 %v839_v21  ;;  %v837_v1 = vmul.f32 1.442695, %v835_v63  ;;  %3462 = vmatprep.subr.mxu0 %v854_v0 }
 0x6e4   :  { %3463 = vmatpush3.msra.mxu0 %v854_v0 }
 0x6e5   :  { %3650 = vpow2.f32 %v837_v1 }
 0x6e6   :  { %v941_v25 = vpop.permute.xlu1 %940 }
 0x6e7   :  { %v962_v29 = vsel %vm128_vm1, %v3977_v16, %v941_v25  ;;  %v3192_v16 = vld [vmem:[%s5100_s1 + $0x91] ss:$0 sm:$0xff] }
 0x6ea   :  { %v943_v26 = vpop.permute.xlu1 %942 }
 0x6eb   :  { %v963_v31 = vsel %vm128_vm1, %v3975_v15, %v943_v26 }
 0x6ee   :  { %v951_v27 = vpop.permute.xlu1 %950 }
 0x6ef   :  { %v965_v34 = vsel %vm216_vm2, %v963_v31, %v951_v27  ;;  %v3197_v31 = vld [vmem:[%s5100_s1 + $0x94] ss:$0 sm:$0xff] }
 0x6f0   :  { %v3649_v8 = vpop.eup %3648 }
 0x6f1   :  { %v844_v3 = vsel %vm216_vm2, %v3649_v8, 0.0 }
 0x6f2   :  { %v3651_v4 = vpop.eup %3650  ;;  %845 = vadd.xlane.f32.xlu0 %v844_v3 }
 0x6f3   :  { %v841_v6 = vsel %vm216_vm2, %v3651_v4, 0.0 }
 0x6f6   :  { %842 = vadd.xlane.f32.xlu0 %v841_v6 }
 0x70c   :  { %851 = vrot.lane.b32.xlu0 %v3913_v10, %s3834_s16  ;;  %v972_v10 = vld [vmem:[%s5100_s1 + $0x38] sm:$0xff] }
 0x710   :  { %948 = vrot.lane.b32.xlu0 %v725_v52, %s3836_s18 }
 0x77b   :  { %v846_v7 = vpop.xlane.xlu0 %845 }
 0x77c   :  { %3652 = vrcp.f32 %v846_v7 }
 0x77f   :  { %v843_v9 = vpop.xlane.xlu0 %842 }
 0x780   :  { %3654 = vrcp.f32 %v843_v9 }
 0x783   :  { %v852_v11 = vpop.permute.xlu0 %851 }
 0x784   :  { %3464 = vmatprep.subr.mxu0 %v852_v11 }
 0x785   :  { %3465 = vmatpush3.msra.mxu0 %v852_v11 }
 0x786   :  { %3469 = vmatprep.subr.mxu0 %v972_v10 }
 0x787   :  { %v949_v28 = vpop.permute.xlu0 %948 }
 0x788   :  { %v964_v32 = vsel %vm216_vm2, %v962_v29, %v949_v28 }
 0x789   :  { %v3653_v12 = vpop.eup %3652 }
 0x78a   :  { %v850_v17 = vmul.f32 %v3653_v12, %v3649_v8 }
 0x78d   :  { %v3655_v13 = vpop.eup %3654 }
 0x78e   :  { %v849_v14 = vmul.f32 %v3655_v13, %v3651_v4 }
 0x790   :  { %3466 = vmatprep.mubr.msk.f32.mxu0 %vm216_vm2, %v849_v14 }
 0x791   :  { %3467 = vmatmul.mubr.msk.f32.vlgmr.msra.gmra.mxu0 %vm216_vm2, %v850_v17 }
 0x792   :  { %3470 = vmatpush3.msra.mxu0 %v972_v10 }
 0x793   :  { %3471 = vmatprep.subr.mxu0 %v971_v19 }
 0x794   :  { %3472 = vmatpush3.msra.mxu0 %v971_v19  ;;  %v1145_v19 = vld [vmem:[%s5100_s1 + $0x58] sm:$0xff] }
 0x795   :  { %3473 = vmatprep.subr.mxu0 %v970_v20  ;;  %3480 = vmatprep.subr.mxu1 %v1145_v19 }
 0x796   :  { %3474 = vmatpush3.msra.mxu0 %v970_v20  ;;  %v1144_v20 = vld [vmem:[%s5100_s1 + $0x50] sm:$0xff]  ;;  %3481 = vmatpush3.msra.mxu1 %v1145_v19 }
 0x797   :  { %3475 = vmatprep.subr.mxu0 %v969_v22  ;;  %3482 = vmatprep.subr.mxu1 %v1144_v20 }
 0x798   :  { %3476 = vmatpush3.msra.mxu0 %v969_v22  ;;  %v1143_v22 = vld [vmem:[%s5100_s1 + $0x48] sm:$0xff]  ;;  %3483 = vmatpush3.msra.mxu1 %v1144_v20  ;;  %v3845_v20 = vmov 1326507024  }
 0x799   :  { %3484 = vmatprep.subr.mxu1 %v1143_v22 }
 0x79a   :  { %3485 = vmatpush3.msra.mxu1 %v1143_v22 }
 0x851   :  { %v3468_v23 = vpop.f32.mrf.mxu0 }
 0x852   :  { %958 = vrot.lane.b32.xlu1 %v3468_v23, %s3837_s27  ;;  %v1142_v23 = vld [vmem:[%s5100_s1 + $0x40] sm:$0xff] }
 0x853   :  { %v929_v24 = vpop.f32.mrf.mxu0  ;;  %3486 = vmatprep.subr.mxu1 %v1142_v23 }
 0x854   :  { %956 = vrot.lane.b32.xlu0 %v929_v24, %s3837_s27  ;;  %3487 = vmatpush3.msra.mxu1 %v1142_v23 }
 0x8c4   :  { %v959_v30 = vpop.permute.xlu1 %958 }
 0x8c5   :  { %v968_v36 = vsel %vm966_vm3, %v965_v34, %v959_v30 }
 0x8c6   :  { %v957_v33 = vpop.permute.xlu0 %956 }
 0x8c7   :  { %v967_v35 = vsel %vm966_vm3, %v964_v32, %v957_v33  ;;  %v3198_v33 = vld [vmem:[%s5100_s1 + $0x95] ss:$0 sm:$0xff] }
 0x8c8   :  { %3477 = vmatprep.mubr.msk.f32.mxu0 %vm38_vm0, %v967_v35 }
 0x8c9   :  { %3478 = vmatmul.mubr.msk.f32.vlgmr.msra.gmra.mxu0 %vm38_vm0, %v968_v36 }
 0x989   :  { %v3479_v37 = vpop.f32.mrf.mxu0 }
 0x98a   :  { %v1056_v38 = vadd.f32 %v3479_v37, %v3192_v16 }
 0x98b   :  { %v1050_v39 = vpop.f32.mrf.mxu0 }
 0x98c   :  { %v1051_v40 = vadd.f32 %v3192_v16, %v1050_v39  ;;  %v1060_v15 = vadd.f32 %v1056_v38, %v3904_v5  ;;  %v5113_v39 = vmov 4  }
 0x98d   :  { %3582 = vset.pattern.permute.xlu0 %v5113_v39 }
 0x98e   :  { %v1066_v41 = vsel %vm38_vm0, %v1060_v15, 0.0  ;;  %v1059_v42 = vadd.f32 %v1051_v40, %v3891_v2  ;;  %v3839_v40 = vmov 0  }
 0x98f   :  { %1067 = vadd.xlane.f32.xlu1 %v1066_v41 }
 0x990   :  { %v1063_v43 = vsel %vm38_vm0, %v1059_v42, 0.0  ;;  %3578 = vset.pattern.permute.xlu1 %v3839_v40 }
 0x991   :  { %1064 = vadd.xlane.f32.xlu0 %v1063_v43 }
 0xa18   :  { %v1068_v44 = vpop.xlane.xlu1 %1067 }
 0xa19   :  { %v1071_v45 = vmul.f32 0.03125, %v1068_v44 }
 0xa1a   :  { %v1065_v46 = vpop.xlane.xlu0 %1064 }
 0xa1b   :  { %v1070_v47 = vmul.f32 0.03125, %v1065_v46  ;;  %v1073_v48 = vsub.f32 %v1060_v15, %v1071_v45  ;;  %v3199_v15 = vld [vmem:[%s5100_s1 + $0x96] ss:$0 sm:$0xff] }
 0xa1d   :  { %v1072_v49 = vsub.f32 %v1059_v42, %v1070_v47  ;;  %v1075_v52 = vmul.f32 %v1073_v48, %v1073_v48 }
 0xa1f   :  { %v1074_v50 = vmul.f32 %v1072_v49, %v1072_v49  ;;  %v1079_v5 = vsel %vm38_vm0, %v1075_v52, 0.0 }
 0xa21   :  { %v1076_v51 = vsel %vm38_vm0, %v1074_v50, 0.0 }
 0xa22   :  { %1077 = vadd.xlane.f32.xlu0 %v1076_v51 }
 0xa26   :  { %1080 = vadd.xlane.f32.xlu0 %v1079_v5 }
 0xaab   :  { %v1078_v53 = vpop.xlane.xlu0 %1077 }
 0xaac   :  { %v1082_v2 = vmul.f32 0.03125, %v1078_v53 }
 0xaae   :  { %v1084_v54 = vadd.f32 1e-05, %v1082_v2 }
 0xaaf   :  { %v1081_v55 = vpop.xlane.xlu0 %1080 }
 0xab0   :  { %3656 = vrsqrt.f32 %v1084_v54  ;;  %v1083_v56 = vmul.f32 0.03125, %v1081_v55 }
 0xab2   :  { %v1085_v57 = vadd.f32 1e-05, %v1083_v56 }
 0xab4   :  { %3658 = vrsqrt.f32 %v1085_v57 }
 0xabd   :  { %v3657_v58 = vpop.eup %3656 }
 0xabe   :  { %v1088_v60 = vmul.f32 %v3657_v58, %v1072_v49 }
 0xac0   :  { %v1094_v61 = vmul.f32 %v3195_v59, %v1088_v60 }
 0xac1   :  { %v3659_v62 = vpop.eup %3658 }
 0xac2   :  { %v4052_v21 = vadd.f32 %v3196_v18, %v1094_v61  ;;  %v1089_v63 = vmul.f32 %v3659_v62, %v1073_v48  ;;  %v3840_v62 = vmov 683565275  }
 0xac4   :  { %5127 = vst [vmem:[#allocation12_spill] sm:$0xff] %v4052_v21  ;;  %v1104_v0 = vsel %vm38_vm0, %v4052_v21, 0.0  ;;  %v1095_v1 = vmul.f32 %v3195_v59, %v1089_v63 }
 0xac5   :  { %1105 = vadd.xlane.f32.xlu1 %v1104_v0 }
 0xac6   :  { %v4056_v8 = vadd.f32 %v3196_v18, %v1095_v1  ;;  %v3841_v1 = vmov 2475754826  }
 0xac8   :  { %5128 = vst [vmem:[#allocation13_spill] sm:$0xff] %v4056_v8  ;;  %v1107_v3 = vsel %vm38_vm0, %v4056_v8, 0.0 }
 0xac9   :  { %1108 = vadd.xlane.f32.xlu0 %v1107_v3 }
 0xb4e   :  { %v1106_v4 = vpop.xlane.xlu1 %1105 }
 0xb4f   :  { %v1110_v6 = vmul.f32 0.03125, %v1106_v4  ;;  %v3842_v4 = vmov 2131351028  }
 0xb51   :  { %v1112_v7 = vsub.f32 %v4052_v21, %v1110_v6 }
 0xb52   :  { %v1109_v9 = vpop.xlane.xlu0 %1108 }
 0xb53   :  { %v1111_v11 = vmul.f32 0.03125, %v1109_v9  ;;  %v1114_v12 = vmul.f32 %v1112_v7, %v1112_v7 }
 0xb55   :  { %v1113_v13 = vsub.f32 %v4056_v8, %v1111_v11  ;;  %v1116_v14 = vsel %vm38_vm0, %v1114_v12, 0.0  ;;  %v3844_v11 = vmov 920167782  }
 0xb56   :  { %1117 = vadd.xlane.f32.xlu1 %v1116_v14 }
 0xb57   :  { %v1115_v17 = vmul.f32 %v1113_v13, %v1113_v13 }
 0xb59   :  { %v1119_v10 = vsel %vm38_vm0, %v1115_v17, 0.0 }
 0xb5a   :  { %1120 = vadd.xlane.f32.xlu0 %v1119_v10 }
 0xbdf   :  { %v1118_v24 = vpop.xlane.xlu1 %1117 }
 0xbe0   :  { %v1122_v25 = vmul.f32 0.03125, %v1118_v24 }
 0xbe2   :  { %v1124_v26 = vadd.f32 1e-05, %v1122_v25 }
 0xbe3   :  { %v1121_v27 = vpop.xlane.xlu0 %1120 }
 0xbe4   :  { %3660 = vrsqrt.f32 %v1124_v26  ;;  %v1123_v28 = vmul.f32 0.03125, %v1121_v27 }
 0xbe6   :  { %v1125_v29 = vadd.f32 1e-05, %v1123_v28 }
 0xbe8   :  { %3662 = vrsqrt.f32 %v1125_v29 }
 0xbf1   :  { %v3661_v30 = vpop.eup %3660 }
 0xbf2   :  { %v1128_v32 = vmul.f32 %v3661_v30, %v1112_v7  ;;  %v3843_v7 = vmov 2102212464  }
 0xbf4   :  { %v1134_v34 = vmul.f32 %v3197_v31, %v1128_v32 }
 0xbf5   :  { %v3663_v35 = vpop.eup %3662 }
 0xbf6   :  { %v1129_v36 = vmul.f32 %v3663_v35, %v1113_v13  ;;  %v1140_v16 = vadd.f32 %v3198_v33, %v1134_v34 }
 0xbf8   :  { %v1135_v37 = vmul.f32 %v3197_v31, %v1129_v36  ;;  %3488 = vmatprep.mubr.msk.f32.mxu1 %vm38_vm0, %v1140_v16 }
 0xbfa   :  { %v1141_v38 = vadd.f32 %v3198_v33, %v1135_v37 }
 0xbfc   :  { %3489 = vmatmul.mubr.msk.f32.vlgmr.msra.gmra.mxu1 %vm38_vm0, %v1141_v38 }
 0xcbc   :  { %v3490_v41 = vpop.f32.mrf.mxu1 }
 0xcbd   :  { %v1229_v42 = vadd.f32 %v3490_v41, %v3199_v15 }
 0xcbe   :  { %v1223_v43 = vpop.f32.mrf.mxu1 }
 0xcbf   :  { %v4089_v44 = vmul.f32 0.5, %v1229_v42  ;;  %v1224_v45 = vadd.f32 %v3199_v15, %v1223_v43 }
 0xcc1   :  { %v1337_v46 = vand.u32 2147483647, %v4089_v44  ;;  %v1340_v47 = vand.u32 2139095040, %v4089_v44  ;;  %v4093_v48 = vmul.f32 0.5, %v1224_v45  ;;  %vm1339_vm3 = vcmp.lt.s32.totalorder %v4089_v44, 0 }
 0xcc3   :  { %v1341_v49 = vshrl.u32 %v1340_v47, 23  ;;  %v1344_v50 = vand.u32 8388607, %v1337_v46  ;;  %v1237_v51 = vand.u32 2139095040, %v4093_v48  ;;  %v1234_v5 = vand.u32 2147483647, %v4093_v48 }
 0xcc5   :  { %v3206_v52 = vadd.s32 4294967169, %v1341_v49  ;;  %v1238_v53 = vshrl.u32 %v1237_v51, 23  ;;  %v1345_v54 = vor.u32 8388608, %v1344_v50  ;;  %v1241_v56 = vand.u32 8388607, %v1234_v5 }
 0xcc7   :  { %v1347_v2 = vadd.s32 1, %v3206_v52  ;;  %v3202_v55 = vadd.s32 4294967169, %v1238_v53  ;;  %v4101_v18 = vshll.u32 %v1345_v54, 8  ;;  %v1242_v0 = vor.u32 8388608, %v1241_v56 }
 0xcc9   :  { %vm1348_vm4 = vcmp.gt.s32.totalorder %v1347_v2, 0  ;;  %v1244_v58 = vadd.s32 1, %v3202_v55  ;;  %v1282_v15 = vshll.u32 %v1242_v0, 8 }
 0xcca   :  { %v1349_v57 = vsel %vm1348_vm4, %v1347_v2, 0  ;;  %vm1338_vm4 = vcmp.le.f32.partialorder %v1337_v46, 0.7853982 }
 0xccb   :  { %v1350_v59 = vshrl.u32 %v1349_v57, 5  ;;  %v1351_v60 = vand.u32 31, %v1349_v57  ;;  %vm1245_vm5 = vcmp.gt.s32.totalorder %v1244_v58, 0 }
 0xccc   :  { %v1246_v26 = vsel %vm1245_vm5, %v1244_v58, 0  ;;  %vm1236_vm5 = vcmp.lt.s32.totalorder %v4093_v48, 0 }
 0xccd   :  { %v1352_v61 = vsub.s32 32, %v1351_v60  ;;  %v1354_v63 = vshll.u32 %v3840_v62, %v1351_v60  ;;  %v1357_v3 = vshll.u32 %v3841_v1, %v1351_v60  ;;  %v1360_v6 = vshll.u32 %v3842_v4, %v1351_v60 }
 0xcce   :  { %v1363_v9 = vshll.u32 %v3843_v7, %v1351_v60  ;;  %v1366_v12 = vshll.u32 %v3844_v11, %v1351_v60  ;;  %vm1369_vm6 = vcmp.lt.s32.totalorder %v1350_v59, 1  ;;  %vm1371_vm7 = vcmp.lt.s32.totalorder %v1350_v59, 3 }
 0xccf   :  { %v1355_v13 = vshrl.u32 %v3841_v1, %v1352_v61  ;;  %v1358_v14 = vshrl.u32 %v3842_v4, %v1352_v61  ;;  %v1361_v17 = vshrl.u32 %v3843_v7, %v1352_v61  ;;  %v1353_v10 = vshrl.u32 %v3840_v62, %v1352_v61 }
 0xcd0   :  { %v1364_v19 = vshrl.u32 %v3844_v11, %v1352_v61  ;;  %v1367_v22 = vshrl.u32 %v3845_v20, %v1352_v61  ;;  %vm1372_vm8 = vcmp.lt.s32.totalorder %v1350_v59, 4  ;;  %v1248_v29 = vand.u32 31, %v1246_v26 }
 0xcd1   :  { %v1356_v23 = vor.u32 %v1355_v13, %v1354_v63  ;;  %v1359_v24 = vor.u32 %v1358_v14, %v1357_v3  ;;  %v1362_v25 = vor.u32 %v1361_v17, %v1360_v6  ;;  %vm1370_vm9 = vcmp.lt.s32.totalorder %v1350_v59, 2 }
 0xcd2   :  { %v1365_v27 = vor.u32 %v1364_v19, %v1363_v9  ;;  %v1368_v28 = vor.u32 %v1367_v22, %v1366_v12  ;;  %v1249_v16 = vsub.s32 32, %v1248_v29  ;;  %v1247_v45 = vshrl.u32 %v1246_v26, 5 }
 0xcd3   :  { %v1373_v30 = vsel %vm1369_vm6, %v1353_v10, %v1356_v23  ;;  %v1374_v31 = vsel %vm1372_vm8, %v1362_v25, 2102212464  ;;  %v1377_v32 = vsel %vm1369_vm6, %v1356_v23, %v1359_v24  ;;  %v1381_v33 = vsel %vm1369_vm6, %v1359_v24, %v1362_v25 }
 0xcd4   :  { %v1375_v34 = vsel %vm1371_vm7, %v1359_v24, %v1374_v31  ;;  %v1378_v35 = vsel %vm1372_vm8, %v1365_v27, 920167782  ;;  %v1382_v36 = vsel %vm1372_vm8, %v1368_v28, 1326507024  ;;  %v1251_v52 = vshll.u32 %v3840_v62, %v1248_v29 }
 0xcd5   :  { %v1379_v37 = vsel %vm1371_vm7, %v1362_v25, %v1378_v35  ;;  %v1383_v38 = vsel %vm1371_vm7, %v1365_v27, %v1382_v36  ;;  %v1376_v41 = vsel %vm1370_vm9, %v1373_v30, %v1375_v34  ;;  %v1252_v53 = vshrl.u32 %v3841_v1, %v1249_v16 }
 0xcd6   :  { %v1380_v42 = vsel %vm1370_vm9, %v1377_v32, %v1379_v37  ;;  %v1384_v43 = vsel %vm1370_vm9, %v1381_v33, %v1383_v38  ;;  %v1254_v2 = vshll.u32 %v3841_v1, %v1248_v29  ;;  %v1255_v54 = vshrl.u32 %v3842_v4, %v1249_v16 }
 0xcd7   :  { %v4113_v47 = vmul.u32.u64.low %v4101_v18, %v1384_v43  ;;  %v4114_v49 = vmul.u32.u64.high %v4101_v18, %v1384_v43, %v4113_v47  ;;  %v4117_v50 = vmul.u32.u64.low %v4101_v18, %v1380_v42  ;;  %v4118_v51 = vmul.u32.u64.high %v4101_v18, %v1380_v42, %v4117_v50 }
 0xcd8   :  { %v1257_v55 = vshll.u32 %v3842_v4, %v1248_v29  ;;  %v1258_v56 = vshrl.u32 %v3843_v7, %v1249_v16  ;;  %v1260_v57 = vshll.u32 %v3843_v7, %v1248_v29  ;;  %v1261_v58 = vshrl.u32 %v3844_v11, %v1249_v16 }
 0xcd9   :  { %v1253_v59 = vor.u32 %v1252_v53, %v1251_v52  ;;  %v1256_v60 = vor.u32 %v1255_v54, %v1254_v2  ;;  %v1263_v61 = vshll.u32 %v3844_v11, %v1248_v29  ;;  %v1264_v63 = vshrl.u32 %v3845_v20, %v1249_v16 }
 0xcda   :  { %v1392_v0 = vmul.u32 %v4101_v18, %v1376_v41  ;;  %vm1394_vm10 = vc.u32 %v4114_v49, %v4117_v50  ;;  %v1395_v3 = vadd.s32 1, %v4118_v51  ;;  %v1259_v6 = vor.u32 %v1258_v56, %v1257_v55 }
 0xcdb   :  { %v1250_v9 = vshrl.u32 %v3840_v62, %v1249_v16  ;;  %v1262_v1 = vor.u32 %v1261_v58, %v1260_v57  ;;  %v1265_v12 = vor.u32 %v1264_v63, %v1263_v61  ;;  %vm1266_vm11 = vcmp.lt.s32.totalorder %v1247_v45, 1 }
 0xcdc   :  { %v1396_v4 = vsel %vm1394_vm10, %v1395_v3, %v4118_v51  ;;  %vm1268_vm12 = vcmp.lt.s32.totalorder %v1247_v45, 3  ;;  %vm1269_vm13 = vcmp.lt.s32.totalorder %v1247_v45, 4  ;;  %v1274_v7 = vsel %vm1266_vm11, %v1253_v59, %v1256_v60 }
 0xcdd   :  { %v1397_v11 = vadd.s32 %v1396_v4, %v1392_v0  ;;  %v1271_v13 = vsel %vm1269_vm13, %v1259_v6, 2102212464  ;;  %v1275_v14 = vsel %vm1269_vm13, %v1262_v1, 920167782  ;;  %v1278_v18 = vsel %vm1266_vm11, %v1256_v60, %v1259_v6 }
 0xcde   :  { %vm1267_vm14 = vcmp.lt.s32.totalorder %v1247_v45, 2  ;;  %v1270_v17 = vsel %vm1266_vm11, %v1250_v9, %v1253_v59  ;;  %v1276_v10 = vsel %vm1268_vm12, %v1259_v6, %v1275_v14  ;;  %v1279_v19 = vsel %vm1269_vm13, %v1265_v12, 1326507024 }
 0xcdf   :  { %v1398_v20 = vadd.s32 536870912, %v1397_v11  ;;  %v1272_v22 = vsel %vm1268_vm12, %v1256_v60, %v1271_v13  ;;  %v1277_v23 = vsel %vm1267_vm14, %v1274_v7, %v1276_v10  ;;  %v1280_v62 = vsel %vm1268_vm12, %v1262_v1, %v1279_v19 }
 0xce0   :  { %v1281_v24 = vsel %vm1267_vm14, %v1278_v18, %v1280_v62  ;;  %v4128_v25 = vmul.u32.u64.low %v1282_v15, %v1277_v23  ;;  %v4129_v26 = vmul.u32.u64.high %v1282_v15, %v1277_v23, %v4128_v25  ;;  %v1273_v30 = vsel %vm1267_vm14, %v1270_v17, %v1272_v22 }
 0xce1   :  { %v1399_v27 = vshrl.u32 %v1398_v20, 30  ;;  %v4131_v28 = vmul.u32.u64.low %v1282_v15, %v1281_v24  ;;  %v4132_v29 = vmul.u32.u64.high %v1282_v15, %v1281_v24, %v4131_v28  ;;  %v1289_v34 = vmul.u32 %v1282_v15, %v1273_v30 }
 0xce2   :  { %v1292_v32 = vadd.s32 1, %v4129_v26  ;;  %v1393_v15 = vadd.s32 %v4117_v50, %v4114_v49  ;;  %vm4150_vm6 = vcmp.le.f32.partialorder %v1234_v5, 0.7853982  ;;  %vm1429_vm13 = vweird.f32 %v4089_v44 }
 0xce3   :  { %v1400_v31 = vshll.u32 %v1399_v27, 30  ;;  %vm1291_vm15 = vc.u32 %v4132_v29, %v4128_v25  ;;  %v1290_v1 = vadd.s32 %v4128_v25, %v4132_v29  ;;  %v1423_v4 = vsub.s32 4, %v1399_v27 }
 0xce4   :  { %v1293_v35 = vsel %vm1291_vm15, %v1292_v32, %v4129_v26 }
 0xce5   :  { %v1401_v33 = vsub.s32 %v1397_v11, %v1400_v31  ;;  %v1294_v16 = vadd.s32 %v1293_v35, %v1289_v34  ;;  %v1424_v19 = vsel %vm1339_vm3, %v1423_v4, %v1399_v27 }
 0xce6   :  { %v1426_v62 = vsel %vm1338_vm4, 0, %v1424_v19 }
 0xce7   :  { %v1403_v36 = vsub.s32 0, %v1401_v33  ;;  %v1295_v38 = vadd.s32 536870912, %v1294_v16  ;;  %v1637_v25 = vadd.s32 3, %v1426_v62  ;;  %v1430_v29 = vand.u32 3, %v1426_v62 }
 0xce9   :  { %v3207_v37 = vmin.u32 %v1403_v36, %v1401_v33  ;;  %v4137_v42 = vshrl.u32 %v1295_v38, 30  ;;  %v1638_v30 = vand.u32 3, %v1637_v25  ;;  %vm1432_vm7 = vcmp.eq.s32.totalorder %v1430_v29, 0 }
 0xcea   :  { %vm1435_vm8 = vcmp.eq.s32.totalorder %v1430_v29, 2  ;;  %vm1431_vm11 = vcmp.lt.s32.totalorder %v1430_v29, 2 }
 0xceb   :  { %v1405_v41 = vclz %v3207_v37  ;;  %v1297_v45 = vshll.u32 %v4137_v42, 30  ;;  %v1320_v31 = vsub.s32 4, %v4137_v42  ;;  %vm1643_vm9 = vcmp.eq.s32.totalorder %v1638_v30, 2 }
 0xcec   :  { %vm1640_vm10 = vcmp.eq.s32.totalorder %v1638_v30, 0  ;;  %vm1639_vm12 = vcmp.lt.s32.totalorder %v1638_v30, 2 }
 0xced   :  { %v3208_v43 = vadd.s32 4294967294, %v1405_v41  ;;  %v1298_v51 = vsub.s32 %v1294_v16, %v1297_v45  ;;  %v1321_v16 = vsel %vm1236_vm5, %v1320_v31, %v4137_v42 }
 0xcef   :  { %vm3209_vm1 = vcmp.lt.s32.totalorder %v3208_v43, 0  ;;  %v1300_v2 = vsub.s32 0, %v1298_v51 }
 0xcf0   :  { %v1408_v47 = vsel %vm3209_vm1, 0, %v3208_v43 }
 0xcf1   :  { %v1409_v52 = vsub.s32 32, %v1408_v47  ;;  %v1413_v53 = vsub.s32 4294967266, %v1408_v47  ;;  %v1410_v54 = vshll.u32 %v1401_v33, %v1408_v47  ;;  %v3203_v57 = vmin.u32 %v1300_v2, %v1298_v51 }
 0xcf3   :  { %v1411_v55 = vshrl.u32 %v1393_v15, %v1409_v52  ;;  %v1414_v56 = vadd.s32 127, %v1413_v53  ;;  %v1302_v60 = vclz %v3203_v57 }
 0xcf5   :  { %v1412_v58 = vor.u32 %v1411_v55, %v1410_v54  ;;  %v1415_v59 = vshll.u32 %v1414_v56, 23  ;;  %v3204_v63 = vadd.s32 4294967294, %v1302_v60 }
 0xcf7   :  { %v1416_v61 = vor.u32 4788187, %v1415_v59  ;;  %v1419_v3 = vcvt.s32.f32 %v1412_v58  ;;  %vm3205_vm2 = vcmp.lt.s32.totalorder %v3204_v63, 0 }
 0xcf8   :  { %v1305_v9 = vsel %vm3205_vm2, 0, %v3204_v63  ;;  %vm1326_vm2 = vweird.f32 %v4093_v48 }
 0xcf9   :  { %v1417_v0 = vand.u32 2147483647, %v1416_v61  ;;  %v1306_v49 = vsub.s32 32, %v1305_v9  ;;  %v1310_v50 = vsub.s32 4294967266, %v1305_v9  ;;  %v1307_v7 = vshll.u32 %v1298_v51, %v1305_v9 }
 0xcfa   :  { %v1323_v51 = vsel %vm4150_vm6, 0, %v1321_v16  ;;  %v3849_v9 = vmov 5  }
 0xcfb   :  { %v1420_v6 = vmul.f32 %v1419_v3, %v1417_v0  ;;  %v1308_v11 = vshrl.u32 %v1290_v1, %v1306_v49  ;;  %v1311_v13 = vadd.s32 127, %v1310_v50  ;;  %v1327_v53 = vand.u32 3, %v1323_v51 }
 0xcfc   :  { %v3847_v0 = vmov 2   ;;  %v1533_v1 = vadd.s32 3, %v1323_v51  ;;  %v5112_v49 = vmov 6  }
 0xcfd   :  { %v1421_v12 = vxor.u32 2147483648, %v1420_v6  ;;  %v1309_v17 = vor.u32 %v1308_v11, %v1307_v7  ;;  %v1312_v10 = vshll.u32 %v1311_v13, 23  ;;  %vm1332_vm14 = vcmp.eq.s32.totalorder %v1327_v53, 2 }
 0xcfe   :  { %vm1329_vm15 = vcmp.eq.s32.totalorder %v1327_v53, 0  ;;  %vm1328_vm1 = vcmp.lt.s32.totalorder %v1327_v53, 2  ;;  %v1534_v50 = vand.u32 3, %v1533_v1 }
 0xcff   :  { %v1422_v14 = vsel %vm1339_vm3, %v1421_v12, %v1420_v6  ;;  %v1313_v20 = vor.u32 4788187, %v1312_v10  ;;  %v1316_v23 = vcvt.s32.f32 %v1309_v17  ;;  %v3848_v6 = vmov 3  }
 0xd00   :  { %v1425_v18 = vsel %vm1338_vm4, %v4089_v44, %v1422_v14  ;;  %v3846_v44 = vmov 1   ;;  %v3851_v12 = vmov 7   ;;  %vm1536_vm3 = vcmp.eq.s32.totalorder %v1534_v50, 0 }
 0xd01   :  { %3664 = vcosq.f32 %v1425_v18  ;;  %v1314_v22 = vand.u32 2147483647, %v1313_v20  ;;  %vm1539_vm4 = vcmp.eq.s32.totalorder %v1534_v50, 2 }
 0xd02   :  { %3666 = vsinq.f32 %v1425_v18 }
 0xd03   :  { %v1317_v24 = vmul.f32 %v1316_v23, %v1314_v22  ;;  %v1656_v22 = vlaneseq }
 0xd05   :  { %v1318_v26 = vxor.u32 2147483648, %v1317_v24  ;;  %v4259_v62 = vand.u32 127, %v1656_v22 }
 0xd07   :  { %v1319_v28 = vsel %vm1236_vm5, %v1318_v26, %v1317_v24  ;;  %vm1535_vm5 = vcmp.lt.s32.totalorder %v1534_v50, 2  ;;  %v4265_v25 = vadd.s32 128, %v4259_v62  ;;  %v1659_v46 = vshra.s32 %v4259_v62, 7 }
 0xd08   :  { %v1322_v27 = vsel %vm4150_vm6, %v4093_v48, %v1319_v28  ;;  %v1695_v29 = vshra.s32 %v4259_v62, 6 }
 0xd09   :  { %3668 = vcosq.f32 %v1322_v27  ;;  %v1660_v28 = vshra.s32 %v4265_v25, 7  ;;  %v1696_v30 = vshra.s32 %v4265_v25, 6 }
 0xd0a   :  { %3670 = vsinq.f32 %v1322_v27 }
 0xd0e   :  { %v3665_v32 = vpop.eup %3664 }
 0xd0f   :  { %v3667_v33 = vpop.eup %3666  ;;  %v1436_v34 = vxor.u32 2147483648, %v3665_v32 }
 0xd10   :  { %v1433_v5 = vxor.u32 2147483648, %v3667_v33 }
 0xd11   :  { %v1437_v35 = vsel %vm1435_vm8, %v1436_v34, %v3667_v33  ;;  %v1645_v36 = vsel %vm1643_vm9, %v1436_v34, %v3667_v33  ;;  %v4282_v33 = vand.u32 1, %v1660_v28  ;;  %v4286_v34 = vand.u32 1, %v1695_v29 }
 0xd12   :  { %v1434_v37 = vsel %vm1432_vm7, %v3665_v32, %v1433_v5  ;;  %v1642_v38 = vsel %vm1640_vm10, %v3665_v32, %v1433_v5  ;;  %v4280_v32 = vand.u32 1, %v1659_v46  ;;  %v4288_v5 = vand.u32 1, %v1696_v30 }
 0xd13   :  { %v1438_v41 = vsel %vm1431_vm11, %v1434_v37, %v1437_v35  ;;  %v1646_v43 = vsel %vm1639_vm12, %v1642_v38, %v1645_v36  ;;  %v1664_v36 = vcvt.s32.f32 %v4282_v33  ;;  %v1699_v38 = vcvt.s32.f32 %v4286_v34 }
 0xd14   :  { %v1439_v45 = vsel %vm1429_vm13, nan, %v1438_v41  ;;  %v1647_v47 = vsel %vm1429_vm13, nan, %v1646_v43  ;;  %v1663_v35 = vcvt.s32.f32 %v4280_v32  ;;  %v1700_v41 = vcvt.s32.f32 %v4288_v5 }
 0xd15   :  { %v1649_v15 = vmul.f32 %v1439_v45, %v1439_v45  ;;  %v1651_v52 = vmul.f32 %v1647_v47, %v1647_v47  ;;  %v1653_v54 = vmul.f32 %v1647_v47, %v1439_v45 }
 0xd16   :  { %v3669_v2 = vpop.eup %3668 }
 0xd17   :  { %1908 = vperm.xlu0 %3582, %v1649_v15   ;;  %1686 = vperm.xlu1 %3578, %v1649_v15   ;;  %v3671_v42 = vpop.eup %3670  ;;  %v4166_v55 = vsub.f32 %v1651_v52, %v1649_v15  ;;  %v1333_v56 = vxor.u32 2147483648, %v3669_v2  ;;  %v4171_v60 = vsub.f32 0.0, %v1653_v54 }
 0xd18   :  { %v1330_v57 = vxor.u32 2147483648, %v3671_v42 }
 0xd19   :  { %v1334_v58 = vsel %vm1332_vm14, %v1333_v56, %v3671_v42  ;;  %v1541_v7 = vsel %vm1539_vm4, %v1333_v56, %v3671_v42  ;;  %v1812_v56 = vshra.s32 %v4265_v25, 4 }
 0xd1a   :  { %v1331_v59 = vsel %vm1329_vm15, %v3669_v2, %v1330_v57  ;;  %v1538_v4 = vsel %vm1536_vm3, %v3669_v2, %v1330_v57 }
 0xd1b   :  { %3586 = vset.pattern.permute.xlu0 %v3839_v40  ;;  %3579 = vset.pattern.permute.xlu1 %v3846_v44  ;;  %v1335_v61 = vsel %vm1328_vm1, %v1331_v59, %v1334_v58  ;;  %v1542_v11 = vsel %vm1535_vm5, %v1538_v4, %v1541_v7  ;;  %v1781_v59 = vshra.s32 %v4259_v62, 5 }
 0xd1c   :  { %1718 = vperm.xlu1 %3579, %v1649_v15   ;;  %1672 = vperm.xlu0 %3586, %v4166_v55   ;;  %v1336_v63 = vsel %vm1326_vm2, nan, %v1335_v61  ;;  %v1543_v13 = vsel %vm1326_vm2, nan, %v1542_v11  ;;  %v1782_v61 = vshra.s32 %v4265_v25, 5 }
 0xd1d   :  { %v4178_v3 = vmul.f32 %v1336_v63, %v1336_v63  ;;  %v1652_v14 = vmul.f32 %v1543_v13, %v1336_v63  ;;  %v1650_v17 = vmul.f32 %v1543_v13, %v1543_v13  ;;  %v4326_v1 = vand.u32 1, %v1781_v59 }
 0xd1e   :  { %v4328_v50 = vand.u32 1, %v1782_v61  ;;  %v1886_v59 = vshra.s32 %v4265_v25, 3 }
 0xd1f   :  { %v4201_v18 = vsub.f32 0.0, %v1652_v14  ;;  %v4209_v48 = vsub.f32 %v1650_v17, %v4178_v3 }
 0xd20   :  { %3580 = vset.pattern.permute.xlu1 %v3847_v0  ;;  %1770 = vperm.xlu0 %3586, %v4171_v60  }
 0xd21   :  { %1804 = vperm.xlu1 %3580, %v1649_v15  }
 0xd24   :  { %3590 = vset.pattern.permute.xlu0 %v3847_v0 }
 0xd25   :  { %3581 = vset.pattern.permute.xlu1 %v3848_v6  ;;  %1800 = vperm.xlu0 %3590, %v4178_v3  }
 0xd26   :  { %1834 = vperm.xlu1 %3581, %v1649_v15  }
 0xd29   :  { %3591 = vset.pattern.permute.xlu0 %v3848_v6 }
 0xd2a   :  { %3583 = vset.pattern.permute.xlu1 %v3849_v9  ;;  %1822 = vperm.xlu0 %3591, %v4166_v55  }
 0xd2b   :  { %1938 = vperm.xlu1 %3583, %v1649_v15  }
 0xd2e   :  { %1862 = vperm.xlu0 %3591, %v4171_v60  }
 0xd2f   :  { %3584 = vset.pattern.permute.xlu1 %v5112_v49 }
 0xd30   :  { %2012 = vperm.xlu1 %3584, %v1649_v15  }
 0xd32   :  { %3595 = vset.pattern.permute.xlu0 %v3849_v9 }
 0xd33   :  { %1926 = vperm.xlu0 %3595, %v4166_v55  }
 0xd34   :  { %3585 = vset.pattern.permute.xlu1 %v3851_v12 }
 0xd35   :  { %2040 = vperm.xlu1 %3585, %v1649_v15  }
 0xd37   :  { %1966 = vperm.xlu0 %3595, %v4171_v60  }
 0xd39   :  { %3587 = vset.pattern.permute.xlu1 %v3839_v40 }
 0xd3a   :  { %1681 = vperm.xlu1 %3587, %v4178_v3  }
 0xd3b   :  { %3599 = vset.pattern.permute.xlu0 %v3851_v12 }
 0xd3c   :  { %2028 = vperm.xlu0 %3599, %v4166_v55  }
 0xd3e   :  { %3588 = vset.pattern.permute.xlu1 %v3846_v44 }
 0xd3f   :  { %1706 = vperm.xlu1 %3588, %v4166_v55  }
 0xd40   :  { %2036 = vperm.xlu0 %3599, %v4178_v3  }
 0xd43   :  { %1714 = vperm.xlu1 %3588, %v4178_v3  }
 0xd44   :  { %3604 = vset.pattern.permute.xlu0 %v3846_v44 }
 0xd45   :  { %1754 = vperm.xlu0 %3604, %v4201_v18  }
 0xd47   :  { %1733 = vrot.lane.b32.xlu1 %v4171_v60, %s3852_s22 }
 0xd49   :  { %3609 = vset.pattern.permute.xlu0 %v5113_v39 }
 0xd4a   :  { %1892 = vperm.xlu0 %3609, %v4209_v48  }
 0xd4b   :  { %1758 = vperm.xlu1 %3588, %v4171_v60  }
 0xd4e   :  { %3612 = vset.pattern.permute.xlu0 %v5112_v49 }
 0xd4f   :  { %3589 = vset.pattern.permute.xlu1 %v3847_v0  ;;  %1996 = vperm.xlu0 %3612, %v4209_v48  }
 0xd50   :  { %1792 = vperm.xlu1 %3589, %v4166_v55  }
 0xd53   :  { %3614 = vset.pattern.permute.xlu0 %v3851_v12 }
 0xd54   :  { %3592 = vset.pattern.permute.xlu1 %v3848_v6  ;;  %2064 = vperm.xlu0 %3614, %v4201_v18  }
 0xd55   :  { %1830 = vperm.xlu1 %3592, %v4178_v3  }
 0xd58   :  { %3615 = vset.pattern.permute.xlu0 %v5112_v49 }
 0xd59   :  { %3593 = vset.pattern.permute.xlu1 %v3847_v0  ;;  %2076 = vperm.xlu0 %3615, %v4201_v18  }
 0xd5a   :  { %1874 = vperm.xlu1 %3593, %v4171_v60  }
 0xd5d   :  { %3619 = vset.pattern.permute.xlu0 %v3839_v40 }
 0xd5e   :  { %3594 = vset.pattern.permute.xlu1 %v5113_v39 }
 0xd5f   :  { %1896 = vperm.xlu1 %3594, %v4166_v55  }
 0xd63   :  { %1904 = vperm.xlu1 %3594, %v4178_v3  }
 0xd67   :  { %3596 = vset.pattern.permute.xlu1 %v3849_v9 }
 0xd68   :  { %1934 = vperm.xlu1 %3596, %v4178_v3  }
 0xd6c   :  { %3597 = vset.pattern.permute.xlu1 %v5113_v39 }
 0xd6d   :  { %1978 = vperm.xlu1 %3597, %v4171_v60  }
 0xd71   :  { %3598 = vset.pattern.permute.xlu1 %v5112_v49 }
 0xd72   :  { %2000 = vperm.xlu1 %3598, %v4166_v55   ;;  %v1811_v55 = vshra.s32 %v4259_v62, 4 }
 0xd76   :  { %2008 = vperm.xlu1 %3598, %v4178_v3   ;;  %v4321_v3 = vand.u32 1, %v1812_v56 }
 0xd78   :  { %v5106_v4 = vcvt.s32.f32 %v4321_v3 }
 0xd7a   :  { %3600 = vset.pattern.permute.xlu1 %v3839_v40 }
 0xd7b   :  { %1667 = vperm.xlu1 %3600, %v4209_v48  }
 0xd7f   :  { %3601 = vset.pattern.permute.xlu1 %v3846_v44 }
 0xd80   :  { %1702 = vperm.xlu1 %3601, %v4209_v48  }
 0xd84   :  { %1731 = vrot.lane.b32.xlu1 %v4201_v18, %s3852_s22 }
 0xd85   :  { %3602 = vset.pattern.permute.xlu1 %v3851_v12 }
 0xd88   :  { %2068 = vperm.xlu1 %3602, %v4171_v60  }
 0xd8c   :  { %3603 = vset.pattern.permute.xlu1 %v5112_v49 }
 0xd8d   :  { %2080 = vperm.xlu1 %3603, %v4171_v60  }
 0xd91   :  { %3605 = vset.pattern.permute.xlu1 %v3839_v40 }
 0xd92   :  { %v1687_v10 = vpop.permute.xlu1 %1686  ;;  %1766 = vperm.xlu1 %3605, %v4201_v18   ;;  %v4274_v27 = vpop.permute.xlu0 %1908 }
 0xd96   :  { %3606 = vset.pattern.permute.xlu1 %v3847_v0 }
 0xd97   :  { %v1719_v19 = vpop.permute.xlu1 %1718  ;;  %1788 = vperm.xlu1 %3606, %v4209_v48   ;;  %v1673_v16 = vpop.permute.xlu0 %1672 }
 0xd98   :  { %v1677_v43 = vmul.f32 %v1673_v16, %v1663_v35  ;;  %v1678_v45 = vmul.f32 %v1673_v16, %v1664_v36 }
 0xd9a   :  { %v1691_v42 = vadd.f32 %v1687_v10, %v1677_v43  ;;  %v1692_v54 = vadd.f32 %v1687_v10, %v1678_v45  ;;  %v5105_v10 = vcvt.s32.f32 %v4326_v1  ;;  %v1915_v43 = vshra.s32 %v4259_v62, 2 }
 0xd9b   :  { %3607 = vset.pattern.permute.xlu1 %v3848_v6  ;;  %v1771_v51 = vpop.permute.xlu0 %1770  ;;  %v1916_v45 = vshra.s32 %v4265_v25, 2 }
 0xd9c   :  { %v4252_v20 = vpop.permute.xlu1 %1804  ;;  %1818 = vperm.xlu1 %3607, %v4209_v48  }
 0xd9d   :  { %v4365_v56 = vand.u32 1, %v1916_v45 }
 0xd9f   :  { %v5108_v61 = vcvt.s32.f32 %v4365_v56 }
 0xda0   :  { %1858 = vperm.xlu1 %3607, %v4201_v18   ;;  %v4317_v63 = vpop.permute.xlu0 %1800 }
 0xda1   :  { %v4256_v23 = vpop.permute.xlu1 %1834 }
 0xda4   :  { %3608 = vset.pattern.permute.xlu1 %v3847_v0 }
 0xda5   :  { %1870 = vperm.xlu1 %3608, %v4201_v18   ;;  %v1823_v11 = vpop.permute.xlu0 %1822 }
 0xda6   :  { %v4262_v24 = vpop.permute.xlu1 %1938  ;;  %v1828_v28 = vmul.f32 %v1823_v11, %v5106_v4 }
 0xda9   :  { %3610 = vset.pattern.permute.xlu1 %v3849_v9 }
 0xdaa   :  { %1922 = vperm.xlu1 %3610, %v4209_v48  }
 0xdab   :  { %v4269_v26 = vpop.permute.xlu1 %2012 }
 0xdae   :  { %1962 = vperm.xlu1 %3610, %v4201_v18  }
 0xdb0   :  { %v4278_v31 = vpop.permute.xlu1 %2040 }
 0xdb2   :  { %3611 = vset.pattern.permute.xlu1 %v5113_v39 }
 0xdb3   :  { %1974 = vperm.xlu1 %3611, %v4201_v18  }
 0xdb5   :  { %v4292_v37 = vpop.permute.xlu1 %1681 }
 0xdb7   :  { %3613 = vset.pattern.permute.xlu1 %v3851_v12 }
 0xdb8   :  { %2024 = vperm.xlu1 %3613, %v4209_v48  }
 0xdba   :  { %v1707_v47 = vpop.permute.xlu1 %1706 }
 0xdbb   :  { %v1711_v15 = vmul.f32 %v1707_v47, %v1699_v38  ;;  %v1712_v52 = vmul.f32 %v1707_v47, %v1700_v41 }
 0xdbc   :  { %3616 = vset.pattern.permute.xlu1 %v3839_v40  ;;  %v4319_v40 = vand.u32 1, %v1811_v55  ;;  %v4363_v55 = vand.u32 1, %v1915_v43 }
 0xdbd   :  { %v1723_v53 = vadd.f32 %v1719_v19, %v1711_v15  ;;  %v1724_v2 = vadd.f32 %v1719_v19, %v1712_v52  ;;  %v1840_v52 = vadd.f32 %v4256_v23, %v1828_v28 }
 0xdbe   :  { %v4309_v57 = vpop.permute.xlu1 %1714  ;;  %v5107_v12 = vcvt.s32.f32 %v4319_v40 }
 0xdbf   :  { %v4311_v44 = vmul.f32 %v1723_v53, %v1691_v42  ;;  %v4313_v58 = vmul.f32 %v1724_v2, %v1692_v54  ;;  %v1775_v13 = vmul.f32 %v1771_v51, %v1723_v53  ;;  %v1776_v14 = vmul.f32 %v1771_v51, %v1724_v2 }
 0xdc0   :  { %v1827_v46 = vmul.f32 %v1823_v11, %v5107_v12 }
 0xdc2   :  { %v1734_v6 = vpop.permute.xlu1 %1733  ;;  %v1839_v15 = vadd.f32 %v4256_v23, %v1827_v46  ;;  %v5109_v23 = vcvt.s32.f32 %v4363_v55 }
 0xdc3   :  { %v4324_v9 = vmul.f32 %v1734_v6, %v4171_v60  ;;  %v5104_v60 = vcvt.s32.f32 %v4328_v50 }
 0xdc5   :  { %1746 = vperm.xlu1 %3616, %v4324_v9  }
 0xdc6   :  { %v1759_v7 = vpop.permute.xlu1 %1758 }
 0xdc7   :  { %v1763_v17 = vmul.f32 %v1759_v7, %v1691_v42  ;;  %v1764_v48 = vmul.f32 %v1759_v7, %v1692_v54  ;;  %v1863_v54 = vpop.permute.xlu0 %1862  ;;  %v4374_v7 = vand.u32 1, %v1886_v59 }
 0xdc9   :  { %v4335_v19 = vadd.f32 %v1775_v13, %v1763_v17  ;;  %v4337_v22 = vadd.f32 %v1776_v14, %v1764_v48  ;;  %3617 = vset.pattern.permute.xlu1 %v3847_v0 }
 0xdca   :  { %1850 = vperm.xlu1 %3617, %v4324_v9  }
 0xdcb   :  { %v1793_v29 = vpop.permute.xlu1 %1792  ;;  %v1927_v46 = vpop.permute.xlu0 %1926 }
 0xdcc   :  { %v1797_v30 = vmul.f32 %v1793_v29, %v5105_v10  ;;  %v1798_v16 = vmul.f32 %v1793_v29, %v5104_v60  ;;  %v1931_v43 = vmul.f32 %v1927_v46, %v5109_v23  ;;  %v1932_v45 = vmul.f32 %v1927_v46, %v5108_v61 }
 0xdcd   :  { %v2019_v10 = vand.u32 1, %v4259_v62 }
 0xdce   :  { %v1809_v47 = vadd.f32 %v4252_v20, %v1797_v30  ;;  %v1810_v51 = vadd.f32 %v4252_v20, %v1798_v16  ;;  %3618 = vset.pattern.permute.xlu1 %v5113_v39  ;;  %v1885_v20 = vshra.s32 %v4259_v62, 3  ;;  %v5110_v16 = vcvt.s32.f32 %v4374_v7 }
 0xdcf   :  { %1954 = vperm.xlu1 %3618, %v4324_v9   ;;  %v1967_v46 = vpop.permute.xlu0 %1966 }
 0xdd0   :  { %v4357_v53 = vpop.permute.xlu1 %1830  ;;  %v4359_v2 = vmul.f32 %v1839_v15, %v1809_v47  ;;  %v4361_v42 = vmul.f32 %v1840_v52, %v1810_v51  ;;  %v4372_v6 = vand.u32 1, %v1885_v20  ;;  %v1867_v13 = vmul.f32 %v1863_v54, %v1809_v47 }
 0xdd1   :  { %v1868_v14 = vmul.f32 %v1863_v54, %v1810_v51 }
 0xdd2   :  { %v5111_v30 = vcvt.s32.f32 %v4372_v6 }
 0xdd3   :  { %3622 = vset.pattern.permute.xlu1 %v5112_v49  ;;  %v2029_v12 = vpop.permute.xlu0 %2028 }
 0xdd5   :  { %v1875_v11 = vpop.permute.xlu1 %1874 }
 0xdd6   :  { %v1879_v17 = vmul.f32 %v1875_v11, %v1839_v15  ;;  %v1880_v48 = vmul.f32 %v1875_v11, %v1840_v52 }
 0xdd7   :  { %v4462_v34 = vpop.permute.xlu0 %2036 }
 0xdd8   :  { %v4376_v28 = vadd.f32 %v1879_v17, %v1867_v13  ;;  %v4378_v29 = vadd.f32 %v1880_v48, %v1868_v14  ;;  %v1943_v13 = vadd.f32 %v4262_v24, %v1931_v43  ;;  %v1944_v14 = vadd.f32 %v4262_v24, %v1932_v45 }
 0xdda   :  { %v4388_v47 = vmul.f32 %v4376_v28, %v4335_v19  ;;  %v4392_v51 = vmul.f32 %v4378_v29, %v4337_v22  ;;  %v1897_v15 = vpop.permute.xlu1 %1896 }
 0xddb   :  { %v1901_v52 = vmul.f32 %v1897_v15, %v5111_v30  ;;  %v1902_v54 = vmul.f32 %v1897_v15, %v5110_v16  ;;  %v2020_v15 = vand.u32 1, %v4265_v25 }
 0xddd   :  { %v1913_v20 = vadd.f32 %v4274_v27, %v1901_v52  ;;  %v1914_v59 = vadd.f32 %v4274_v27, %v1902_v54  ;;  %v1989_v52 = vshra.s32 %v4259_v62, 1  ;;  %v1990_v27 = vshra.s32 %v4265_v25, 1 }
 0xdde   :  { %v4400_v11 = vpop.permute.xlu1 %1904  ;;  %v4414_v54 = vcvt.s32.f32 %v2019_v10  ;;  %v4416_v43 = vcvt.s32.f32 %v2020_v15 }
 0xddf   :  { %v4404_v17 = vmul.f32 %v1943_v13, %v1913_v20  ;;  %v4406_v48 = vmul.f32 %v1944_v14, %v1914_v59  ;;  %v4418_v24 = vand.u32 1, %v1989_v52  ;;  %v4420_v45 = vand.u32 1, %v1990_v27 }
 0xde0   :  { %v1971_v61 = vmul.f32 %v1967_v46, %v1913_v20  ;;  %v1972_v23 = vmul.f32 %v1967_v46, %v1914_v59  ;;  %v2033_v62 = vmul.f32 %v2029_v12, %v4414_v54  ;;  %v2034_v25 = vmul.f32 %v2029_v12, %v4416_v43 }
 0xde1   :  { %v1993_v10 = vcvt.s32.f32 %v4418_v24  ;;  %v5114_v15 = vcvt.s32.f32 %v4420_v45 }
 0xde3   :  { %v4408_v60 = vpop.permute.xlu1 %1934 }
 0xde8   :  { %v1979_v4 = vpop.permute.xlu1 %1978 }
 0xde9   :  { %v1983_v16 = vmul.f32 %v1979_v4, %v1943_v13  ;;  %v1984_v30 = vmul.f32 %v1979_v4, %v1944_v14 }
 0xdeb   :  { %v4422_v49 = vadd.f32 %v1983_v16, %v1971_v61  ;;  %v4424_v39 = vadd.f32 %v1984_v30, %v1972_v23  ;;  %v2045_v61 = vadd.f32 %v4278_v31, %v2033_v62  ;;  %v2046_v30 = vadd.f32 %v4278_v31, %v2034_v25 }
 0xded   :  { %v2001_v52 = vpop.permute.xlu1 %2000 }
 0xdee   :  { %v2005_v27 = vmul.f32 %v2001_v52, %v1993_v10  ;;  %v2006_v20 = vmul.f32 %v2001_v52, %v5114_v15 }
 0xdf0   :  { %v2017_v4 = vadd.f32 %v4269_v26, %v2005_v27  ;;  %v2018_v23 = vadd.f32 %v4269_v26, %v2006_v20 }
 0xdf1   :  { %v4438_v12 = vpop.permute.xlu1 %2008 }
 0xdf2   :  { %v4440_v16 = vmul.f32 %v2045_v61, %v2017_v4  ;;  %v4442_v59 = vmul.f32 %v2046_v30, %v2018_v23 }
 0xdf6   :  { %v1668_v13 = vpop.permute.xlu1 %1667 }
 0xdf7   :  { %v1675_v14 = vmul.f32 %v1668_v13, %v1663_v35  ;;  %v1676_v46 = vmul.f32 %v1668_v13, %v1664_v36 }
 0xdf9   :  { %v1689_v52 = vadd.f32 %v4292_v37, %v1675_v14  ;;  %v1690_v26 = vadd.f32 %v4292_v37, %v1676_v46  ;;  %v5131_v46 = vmov 4  }
 0xdfb   :  { %v1703_v62 = vpop.permute.xlu1 %1702 }
 0xdfc   :  { %v1709_v31 = vmul.f32 %v1703_v62, %v1699_v38  ;;  %v1710_v25 = vmul.f32 %v1703_v62, %v1700_v41  ;;  %v1755_v62 = vpop.permute.xlu0 %1754 }
 0xdfe   :  { %v1721_v27 = vadd.f32 %v4309_v57, %v1709_v31  ;;  %v1722_v20 = vadd.f32 %v4309_v57, %v1710_v25 }
 0xdff   :  { %v1732_v32 = vpop.permute.xlu1 %1731 }
 0xe00   :  { %v1737_v35 = vmul.f32 %v1732_v32, %v4201_v18  ;;  %v4457_v33 = vmul.f32 %v1721_v27, %v1689_v52  ;;  %v4459_v36 = vmul.f32 %v1722_v20, %v1690_v26 }
 0xe02   :  { %2052 = vperm.xlu1 %3622, %v1737_v35   ;;  %1741 = vperm.xlu0 %3619, %v1737_v35  }
 0xe03   :  { %v2069_v37 = vpop.permute.xlu1 %2068 }
 0xe04   :  { %v2073_v38 = vmul.f32 %v2069_v37, %v2017_v4  ;;  %v2074_v41 = vmul.f32 %v2069_v37, %v2018_v23  ;;  %v1761_v23 = vmul.f32 %v1755_v62, %v1689_v52 }
 0xe06   :  { %3620 = vset.pattern.permute.xlu0 %v3847_v0 }
 0xe07   :  { %1846 = vperm.xlu0 %3620, %v1737_v35  }
 0xe08   :  { %v2081_v5 = vpop.permute.xlu1 %2080 }
 0xe09   :  { %v2085_v13 = vmul.f32 %v2081_v5, %v2045_v61  ;;  %v2086_v57 = vmul.f32 %v2081_v5, %v2046_v30  ;;  %v1762_v61 = vmul.f32 %v1755_v62, %v1690_v26  ;;  %v5132_v5 = vmov 6  }
 0xe0b   :  { %v4464_v14 = vadd.f32 %v2085_v13, %v2073_v38  ;;  %v4466_v18 = vadd.f32 %v2086_v57, %v2074_v41  ;;  %3621 = vset.pattern.permute.xlu0 %v5131_v46 }
 0xe0c   :  { %1950 = vperm.xlu0 %3621, %v1737_v35  }
 0xe0d   :  { %v4471_v31 = vmul.f32 %v4464_v14, %v4422_v49  ;;  %v4475_v0 = vmul.f32 %v4466_v18, %v4424_v39  ;;  %v1767_v4 = vpop.permute.xlu1 %1766 }
 0xe0e   :  { %v1773_v30 = vmul.f32 %v1767_v4, %v1721_v27  ;;  %v1774_v25 = vmul.f32 %v1767_v4, %v1722_v20 }
 0xe10   :  { %v4477_v32 = vadd.f32 %v1773_v30, %v1761_v23  ;;  %v4479_v37 = vadd.f32 %v1774_v25, %v1762_v61  ;;  %3623 = vset.pattern.permute.xlu0 %v5132_v5 }
 0xe11   :  { %2056 = vperm.xlu0 %3623, %v4324_v9  }
 0xe12   :  { %v4483_v35 = vpop.permute.xlu1 %1788 }
 0xe17   :  { %v4485_v38 = vpop.permute.xlu1 %1818 }
 0xe18   :  { %3799 = shalt.err (!%p3796_p4)  }
 0xe19   :  { %26 = dma.hbm_to_vmem [thread:$0]  %s5102_s3, 8192, %s24_s24, [#allocation3]  ;;  %v1893_v26 = vpop.permute.xlu0 %1892  ;;  %v5133_v20 = vcvt.s32.f32 %v4372_v6  ;;  %v5134_v13 = vcvt.s32.f32 %v4374_v7  ;;  %v5135_v46 = vcvt.s32.f32 %v4363_v55  ;;  %v5136_v4 = vcvt.s32.f32 %v4365_v56 }
 0xe1b   :  { %v4490_v52 = vpop.permute.xlu1 %1858  ;;  %v1899_v41 = vmul.f32 %v1893_v26, %v5133_v20  ;;  %v1900_v57 = vmul.f32 %v1893_v26, %v5134_v13 }
 0xe1d   :  { %v1911_v61 = vadd.f32 %v4400_v11, %v1899_v41  ;;  %v1912_v30 = vadd.f32 %v4400_v11, %v1900_v57  ;;  %v1997_v7 = vpop.permute.xlu0 %1996 }
 0xe1e   :  { %v2003_v11 = vmul.f32 %v1997_v7, %v1993_v10 }
 0xe20   :  { %v4492_v9 = vpop.permute.xlu1 %1870 }
 0xe25   :  { %v1923_v27 = vpop.permute.xlu1 %1922 }
 0xe26   :  { %v1929_v62 = vmul.f32 %v1923_v27, %v5135_v46  ;;  %v1930_v23 = vmul.f32 %v1923_v27, %v5136_v4  ;;  %v2065_v27 = vpop.permute.xlu0 %2064 }
 0xe28   :  { %v1941_v25 = vadd.f32 %v4408_v60, %v1929_v62  ;;  %v1942_v5 = vadd.f32 %v4408_v60, %v1930_v23  ;;  %v5137_v60 = vcvt.s32.f32 %v4420_v45  ;;  %v2015_v23 = vadd.f32 %v4438_v12, %v2003_v11 }
 0xe29   :  { %v1963_v15 = vpop.permute.xlu1 %1962 }
 0xe2a   :  { %v4506_v6 = vmul.f32 %v1941_v25, %v1911_v61  ;;  %v4508_v20 = vmul.f32 %v1942_v5, %v1912_v30  ;;  %v1969_v55 = vmul.f32 %v1963_v15, %v1911_v61  ;;  %v1970_v13 = vmul.f32 %v1963_v15, %v1912_v30 }
 0xe2b   :  { %v2004_v57 = vmul.f32 %v1997_v7, %v5137_v60 }
 0xe2d   :  { %v2016_v8 = vadd.f32 %v4438_v12, %v2004_v57 }
 0xe2e   :  { %v1975_v26 = vpop.permute.xlu1 %1974 }
 0xe2f   :  { %v1981_v46 = vmul.f32 %v1975_v26, %v1941_v25  ;;  %v1982_v56 = vmul.f32 %v1975_v26, %v1942_v5  ;;  %v2077_v5 = vpop.permute.xlu0 %2076  ;;  %v2071_v26 = vmul.f32 %v2065_v27, %v2015_v23  ;;  %v2072_v24 = vmul.f32 %v2065_v27, %v2016_v8 }
 0xe31   :  { %v4510_v4 = vadd.f32 %v1981_v46, %v1969_v55  ;;  %v4512_v41 = vadd.f32 %v1982_v56, %v1970_v13 }
 0xe33   :  { %v2025_v62 = vpop.permute.xlu1 %2024 }
 0xe34   :  { %v2031_v15 = vmul.f32 %v2025_v62, %v4414_v54  ;;  %v2032_v61 = vmul.f32 %v2025_v62, %v4416_v43 }
 0xe36   :  { %v2043_v30 = vadd.f32 %v4462_v34, %v2031_v15  ;;  %v2044_v25 = vadd.f32 %v4462_v34, %v2032_v61 }
 0xe38   :  { %v2083_v10 = vmul.f32 %v2077_v5, %v2043_v30  ;;  %v2084_v55 = vmul.f32 %v2077_v5, %v2044_v25 }
 0xe3a   :  { %v4524_v45 = vadd.f32 %v2083_v10, %v2071_v26  ;;  %v4526_v7 = vadd.f32 %v2084_v55, %v2072_v24  ;;  %v5139_v26 = vcvt.s32.f32 %v4321_v3  ;;  %v5140_v24 = vcvt.s32.f32 %v4326_v1 }
 0xe3b   :  { %v5141_v10 = vcvt.s32.f32 %v4328_v50  ;;  %v2048_v1 = vmul.f32 %v2044_v25, %v2016_v8 }
 0xe3c   :  { %v4530_v12 = vmul.f32 %v4524_v45, %v4510_v4  ;;  %v4534_v54 = vmul.f32 %v4526_v7, %v4512_v41 }
 0xe40   :  { %v1747_v43 = vpop.permute.xlu1 %1746 }
 0xe41   :  { %v1751_v34 = vsub.f32 %v4311_v44, %v1747_v43  ;;  %v1752_v13 = vsub.f32 %v4313_v58, %v1747_v43 }
 0xe43   :  { %v2105_v46 = vmul.f32 %v4376_v28, %v1751_v34  ;;  %v2106_v56 = vmul.f32 %v4378_v29, %v1752_v13 }
 0xe45   :  { %v1851_v27 = vpop.permute.xlu1 %1850 }
 0xe46   :  { %v1855_v11 = vsub.f32 %v4359_v2, %v1851_v27  ;;  %v1856_v60 = vsub.f32 %v4361_v42, %v1851_v27 }
 0xe48   :  { %v2093_v57 = vmul.f32 %v1855_v11, %v1751_v34  ;;  %v2094_v62 = vmul.f32 %v1856_v60, %v1752_v13  ;;  %v2109_v15 = vmul.f32 %v1855_v11, %v4335_v19  ;;  %v2110_v61 = vmul.f32 %v1856_v60, %v4337_v22 }
 0xe49   :  { %v2047_v34 = vmul.f32 %v2043_v30, %v2015_v23 }
 0xe4a   :  { %v4545_v5 = vsub.f32 %v2093_v57, %v4388_v47  ;;  %v4548_v44 = vsub.f32 %v2094_v62, %v4392_v51  ;;  %v4550_v58 = vadd.f32 %v2109_v15, %v2105_v46  ;;  %v4552_v28 = vadd.f32 %v2110_v61, %v2106_v56  ;;  %v1955_v29 = vpop.permute.xlu1 %1954 }
 0xe4b   :  { %v4555_v2 = vsub.f32 %v4404_v17, %v1955_v29  ;;  %v4558_v42 = vsub.f32 %v4406_v48, %v1955_v29  ;;  %v5138_v47 = vcvt.s32.f32 %v4319_v40  ;;  %v1826_v17 = vmul.f32 %v4485_v38, %v5139_v26 }
 0xe4c   :  { %v1795_v48 = vmul.f32 %v4483_v35, %v5140_v24 }
 0xe4d   :  { %v4562_v19 = vmul.f32 %v4464_v14, %v4555_v2  ;;  %v4566_v22 = vmul.f32 %v4466_v18, %v4558_v42  ;;  %v1825_v51 = vmul.f32 %v4485_v38, %v5138_v47  ;;  %v1796_v14 = vmul.f32 %v4483_v35, %v5141_v10 }
 0xe4e   :  { %v1838_v18 = vadd.f32 %v4357_v53, %v1826_v17  ;;  %v1807_v40 = vadd.f32 %v4317_v63, %v1795_v48 }
 0xe4f   :  { %v1837_v55 = vadd.f32 %v4357_v53, %v1825_v51  ;;  %v1808_v43 = vadd.f32 %v4317_v63, %v1796_v14 }
 0xe50   :  { %v1878_v38 = vmul.f32 %v4492_v9, %v1838_v18  ;;  %v1865_v13 = vmul.f32 %v4490_v52, %v1807_v40 }
 0xe51   :  { %v1877_v3 = vmul.f32 %v4492_v9, %v1837_v55  ;;  %v1866_v50 = vmul.f32 %v4490_v52, %v1808_v43  ;;  %v1841_v23 = vmul.f32 %v1837_v55, %v1807_v40  ;;  %v1842_v8 = vmul.f32 %v1838_v18, %v1808_v43 }
 0xe53   :  { %v1881_v11 = vadd.f32 %v1877_v3, %v1865_v13  ;;  %v1882_v53 = vadd.f32 %v1878_v38, %v1866_v50 }
 0xe55   :  { %v2095_v52 = vmul.f32 %v1881_v11, %v4477_v32  ;;  %v2096_v15 = vmul.f32 %v1882_v53, %v4479_v37 }
 0xe7d   :  { %v1742_v46 = vpop.permute.xlu0 %1741  ;;  %v2053_v35 = vpop.permute.xlu1 %2052 }
 0xe7e   :  { %v2059_v56 = vsub.f32 %v2047_v34, %v2053_v35  ;;  %v2060_v27 = vsub.f32 %v2048_v1, %v2053_v35  ;;  %v1749_v60 = vsub.f32 %v4457_v33, %v1742_v46  ;;  %v1750_v63 = vsub.f32 %v4459_v36, %v1742_v46 }
 0xe80   :  { %v2131_v57 = vmul.f32 %v2059_v56, %v4510_v4  ;;  %v2132_v9 = vmul.f32 %v2060_v27, %v4512_v41  ;;  %v2103_v61 = vmul.f32 %v1881_v11, %v1749_v60  ;;  %v2104_v29 = vmul.f32 %v1882_v53, %v1750_v63 }
 0xe82   :  { %v1847_v30 = vpop.permute.xlu0 %1846 }
 0xe83   :  { %v1853_v25 = vsub.f32 %v1841_v23, %v1847_v30  ;;  %v1854_v62 = vsub.f32 %v1842_v8, %v1847_v30 }
 0xe85   :  { %v2091_v47 = vmul.f32 %v1853_v25, %v1749_v60  ;;  %v2092_v51 = vmul.f32 %v1854_v62, %v1750_v63  ;;  %v2107_v33 = vmul.f32 %v1853_v25, %v4477_v32  ;;  %v2108_v36 = vmul.f32 %v1854_v62, %v4479_v37 }
 0xe87   :  { %v2099_v4 = vsub.f32 %v2091_v47, %v2095_v52  ;;  %v2100_v26 = vsub.f32 %v2092_v51, %v2096_v15  ;;  %v2111_v41 = vadd.f32 %v2107_v33, %v2103_v61  ;;  %v2112_v17 = vadd.f32 %v2108_v36, %v2104_v29  ;;  %v1951_v24 = vpop.permute.xlu0 %1950 }
 0xe88   :  { %v1957_v48 = vsub.f32 %v4506_v6, %v1951_v24  ;;  %v1958_v10 = vsub.f32 %v4508_v20, %v1951_v24 }
 0xe8a   :  { %v2115_v14 = vmul.f32 %v2059_v56, %v1957_v48  ;;  %v2116_v55 = vmul.f32 %v2060_v27, %v1958_v10  ;;  %v2127_v18 = vmul.f32 %v4524_v45, %v1957_v48  ;;  %v2128_v40 = vmul.f32 %v4526_v7, %v1958_v10 }
 0xe8c   :  { %v2123_v43 = vsub.f32 %v2115_v14, %v4530_v12  ;;  %v2124_v32 = vsub.f32 %v2116_v55, %v4534_v54  ;;  %v2135_v37 = vadd.f32 %v2131_v57, %v2127_v18  ;;  %v2136_v3 = vadd.f32 %v2132_v9, %v2128_v40  ;;  %v2057_v38 = vpop.permute.xlu0 %2056 }
 0xe8d   :  { %v2061_v34 = vsub.f32 %v4440_v16, %v2057_v38  ;;  %v2062_v1 = vsub.f32 %v4442_v59, %v2057_v38 }
 0xe8e   :  { %v4604_v6 = vmul.f32 %v2123_v43, %v2099_v4  ;;  %v2140_v20 = vmul.f32 %v2124_v32, %v2100_v26  ;;  %v4606_v13 = vmul.f32 %v2135_v37, %v2111_v41  ;;  %v2144_v50 = vmul.f32 %v2136_v3, %v2112_v17 }
 0xe8f   :  { %v2151_v45 = vmul.f32 %v2135_v37, %v2099_v4  ;;  %v2152_v46 = vmul.f32 %v2136_v3, %v2100_v26  ;;  %v2155_v7 = vmul.f32 %v2123_v43, %v2111_v41  ;;  %v2156_v35 = vmul.f32 %v2124_v32, %v2112_v17 }
 0xe90   :  { %v2148_v54 = vsub.f32 %v2140_v20, %v2144_v50  ;;  %v2117_v56 = vmul.f32 %v2061_v34, %v4555_v2  ;;  %v2118_v16 = vmul.f32 %v2062_v1, %v4558_v42  ;;  %v2133_v11 = vmul.f32 %v2061_v34, %v4422_v49 }
 0xe91   :  { %v4612_v27 = vadd.f32 %v2155_v7, %v2151_v45  ;;  %v4614_v59 = vadd.f32 %v2156_v35, %v2152_v46  ;;  %v2134_v53 = vmul.f32 %v2062_v1, %v4424_v39 }
 0xe92   :  { %v2125_v60 = vsub.f32 %v2117_v56, %v4471_v31  ;;  %v2126_v63 = vsub.f32 %v2118_v16, %v4475_v0  ;;  %v2137_v57 = vadd.f32 %v2133_v11, %v4562_v19 }
 0xe93   :  { %5142 = vst [vmem:[#allocation14_spill] sm:$0xff] %v4612_v27  ;;  %v2138_v9 = vadd.f32 %v2134_v53, %v4566_v22 }
 0xe94   :  { %v4623_v2 = vmul.f32 %v2125_v60, %v4545_v5  ;;  %v2142_v42 = vmul.f32 %v2126_v63, %v4548_v44  ;;  %v2157_v23 = vmul.f32 %v2125_v60, %v4550_v58  ;;  %v2158_v8 = vmul.f32 %v2126_v63, %v4552_v28 }
 0xe95   :  { %v4629_v49 = vmul.f32 %v2137_v57, %v4550_v58  ;;  %v2146_v39 = vmul.f32 %v2138_v9, %v4552_v28  ;;  %v2153_v31 = vmul.f32 %v2137_v57, %v4545_v5  ;;  %v2154_v0 = vmul.f32 %v2138_v9, %v4548_v44 }
 0xe97   :  { %v2150_v22 = vsub.f32 %v2142_v42, %v2146_v39  ;;  %v4636_v30 = vadd.f32 %v2157_v23, %v2153_v31  ;;  %v4638_v25 = vadd.f32 %v2158_v8, %v2154_v0 }
 0xe99   :  { %5143 = vst [vmem:[#allocation15_spill] sm:$0xff] %v4636_v30 }
 0xe9a   :  { %3820 = dma.done.wait [#allocation3], 8192 }
 0xe9b   :  { %3821 = vsyncadd [#allocation3], 4294959104  ;;  %v2232_v62 = vpack.c.bf16 %v2150_v22, %v2148_v54  ;;  %v4640_v58 = vld [vmem:[#allocation2 + $0xe4] ss:$16 sps:$4 sm:$0xff]   ;;  %v4642_v28 = vld [vmem:[#allocation2 + $0xec] ss:$16 sps:$4 sm:$0xff]  }
 0xe9c   :  { %2555 = vmatprep.subr.bf16.mxu0 %v4640_v58  ;;  %v4645_v5 = vld [vmem:[#allocation2 + $0xe0] ss:$16 sps:$4 sm:$0xff]   ;;  %v4647_v44 = vld [vmem:[#allocation2 + $0xe8] ss:$16 sps:$4 sm:$0xff]   ;;  %2598 = vmatprep.subr.bf16.mxu1 %v4642_v28  ;;  %v4650_v52 = vld [vmem:[#allocation2 + $0xc4] ss:$16 sps:$4 sm:$0xff]  }
 0xe9d   :  { %2587 = vmatprep.mubr.bf16.mxu0 %v2232_v62  ;;  %2630 = vmatprep.mubr.bf16.mxu1 %v2232_v62  ;;  %v4654_v15 = vld [vmem:[#allocation2 + $0xcc] ss:$16 sps:$4 sm:$0xff]   ;;  %v4656_v61 = vld [vmem:[#allocation2 + $0xc0] ss:$16 sps:$4 sm:$0xff]   ;;  %v4659_v29 = vld [vmem:[#allocation2 + $0xc8] ss:$16 sps:$4 sm:$0xff]  }
 0xe9e   :  { %2556 = vmatpush1.bf16.msra.mxu0 %v4645_v5  ;;  %2599 = vmatpush1.bf16.msra.mxu1 %v4647_v44  ;;  %v4662_v47 = vld [vmem:[#allocation2 + $0xa4] ss:$16 sps:$4 sm:$0xff]   ;;  %v4664_v51 = vld [vmem:[#allocation2 + $0xac] ss:$16 sps:$4 sm:$0xff]   ;;  %v4666_v33 = vld [vmem:[#allocation2 + $0xa0] ss:$16 sps:$4 sm:$0xff]  }
 0xe9f   :  { %2557 = vmatprep.subr.bf16.mxu0 %v4650_v52  ;;  %2600 = vmatprep.subr.bf16.mxu1 %v4654_v15  ;;  %v4668_v36 = vld [vmem:[#allocation2 + $0xa8] ss:$16 sps:$4 sm:$0xff]   ;;  %v4672_v4 = vld [vmem:[#allocation2 + $0x84] ss:$16 sps:$4 sm:$0xff]   ;;  %v4676_v26 = vld [vmem:[#allocation2 + $0x8c] ss:$16 sps:$4 sm:$0xff]  }
 0xea0   :  { %v4678_v41 = vld [vmem:[#allocation2 + $0x80] ss:$16 sps:$4 sm:$0xff]   ;;  %v4682_v17 = vld [vmem:[#allocation2 + $0x88] ss:$16 sps:$4 sm:$0xff]   ;;  %v4684_v24 = vld [vmem:[#allocation2 + $0x64] ss:$16 sps:$4 sm:$0xff]  }
 0xea1   :  { %v4688_v48 = vld [vmem:[#allocation2 + $0x6c] ss:$16 sps:$4 sm:$0xff]   ;;  %v4690_v10 = vld [vmem:[#allocation2 + $0x60] ss:$16 sps:$4 sm:$0xff]   ;;  %v4692_v14 = vld [vmem:[#allocation2 + $0x68] ss:$16 sps:$4 sm:$0xff]  }
 0xea2   :  { %2558 = vmatpush1.bf16.msra.mxu0 %v4656_v61  ;;  %2601 = vmatpush1.bf16.msra.mxu1 %v4659_v29  ;;  %v4696_v55 = vld [vmem:[#allocation2 + $0x44] ss:$16 sps:$4 sm:$0xff]   ;;  %v4700_v18 = vld [vmem:[#allocation2 + $0x4c] ss:$16 sps:$4 sm:$0xff]   ;;  %v4702_v40 = vld [vmem:[#allocation2 + $0x40] ss:$16 sps:$4 sm:$0xff]  }
 0xea3   :  { %2559 = vmatprep.subr.bf16.mxu0 %v4662_v47  ;;  %2602 = vmatprep.subr.bf16.mxu1 %v4664_v51  ;;  %v4706_v43 = vld [vmem:[#allocation2 + $0x48] ss:$16 sps:$4 sm:$0xff]   ;;  %v4708_v32 = vld [vmem:[#allocation2 + $0x24] ss:$16 sps:$4 sm:$0xff]   ;;  %v4712_v37 = vld [vmem:[#allocation2 + $0x2c] ss:$16 sps:$4 sm:$0xff]  }
 0xea4   :  { %v4714_v3 = vld [vmem:[#allocation2 + $0x20] ss:$16 sps:$4 sm:$0xff]   ;;  %v4716_v38 = vld [vmem:[#allocation2 + $0x28] ss:$16 sps:$4 sm:$0xff]   ;;  %v4720_v34 = vld [vmem:[#allocation2 + $0x4] ss:$16 sps:$4 sm:$0xff]  }
 0xea5   :  { %v4724_v1 = vld [vmem:[#allocation2 + $0xc] ss:$16 sps:$4 sm:$0xff]   ;;  %v4726_v20 = vld [vmem:[#allocation2] ss:$16 sps:$4 sm:$0xff]   ;;  %v4730_v50 = vld [vmem:[#allocation2 + $0x8] ss:$16 sps:$4 sm:$0xff]  }
 0xea6   :  { %2560 = vmatpush1.bf16.msra.mxu0 %v4666_v33  ;;  %2603 = vmatpush1.bf16.msra.mxu1 %v4668_v36  ;;  %v4732_v45 = vld [vmem:[#allocation2 + $0x1e4] ss:$16 sps:$4 sm:$0xff]   ;;  %v4736_v46 = vld [vmem:[#allocation2 + $0x1ec] ss:$16 sps:$4 sm:$0xff]   ;;  %v4738_v7 = vld [vmem:[#allocation2 + $0x1e0] ss:$16 sps:$4 sm:$0xff]  }
 0xea7   :  { %2561 = vmatprep.subr.bf16.mxu0 %v4672_v4  ;;  %2604 = vmatprep.subr.bf16.mxu1 %v4676_v26  ;;  %v4740_v35 = vld [vmem:[#allocation2 + $0x1e8] ss:$16 sps:$4 sm:$0xff]   ;;  %v4744_v54 = vld [vmem:[#allocation2 + $0x1c4] ss:$16 sps:$4 sm:$0xff]   ;;  %v4748_v56 = vld [vmem:[#allocation2 + $0x1cc] ss:$16 sps:$4 sm:$0xff]  }
 0xea8   :  { %v4750_v16 = vld [vmem:[#allocation2 + $0x1c0] ss:$16 sps:$4 sm:$0xff]   ;;  %v4754_v11 = vld [vmem:[#allocation2 + $0x1c8] ss:$16 sps:$4 sm:$0xff]   ;;  %v4756_v53 = vld [vmem:[#allocation2 + $0x1a4] ss:$16 sps:$4 sm:$0xff]  }
 0xea9   :  { %v4760_v60 = vld [vmem:[#allocation2 + $0x1ac] ss:$16 sps:$4 sm:$0xff]   ;;  %v4762_v63 = vld [vmem:[#allocation2 + $0x1a0] ss:$16 sps:$4 sm:$0xff]   ;;  %v4764_v57 = vld [vmem:[#allocation2 + $0x1a8] ss:$16 sps:$4 sm:$0xff]  }
 0xeaa   :  { %2562 = vmatpush1.bf16.msra.mxu0 %v4678_v41  ;;  %2605 = vmatpush1.bf16.msra.mxu1 %v4682_v17  ;;  %v4768_v9 = vld [vmem:[#allocation2 + $0x184] ss:$16 sps:$4 sm:$0xff]   ;;  %v4772_v42 = vld [vmem:[#allocation2 + $0x18c] ss:$16 sps:$4 sm:$0xff]   ;;  %v4776_v23 = vld [vmem:[#allocation2 + $0x180] ss:$16 sps:$4 sm:$0xff]  }
 0xeab   :  { %2563 = vmatprep.subr.bf16.mxu0 %v4684_v24  ;;  %2606 = vmatprep.subr.bf16.mxu1 %v4688_v48  ;;  %v4778_v8 = vld [vmem:[#allocation2 + $0x188] ss:$16 sps:$4 sm:$0xff]   ;;  %v4782_v39 = vld [vmem:[#allocation2 + $0x164] ss:$16 sps:$4 sm:$0xff]   ;;  %v4784_v31 = vld [vmem:[#allocation2 + $0x16c] ss:$16 sps:$4 sm:$0xff]  }
 0xeac   :  { %5144 = vst [vmem:[#allocation16_spill] sm:$0xff] %v4784_v31  ;;  %v4788_v0 = vld [vmem:[#allocation2 + $0x160] ss:$16 sps:$4 sm:$0xff]   ;;  %v4790_v22 = vld [vmem:[#allocation2 + $0x168] ss:$16 sps:$4 sm:$0xff]   ;;  %s3855_s5 = smov [#allocation4]  }
 0xead   :  { %5145 = vst [vmem:[#allocation17_spill] sm:$0xff] %v4788_v0  ;;  %5146 = vst [vmem:[#allocation18_spill] sm:$0xff] %v4790_v22  ;;  %v4794_v62 = vld [vmem:[#allocation2 + $0x144] ss:$16 sps:$4 sm:$0xff]   ;;  %v4796_v19 = vld [vmem:[#allocation2 + $0x14c] ss:$16 sps:$4 sm:$0xff]  }
 0xeae   :  { %2564 = vmatpush1.bf16.msra.mxu0 %v4690_v10  ;;  %2607 = vmatpush1.bf16.msra.mxu1 %v4692_v14  ;;  %5147 = vst [vmem:[#allocation19_spill] sm:$0xff] %v4794_v62  ;;  %5148 = vst [vmem:[#allocation20_spill] sm:$0xff] %v4796_v19  ;;  %v4800_v12 = vld [vmem:[#allocation2 + $0x140] ss:$16 sps:$4 sm:$0xff]   ;;  %v4802_v21 = vld [vmem:[#allocation2 + $0x148] ss:$16 sps:$4 sm:$0xff]  }
 0xeaf   :  { %2565 = vmatprep.subr.bf16.mxu0 %v4696_v55  ;;  %2608 = vmatprep.subr.bf16.mxu1 %v4700_v18  ;;  %5149 = vst [vmem:[#allocation21_spill] sm:$0xff] %v4800_v12  ;;  %5150 = vst [vmem:[#allocation22_spill] sm:$0xff] %v4802_v21  ;;  %v4806_v30 = vld [vmem:[#allocation2 + $0x124] ss:$16 sps:$4 sm:$0xff]   ;;  %v4808_v27 = vld [vmem:[#allocation2 + $0x12c] ss:$16 sps:$4 sm:$0xff]  }
 0xeb0   :  { %5151 = vst [vmem:[#allocation23_spill] sm:$0xff] %v4806_v30  ;;  %5152 = vst [vmem:[#allocation24_spill] sm:$0xff] %v4808_v27  ;;  %s3148_s6 = sshll.u32 %s3855_s5, 4  ;;  %s3149_s6 = int_to_ptr.vmem [resolvable:$true] %s3148_s6 }
 0xeb1   :  { %s3800_s7 = scalar_lea.vmem %s3149_s6, 256  ;;  %p3805_p6 = scmp.lt.s32.totalorder %s3149_s6, %s3149_s6 }
 0xeb2   :  { %2566 = vmatpush1.bf16.msra.mxu0 %v4702_v40  ;;  %2609 = vmatpush1.bf16.msra.mxu1 %v4706_v43  ;;  %p3801_p5 = scmp.ne.s32.totalorder %s3149_s6, %s3800_s7  ;;  %p3806_p7 = scmp.lt.s32.totalorder %s3800_s7, %s3800_s7 }
 0xeb3   :  { %2567 = vmatprep.subr.bf16.mxu0 %v4708_v32  ;;  %2610 = vmatprep.subr.bf16.mxu1 %v4712_v37 }
 0xeb4   :  { %p3807_p8 = por %p3806_p7, %p3805_p6 }
 0xeb6   :  { %2568 = vmatpush1.bf16.msra.mxu0 %v4714_v3  ;;  %2611 = vmatpush1.bf16.msra.mxu1 %v4716_v38  ;;  %p3808_p9 = pnand %p3807_p8, %p3801_p5 }
 0xeb7   :  { %2569 = vmatprep.subr.bf16.mxu0 %v4720_v34  ;;  %2612 = vmatprep.subr.bf16.mxu1 %v4724_v1 }
 0xeba   :  { %2570 = vmatpush1.bf16.msra.mxu0 %v4726_v20  ;;  %2613 = vmatpush1.bf16.msra.mxu1 %v4730_v50 }
 0xebb   :  { %2571 = vmatprep.subr.bf16.mxu0 %v4732_v45  ;;  %2614 = vmatprep.subr.bf16.mxu1 %v4736_v46 }
 0xebe   :  { %2572 = vmatpush2.bf16.msra.mxu0 %v4738_v7  ;;  %2615 = vmatpush2.bf16.msra.mxu1 %v4740_v35 }
 0xebf   :  { %2573 = vmatprep.subr.bf16.mxu0 %v4744_v54  ;;  %2616 = vmatprep.subr.bf16.mxu1 %v4748_v56 }
 0xec2   :  { %2574 = vmatpush2.bf16.msra.mxu0 %v4750_v16  ;;  %2617 = vmatpush2.bf16.msra.mxu1 %v4754_v11 }
 0xec3   :  { %2575 = vmatprep.subr.bf16.mxu0 %v4756_v53  ;;  %2618 = vmatprep.subr.bf16.mxu1 %v4760_v60 }
 0xec6   :  { %2576 = vmatpush2.bf16.msra.mxu0 %v4762_v63  ;;  %2619 = vmatpush2.bf16.msra.mxu1 %v4764_v57 }
 0xec7   :  { %2577 = vmatprep.subr.bf16.mxu0 %v4768_v9  ;;  %2620 = vmatprep.subr.bf16.mxu1 %v4772_v42 }
 0xeca   :  { %2578 = vmatpush2.bf16.msra.mxu0 %v4776_v23  ;;  %2621 = vmatpush2.bf16.msra.mxu1 %v4778_v8 }
 0xecb   :  { %2579 = vmatprep.subr.bf16.mxu0 %v4782_v39  ;;  %2622 = vmatprep.subr.bf16.mxu1 %v4784_v31  ;;  %v4812_v31 = vld [vmem:[#allocation2 + $0x120] ss:$16 sps:$4 sm:$0xff]  }
 0xece   :  { %2580 = vmatpush2.bf16.msra.mxu0 %v4788_v0  ;;  %2623 = vmatpush2.bf16.msra.mxu1 %v4790_v22  ;;  %v4814_v0 = vld [vmem:[#allocation2 + $0x128] ss:$16 sps:$4 sm:$0xff]   ;;  %v4818_v22 = vld [vmem:[#allocation2 + $0x104] ss:$16 sps:$4 sm:$0xff]  }
 0xecf   :  { %2581 = vmatprep.subr.bf16.mxu0 %v4794_v62  ;;  %2624 = vmatprep.subr.bf16.mxu1 %v4796_v19  ;;  %5153 = vst [vmem:[#allocation25_spill] sm:$0xff] %v4818_v22  ;;  %v4820_v62 = vld [vmem:[#allocation2 + $0x10c] ss:$16 sps:$4 sm:$0xff]   ;;  %v4824_v19 = vld [vmem:[#allocation2 + $0x100] ss:$16 sps:$4 sm:$0xff]  }
 0xed2   :  { %2582 = vmatpush2.bf16.msra.mxu0 %v4800_v12  ;;  %2625 = vmatpush2.bf16.msra.mxu1 %v4802_v21  ;;  %v4826_v12 = vld [vmem:[#allocation2 + $0x108] ss:$16 sps:$4 sm:$0xff]  }
 0xed3   :  { %2583 = vmatprep.subr.bf16.mxu0 %v4806_v30  ;;  %2626 = vmatprep.subr.bf16.mxu1 %v4808_v27  ;;  %v5154_v30 = vsub.f32 %v4604_v6, %v4606_v13  ;;  %v5155_v27 = vsub.f32 %v4623_v2, %v4629_v49  ;;  %v5157_v6 = vld [vmem:[#allocation17_spill] sm:$0xff]  ;;  %v5158_v13 = vld [vmem:[#allocation18_spill] sm:$0xff] }
 0xed4   :  { %v5161_v2 = vld [vmem:[#allocation21_spill] sm:$0xff]  ;;  %v5162_v49 = vld [vmem:[#allocation22_spill] sm:$0xff] }
 0xed5   :  { %v2231_v21 = vpack.c.bf16 %v5155_v27, %v5154_v30  ;;  %v5159_v27 = vld [vmem:[#allocation19_spill] sm:$0xff] }
 0xed6   :  { %2584 = vmatpush2.bf16.msra.mxu0 %v4812_v31  ;;  %2627 = vmatpush2.bf16.msra.mxu1 %v4814_v0  ;;  %v5163_v30 = vld [vmem:[#allocation23_spill] sm:$0xff] }
 0xed7   :  { %2585 = vmatprep.subr.bf16.mxu0 %v4818_v22  ;;  %2628 = vmatprep.subr.bf16.mxu1 %v4820_v62  ;;  %v2234_v22 = vpack.c.bf16 %v4638_v25, %v4614_v59  ;;  %v5160_v59 = vld [vmem:[#allocation20_spill] sm:$0xff] }
 0xed8   :  { %v5164_v25 = vld [vmem:[#allocation24_spill] sm:$0xff] }
 0xeda   :  { %2586 = vmatpush2.bf16.msra.mxu0 %v4824_v19  ;;  %2629 = vmatpush2.bf16.msra.mxu1 %v4826_v12 }
 0xedb   :  { %2641 = vmatprep.subr.bf16.mxu0 %v4640_v58  ;;  %2684 = vmatprep.subr.bf16.mxu1 %v4642_v28  ;;  %v5165_v58 = vld [vmem:[#allocation25_spill] sm:$0xff]  ;;  %v5166_v28 = vld [vmem:[#allocation14_spill] sm:$0xff] }
 0xedd   :  { %2588 = vmatmul.mubr.bf16.vlgmr.msra.gmra.mxu0 %v2231_v21  ;;  %2631 = vmatmul.mubr.bf16.vlgmr.msra.gmra.mxu1 %v2231_v21  ;;  %v5156_v21 = vld [vmem:[#allocation16_spill] sm:$0xff] }
 0xede   :  { %2642 = vmatpush1.bf16.msra.mxu0 %v4645_v5  ;;  %2685 = vmatpush1.bf16.msra.mxu1 %v4647_v44  ;;  %v5167_v5 = vld [vmem:[#allocation15_spill] sm:$0xff] }
 0xedf   :  { %2643 = vmatprep.subr.bf16.mxu0 %v4650_v52  ;;  %2686 = vmatprep.subr.bf16.mxu1 %v4654_v15  ;;  %v2233_v44 = vpack.c.bf16 %v5167_v5, %v5166_v28  ;;  %v2778_v52 = vld [vmem:[%s5101_s2 + $0x178] sm:$0xff] }
 0xee0   :  { %2673 = vmatprep.mubr.bf16.mxu0 %v2234_v22  ;;  %2716 = vmatprep.mubr.bf16.mxu1 %v2234_v22  ;;  %v2762_v15 = vld [vmem:[%s5101_s2 + $0xf8] sm:$0xff] }
 0xee2   :  { %2644 = vmatpush1.bf16.msra.mxu0 %v4656_v61  ;;  %2687 = vmatpush1.bf16.msra.mxu1 %v4659_v29  ;;  %v2777_v61 = vld [vmem:[%s5101_s2 + $0x170] sm:$0xff]  ;;  %v2760_v29 = vld [vmem:[%s5101_s2 + $0xe8] sm:$0xff] }
 0xee3   :  { %2645 = vmatprep.subr.bf16.mxu0 %v4662_v47  ;;  %2688 = vmatprep.subr.bf16.mxu1 %v4664_v51  ;;  %v2775_v47 = vld [vmem:[%s5101_s2 + $0x160] sm:$0xff] }
 0xee4   :  { %v2759_v51 = vld [vmem:[%s5101_s2 + $0xe0] sm:$0xff] }
 0xee6   :  { %2646 = vmatpush1.bf16.msra.mxu0 %v4666_v33  ;;  %2689 = vmatpush1.bf16.msra.mxu1 %v4668_v36  ;;  %v2774_v33 = vld [vmem:[%s5101_s2 + $0x158] sm:$0xff] }
 0xee7   :  { %2647 = vmatprep.subr.bf16.mxu0 %v4672_v4  ;;  %2690 = vmatprep.subr.bf16.mxu1 %v4676_v26  ;;  %v2758_v36 = vld [vmem:[%s5101_s2 + $0xd8] sm:$0xff]  ;;  %v2773_v4 = vld [vmem:[%s5101_s2 + $0x150] sm:$0xff] }
 0xee8   :  { %v2757_v26 = vld [vmem:[%s5101_s2 + $0xd0] sm:$0xff] }
 0xeea   :  { %2648 = vmatpush1.bf16.msra.mxu0 %v4678_v41  ;;  %2691 = vmatpush1.bf16.msra.mxu1 %v4682_v17  ;;  %v2772_v41 = vld [vmem:[%s5101_s2 + $0x148] sm:$0xff] }
 0xeeb   :  { %2649 = vmatprep.subr.bf16.mxu0 %v4684_v24  ;;  %2692 = vmatprep.subr.bf16.mxu1 %v4688_v48  ;;  %v2756_v17 = vld [vmem:[%s5101_s2 + $0xc8] sm:$0xff]  ;;  %v2771_v24 = vld [vmem:[%s5101_s2 + $0x140] sm:$0xff] }
 0xeec   :  { %v2755_v48 = vld [vmem:[%s5101_s2 + $0xc0] sm:$0xff] }
 0xeee   :  { %2650 = vmatpush1.bf16.msra.mxu0 %v4690_v10  ;;  %2693 = vmatpush1.bf16.msra.mxu1 %v4692_v14  ;;  %v2770_v10 = vld [vmem:[%s5101_s2 + $0x138] sm:$0xff] }
 0xeef   :  { %2651 = vmatprep.subr.bf16.mxu0 %v4696_v55  ;;  %2694 = vmatprep.subr.bf16.mxu1 %v4700_v18  ;;  %v2754_v14 = vld [vmem:[%s5101_s2 + $0xb8] sm:$0xff]  ;;  %v2769_v55 = vld [vmem:[%s5101_s2 + $0x130] sm:$0xff] }
 0xef0   :  { %v2753_v18 = vld [vmem:[%s5101_s2 + $0xb0] sm:$0xff] }
 0xef2   :  { %2652 = vmatpush1.bf16.msra.mxu0 %v4702_v40  ;;  %2695 = vmatpush1.bf16.msra.mxu1 %v4706_v43  ;;  %v2768_v40 = vld [vmem:[%s5101_s2 + $0x128] sm:$0xff] }
 0xef3   :  { %2653 = vmatprep.subr.bf16.mxu0 %v4708_v32  ;;  %2696 = vmatprep.subr.bf16.mxu1 %v4712_v37  ;;  %v2752_v43 = vld [vmem:[%s5101_s2 + $0xa8] sm:$0xff]  ;;  %v2767_v32 = vld [vmem:[%s5101_s2 + $0x120] sm:$0xff] }
 0xef4   :  { %v2751_v37 = vld [vmem:[%s5101_s2 + $0xa0] sm:$0xff] }
 0xef6   :  { %2654 = vmatpush1.bf16.msra.mxu0 %v4714_v3  ;;  %2697 = vmatpush1.bf16.msra.mxu1 %v4716_v38  ;;  %v2766_v3 = vld [vmem:[%s5101_s2 + $0x118] sm:$0xff] }
 0xef7   :  { %2655 = vmatprep.subr.bf16.mxu0 %v4720_v34  ;;  %2698 = vmatprep.subr.bf16.mxu1 %v4724_v1  ;;  %v2750_v38 = vld [vmem:[%s5101_s2 + $0x98] sm:$0xff]  ;;  %v2765_v34 = vld [vmem:[%s5101_s2 + $0x110] sm:$0xff] }
 0xef8   :  { %v2749_v1 = vld [vmem:[%s5101_s2 + $0x90] sm:$0xff] }
 0xefa   :  { %2656 = vmatpush1.bf16.msra.mxu0 %v4726_v20  ;;  %2699 = vmatpush1.bf16.msra.mxu1 %v4730_v50  ;;  %v2764_v20 = vld [vmem:[%s5101_s2 + $0x108] sm:$0xff] }
 0xefb   :  { %2657 = vmatprep.subr.bf16.mxu0 %v4732_v45  ;;  %2700 = vmatprep.subr.bf16.mxu1 %v4736_v46  ;;  %v2748_v50 = vld [vmem:[%s5101_s2 + $0x88] sm:$0xff]  ;;  %v2763_v45 = vld [vmem:[%s5101_s2 + $0x100] sm:$0xff] }
 0xefc   :  { %v2747_v46 = vld [vmem:[%s5101_s2 + $0x80] sm:$0xff] }
 0xefe   :  { %2658 = vmatpush2.bf16.msra.mxu0 %v4738_v7  ;;  %2701 = vmatpush2.bf16.msra.mxu1 %v4740_v35 }
 0xeff   :  { %2659 = vmatprep.subr.bf16.mxu0 %v4744_v54  ;;  %2702 = vmatprep.subr.bf16.mxu1 %v4748_v56 }
 0xf02   :  { %2660 = vmatpush2.bf16.msra.mxu0 %v4750_v16  ;;  %2703 = vmatpush2.bf16.msra.mxu1 %v4754_v11 }
 0xf03   :  { %2661 = vmatprep.subr.bf16.mxu0 %v4756_v53  ;;  %2704 = vmatprep.subr.bf16.mxu1 %v4760_v60 }
 0xf06   :  { %2662 = vmatpush2.bf16.msra.mxu0 %v4762_v63  ;;  %2705 = vmatpush2.bf16.msra.mxu1 %v4764_v57 }
 0xf07   :  { %2663 = vmatprep.subr.bf16.mxu0 %v4768_v9  ;;  %2706 = vmatprep.subr.bf16.mxu1 %v4772_v42 }
 0xf0a   :  { %2664 = vmatpush2.bf16.msra.mxu0 %v4776_v23  ;;  %2707 = vmatpush2.bf16.msra.mxu1 %v4778_v8 }
 0xf0b   :  { %2665 = vmatprep.subr.bf16.mxu0 %v4782_v39  ;;  %2708 = vmatprep.subr.bf16.mxu1 %v5156_v21 }
 0xf0e   :  { %2666 = vmatpush2.bf16.msra.mxu0 %v5157_v6  ;;  %2709 = vmatpush2.bf16.msra.mxu1 %v5158_v13 }
 0xf0f   :  { %2667 = vmatprep.subr.bf16.mxu0 %v5159_v27  ;;  %2710 = vmatprep.subr.bf16.mxu1 %v5160_v59 }
 0xf12   :  { %2668 = vmatpush2.bf16.msra.mxu0 %v5161_v2  ;;  %2711 = vmatpush2.bf16.msra.mxu1 %v5162_v49 }
 0xf13   :  { %2669 = vmatprep.subr.bf16.mxu0 %v5163_v30  ;;  %2712 = vmatprep.subr.bf16.mxu1 %v5164_v25 }
 0xf16   :  { %2670 = vmatpush2.bf16.msra.mxu0 %v4812_v31  ;;  %2713 = vmatpush2.bf16.msra.mxu1 %v4814_v0 }
 0xf17   :  { %2671 = vmatprep.subr.bf16.mxu0 %v5165_v58  ;;  %2714 = vmatprep.subr.bf16.mxu1 %v4820_v62 }
 0xf1a   :  { %2672 = vmatpush2.bf16.msra.mxu0 %v4824_v19  ;;  %2715 = vmatpush2.bf16.msra.mxu1 %v4826_v12  ;;  %v2761_v19 = vld [vmem:[%s5101_s2 + $0xf0] sm:$0xff]  ;;  %v2776_v12 = vld [vmem:[%s5101_s2 + $0x168] sm:$0xff] }
 0xf1b   :  { %3340 = vmatprep.subr.mxu0 %v2778_v52 }
 0xf1d   :  { %2674 = vmatmul.mubr.bf16.vlgmr.msra.gmra.mxu0 %v2233_v44  ;;  %2717 = vmatmul.mubr.bf16.vlgmr.msra.gmra.mxu1 %v2233_v44 }
 0xf1e   :  { %3341 = vmatpush3.msra.mxu0 %v2762_v15 }
 0xf1f   :  { %3342 = vmatprep.subr.mxu0 %v2777_v61 }
 0xf20   :  { %3343 = vmatpush3.msra.mxu0 %v2761_v19 }
 0xf21   :  { %3344 = vmatprep.subr.mxu0 %v2776_v12  ;;  %v2864_v12 = vld [vmem:[%s5100_s1 + $0x78] sm:$0xff] }
 0xf22   :  { %3345 = vmatpush3.msra.mxu0 %v2760_v29  ;;  %3491 = vmatprep.subr.mxu1 %v2864_v12  ;;  %v2863_v29 = vld [vmem:[%s5100_s1 + $0x70] sm:$0xff] }
 0xf23   :  { %3346 = vmatprep.subr.mxu0 %v2775_v47  ;;  %3492 = vmatpush3.msra.mxu1 %v2864_v12  ;;  %v2862_v47 = vld [vmem:[%s5100_s1 + $0x68] sm:$0xff] }
 0xf24   :  { %3347 = vmatpush3.msra.mxu0 %v2759_v51  ;;  %3493 = vmatprep.subr.mxu1 %v2863_v29  ;;  %v2861_v51 = vld [vmem:[%s5100_s1 + $0x60] sm:$0xff] }
 0xf25   :  { %3348 = vmatprep.subr.mxu0 %v2774_v33  ;;  %3494 = vmatpush3.msra.mxu1 %v2863_v29 }
 0xf26   :  { %3349 = vmatpush3.msra.mxu0 %v2758_v36  ;;  %3495 = vmatprep.subr.mxu1 %v2862_v47  ;;  %v3282_v36 = vld [vmem:[%s5100_s1 + $0x97] ss:$0 sm:$0xff] }
 0xf27   :  { %3350 = vmatprep.subr.mxu0 %v2773_v4  ;;  %3496 = vmatpush3.msra.mxu1 %v2862_v47 }
 0xf28   :  { %3351 = vmatpush3.msra.mxu0 %v2757_v26  ;;  %3497 = vmatprep.subr.mxu1 %v2861_v51 }
 0xf29   :  { %3352 = vmatprep.subr.mxu0 %v2772_v41  ;;  %3498 = vmatpush3.msra.mxu1 %v2861_v51 }
 0xf2a   :  { %3353 = vmatpush3.msra.mxu0 %v2756_v17 }
 0xf2b   :  { %3354 = vmatprep.subr.mxu0 %v2771_v24 }
 0xf2c   :  { %3355 = vmatpush3.msra.mxu0 %v2755_v48  ;;  %v5168_v48 = vld [vmem:[#allocation12_spill] sm:$0xff] }
 0xf2d   :  { %3356 = vmatprep.subr.mxu0 %v2770_v10 }
 0xf2e   :  { %3357 = vmatpush3.msra.mxu0 %v2754_v14 }
 0xf2f   :  { %3358 = vmatprep.subr.mxu0 %v2769_v55 }
 0xf30   :  { %3359 = vmatpush3.msra.mxu0 %v2753_v18  ;;  %v5169_v18 = vld [vmem:[#allocation13_spill] sm:$0xff] }
 0xf31   :  { %3360 = vmatprep.subr.mxu0 %v2768_v40 }
 0xf32   :  { %3361 = vmatpush3.msra.mxu0 %v2752_v43  ;;  %v3018_v43 = vld [vmem:[%s5101_s2 + $0x78] sm:$0xff] }
 0xf33   :  { %3362 = vmatprep.subr.mxu0 %v2767_v32  ;;  %3502 = vmatprep.subr.mxu1 %v3018_v43  ;;  %v3017_v32 = vld [vmem:[%s5101_s2 + $0x70] sm:$0xff] }
 0xf34   :  { %3363 = vmatpush3.msra.mxu0 %v2751_v37  ;;  %v3016_v37 = vld [vmem:[%s5101_s2 + $0x68] sm:$0xff] }
 0xf35   :  { %3364 = vmatprep.subr.mxu0 %v2766_v3  ;;  %v3015_v3 = vld [vmem:[%s5101_s2 + $0x60] sm:$0xff] }
 0xf36   :  { %3365 = vmatpush3.msra.mxu0 %v2750_v38  ;;  %v3014_v38 = vld [vmem:[%s5101_s2 + $0x58] sm:$0xff] }
 0xf37   :  { %3366 = vmatprep.subr.mxu0 %v2765_v34  ;;  %v3013_v34 = vld [vmem:[%s5101_s2 + $0x50] sm:$0xff] }
 0xf38   :  { %3367 = vmatpush3.msra.mxu0 %v2749_v1  ;;  %v3012_v1 = vld [vmem:[%s5101_s2 + $0x48] sm:$0xff] }
 0xf39   :  { %3368 = vmatprep.subr.mxu0 %v2764_v20  ;;  %v3011_v20 = vld [vmem:[%s5101_s2 + $0x40] sm:$0xff] }
 0xf3a   :  { %3369 = vmatpush3.msra.mxu0 %v2748_v50  ;;  %v3010_v50 = vld [vmem:[%s5101_s2 + $0x38] sm:$0xff] }
 0xf3b   :  { %3370 = vmatprep.subr.mxu0 %v2763_v45  ;;  %v3009_v45 = vld [vmem:[%s5101_s2 + $0x30] sm:$0xff] }
 0xf3c   :  { %3371 = vmatpush3.msra.mxu0 %v2747_v46  ;;  %v3008_v46 = vld [vmem:[%s5101_s2 + $0x28] sm:$0xff] }
 0xf9d   :  { %v2589_v7 = vpop.f32.mrf.mxu0  ;;  %v2632_v35 = vpop.f32.mrf.mxu1 }
 0xf9f   :  { %v2591_v54 = vpop.f32.mrf.mxu0  ;;  %v2634_v56 = vpop.f32.mrf.mxu1 }
 0xfa1   :  { %v2593_v16 = vpop.f32.mrf.mxu0  ;;  %v2636_v11 = vpop.f32.mrf.mxu1 }
 0xfa3   :  { %v2595_v53 = vpop.f32.mrf.mxu0  ;;  %v2638_v60 = vpop.f32.mrf.mxu1 }
 0xfdd   :  { %v2675_v63 = vpop.f32.mrf.mxu0  ;;  %v2718_v57 = vpop.f32.mrf.mxu1 }
 0xfde   :  { %v2731_v9 = vadd.f32 %v2675_v63, %v2632_v35  ;;  %v2727_v42 = vsub.f32 %v2589_v7, %v2718_v57  ;;  %v3007_v7 = vld [vmem:[%s5101_s2 + $0x20] sm:$0xff]  ;;  %v3006_v35 = vld [vmem:[%s5101_s2 + $0x18] sm:$0xff] }
 0xfdf   :  { %v2677_v23 = vpop.f32.mrf.mxu0  ;;  %v2720_v8 = vpop.f32.mrf.mxu1 }
 0xfe0   :  { %v2732_v39 = vadd.f32 %v2677_v23, %v2634_v56  ;;  %v2728_v31 = vsub.f32 %v2591_v54, %v2720_v8  ;;  %v2739_v0 = vmul.f32 %v2731_v9, %v2731_v9  ;;  %v2735_v22 = vmul.f32 %v2727_v42, %v2727_v42  ;;  %v3005_v54 = vld [vmem:[%s5101_s2 + $0x10] sm:$0xff]  ;;  %v3004_v56 = vld [vmem:[%s5101_s2 + $0x8] sm:$0xff] }
 0xfe1   :  { %v2679_v62 = vpop.f32.mrf.mxu0  ;;  %v2722_v21 = vpop.f32.mrf.mxu1  ;;  %v3854_v23 = vmov -1.0  }
 0xfe2   :  { %v2740_v6 = vmul.f32 %v2732_v39, %v2732_v39  ;;  %v2736_v13 = vmul.f32 %v2728_v31, %v2728_v31  ;;  %v2733_v27 = vadd.f32 %v2679_v62, %v2636_v11  ;;  %v2729_v59 = vsub.f32 %v2593_v16, %v2722_v21  ;;  %v3003_v16 = vld [vmem:[%s5101_s2] sm:$0xff]  ;;  %v3283_v11 = vld [vmem:[%s5100_s1 + $0x98] ss:$0 sm:$0xff] }
 0xfe3   :  { %v2681_v2 = vpop.f32.mrf.mxu0  ;;  %v2724_v49 = vpop.f32.mrf.mxu1  ;;  %v2743_v28 = vadd.f32 %v2739_v0, %v2735_v22 }
 0xfe4   :  { %v2744_v30 = vadd.f32 %v2740_v6, %v2736_v13  ;;  %v2734_v25 = vadd.f32 %v2681_v2, %v2638_v60  ;;  %v2730_v58 = vsub.f32 %v2595_v53, %v2724_v49  ;;  %v2741_v5 = vmul.f32 %v2733_v27, %v2733_v27 }
 0xfe5   :  { %v2737_v44 = vmul.f32 %v2729_v59, %v2729_v59 }
 0xfe6   :  { %v2742_v52 = vmul.f32 %v2734_v25, %v2734_v25  ;;  %v2738_v15 = vmul.f32 %v2730_v58, %v2730_v58  ;;  %2848 = vmatprep.mubr.f32.mxu0 %v2744_v30 }
 0xfe7   :  { %2849 = vmatmul.mubr.f32.vlgmr.msra.gmra.mxu0 %v2743_v28  ;;  %v2745_v19 = vadd.f32 %v2741_v5, %v2737_v44 }
 0xfe8   :  { %v2746_v61 = vadd.f32 %v2742_v52, %v2738_v15 }
 0xfea   :  { %2853 = vmatprep.mubr.f32.mxu0 %v2746_v61 }
 0xfeb   :  { %2854 = vmatmul.mubr.f32.gmra.mxu0 %v2745_v19 }
0x10a7   :  { %v3372_v33 = vpop.f32.mrf.mxu0 }
0x10a9   :  { %v3373_v4 = vpop.f32.mrf.mxu0 }
0x10aa   :  { %v3374_v26 = vadd.f32 %v3373_v4, %v3372_v33 }
0x10ab   :  { %v3375_v41 = vpop.f32.mrf.mxu0 }
0x10ac   :  { %v2851_v17 = vadd.f32 %v3374_v26, %v3282_v36 }
0x10ad   :  { %v3376_v24 = vpop.f32.mrf.mxu0 }
0x10ae   :  { %v5018_v10 = vadd.f32 %v2851_v17, %v5168_v48  ;;  %v3377_v14 = vadd.f32 %v3376_v24, %v3375_v41 }
0x10b0   :  { %v2856_v55 = vadd.f32 %v3377_v14, %v3282_v36  ;;  %3499 = vmatprep.mubr.msk.f32.mxu1 %vm38_vm0, %v5018_v10 }
0x10b2   :  { %v5023_v40 = vadd.f32 %v2856_v55, %v5169_v18 }
0x10b4   :  { %3500 = vmatmul.mubr.msk.f32.vlgmr.msra.gmra.mxu1 %vm38_vm0, %v5023_v40 }
0x10b5   :  { %3503 = vmatpush3.msra.mxu1 %v3018_v43 }
0x10b6   :  { %3504 = vmatprep.subr.mxu1 %v3017_v32 }
0x10b7   :  { %3505 = vmatpush3.msra.mxu1 %v3017_v32 }
0x10b8   :  { %3506 = vmatprep.subr.mxu1 %v3016_v37 }
0x10b9   :  { %3507 = vmatpush3.msra.mxu1 %v3016_v37 }
0x10ba   :  { %3508 = vmatprep.subr.mxu1 %v3015_v3 }
0x10bb   :  { %3509 = vmatpush3.msra.mxu1 %v3015_v3 }
0x10bc   :  { %3510 = vmatprep.subr.mxu1 %v3014_v38 }
0x10bd   :  { %3511 = vmatpush3.msra.mxu1 %v3014_v38 }
0x10be   :  { %3512 = vmatprep.subr.mxu1 %v3013_v34 }
0x10bf   :  { %3513 = vmatpush3.msra.mxu1 %v3013_v34 }
0x10c0   :  { %3514 = vmatprep.subr.mxu1 %v3012_v1 }
0x10c1   :  { %3515 = vmatpush3.msra.mxu1 %v3012_v1 }
0x10c2   :  { %3516 = vmatprep.subr.mxu1 %v3011_v20 }
0x10c3   :  { %3517 = vmatpush3.msra.mxu1 %v3011_v20 }
0x10c4   :  { %3518 = vmatprep.subr.mxu1 %v3010_v50 }
0x10c5   :  { %3519 = vmatpush3.msra.mxu1 %v3010_v50 }
0x10c6   :  { %3520 = vmatprep.subr.mxu1 %v3009_v45 }
0x10c7   :  { %3521 = vmatpush3.msra.mxu1 %v3009_v45 }
0x10c8   :  { %3522 = vmatprep.subr.mxu1 %v3008_v46 }
0x10c9   :  { %3523 = vmatpush3.msra.mxu1 %v3008_v46 }
0x10ca   :  { %3524 = vmatprep.subr.mxu1 %v3007_v7 }
0x10cb   :  { %3525 = vmatpush3.msra.mxu1 %v3007_v7  ;;  %v3286_v7 = vld [vmem:[%s5100_s1 + $0x99] ss:$0 sm:$0xff] }
0x10cc   :  { %3526 = vmatprep.subr.mxu1 %v3006_v35 }
0x10cd   :  { %3527 = vmatpush3.msra.mxu1 %v3006_v35 }
0x10ce   :  { %3528 = vmatprep.subr.mxu1 %v3005_v54 }
0x10cf   :  { %3529 = vmatpush3.msra.mxu1 %v3005_v54 }
0x10d0   :  { %3530 = vmatprep.subr.mxu1 %v3004_v56 }
0x10d1   :  { %3531 = vmatpush3.msra.mxu1 %v3004_v56 }
0x10d2   :  { %3532 = vmatprep.subr.mxu1 %v3003_v16 }
0x10d3   :  { %3533 = vmatpush3.msra.mxu1 %v3003_v16 }
0x1174   :  { %v3501_v53 = vpop.f32.mrf.mxu1 }
0x1175   :  { %v2948_v60 = vadd.f32 %v3501_v53, %v3283_v11 }
0x1176   :  { %v2942_v63 = vpop.f32.mrf.mxu1 }
0x1177   :  { %v2954_v57 = vmul.f32 0.70710677, %v2948_v60  ;;  %v2943_v9 = vadd.f32 %v3283_v11, %v2942_v63  ;;  %v2952_v20 = vmul.f32 0.5, %v2948_v60 }
0x1179   :  { %vm2956_vm6 = vcmp.ge.f32.partialorder %v2954_v57, 0.0  ;;  %v2953_v42 = vmul.f32 0.70710677, %v2943_v9  ;;  %v2951_v34 = vmul.f32 0.5, %v2943_v9 }
0x117a   :  { %v2958_v8 = vsel %vm2956_vm6, 1.0, %v3854_v23 }
0x117b   :  { %v2960_v39 = vmul.f32 %v2958_v8, %v2954_v57  ;;  %vm2955_vm7 = vcmp.ge.f32.partialorder %v2953_v42, 0.0 }
0x117c   :  { %v2957_v31 = vsel %vm2955_vm7, 1.0, %v3854_v23 }
0x117d   :  { %v2962_v0 = vmul.f32 0.3275911, %v2960_v39  ;;  %v2959_v22 = vmul.f32 %v2957_v31, %v2953_v42  ;;  %v2986_v13 = vsub.f32 0.0, %v2960_v39 }
0x117f   :  { %v2964_v62 = vadd.f32 1.0, %v2962_v0  ;;  %v2961_v21 = vmul.f32 0.3275911, %v2959_v22  ;;  %v2985_v27 = vsub.f32 0.0, %v2959_v22  ;;  %v2988_v59 = vmul.f32 %v2986_v13, %v2960_v39 }
0x1181   :  { %3768 = vrcp.f32 %v2964_v62  ;;  %v2963_v6 = vadd.f32 1.0, %v2961_v21  ;;  %v2987_v49 = vmul.f32 %v2985_v27, %v2959_v22  ;;  %v2991_v25 = vmul.f32 1.442695, %v2988_v59  ;;  %v3287_v59 = vld [vmem:[%s5100_s1 + $0x9a] ss:$0 sm:$0xff] }
0x1183   :  { %3770 = vrcp.f32 %v2963_v6  ;;  %v2989_v5 = vmul.f32 1.442695, %v2987_v49  ;;  %v3288_v49 = vld [vmem:[%s5100_s1 + $0x9b] ss:$0 sm:$0xff] }
0x1184   :  { %3772 = vpow2.f32 %v2991_v25 }
0x1185   :  { %3774 = vpow2.f32 %v2989_v5 }
0x118e   :  { %v3769_v2 = vpop.eup %3768 }
0x118f   :  { %v2968_v30 = vmul.f32 1.0614054, %v3769_v2 }
0x1190   :  { %v3771_v58 = vpop.eup %3770 }
0x1191   :  { %v2970_v28 = vadd.f32 -1.4531521, %v2968_v30  ;;  %v2967_v44 = vmul.f32 1.0614054, %v3771_v58  ;;  %v3773_v17 = vpop.eup %3772 }
0x1192   :  { %v3775_v55 = vpop.eup %3774 }
0x1193   :  { %v2972_v52 = vmul.f32 %v3769_v2, %v2970_v28  ;;  %v2969_v15 = vadd.f32 -1.4531521, %v2967_v44 }
0x1195   :  { %v2974_v61 = vadd.f32 1.4214138, %v2972_v52  ;;  %v2971_v19 = vmul.f32 %v3771_v58, %v2969_v15 }
0x1197   :  { %v2976_v12 = vmul.f32 %v3769_v2, %v2974_v61  ;;  %v2973_v29 = vadd.f32 1.4214138, %v2971_v19 }
0x1199   :  { %v2978_v47 = vadd.f32 -0.28449672, %v2976_v12  ;;  %v2975_v51 = vmul.f32 %v3771_v58, %v2973_v29 }
0x119b   :  { %v2980_v33 = vmul.f32 %v3769_v2, %v2978_v47  ;;  %v2977_v36 = vadd.f32 -0.28449672, %v2975_v51 }
0x119d   :  { %v2982_v4 = vadd.f32 0.2548296, %v2980_v33  ;;  %v2979_v26 = vmul.f32 %v3771_v58, %v2977_v36 }
0x119f   :  { %v2984_v41 = vmul.f32 %v3769_v2, %v2982_v4  ;;  %v2981_v24 = vadd.f32 0.2548296, %v2979_v26 }
0x11a1   :  { %v2994_v48 = vmul.f32 %v3773_v17, %v2984_v41  ;;  %v2983_v14 = vmul.f32 %v3771_v58, %v2981_v24 }
0x11a3   :  { %v2996_v18 = vsub.f32 1.0, %v2994_v48  ;;  %v2993_v43 = vmul.f32 %v3775_v55, %v2983_v14 }
0x11a5   :  { %v2998_v32 = vmul.f32 %v2996_v18, %v2958_v8  ;;  %v2995_v37 = vsub.f32 1.0, %v2993_v43 }
0x11a7   :  { %v2997_v3 = vmul.f32 %v2995_v37, %v2957_v31  ;;  %v3000_v38 = vadd.f32 1.0, %v2998_v32 }
0x11a9   :  { %v2999_v1 = vadd.f32 1.0, %v2997_v3  ;;  %v3002_v45 = vmul.f32 %v3000_v38, %v2952_v20 }
0x11ab   :  { %v3001_v50 = vmul.f32 %v2999_v1, %v2951_v34 }
0x11ad   :  { %3534 = vmatprep.mubr.f32.mxu1 %v3001_v50 }
0x11ae   :  { %3535 = vmatmul.mubr.f32.vlgmr.msra.gmra.mxu1 %v3002_v45 }
0x126e   :  { %v3536_v46 = vpop.f32.mrf.mxu1 }
0x126f   :  { %v3096_v54 = vadd.f32 %v3536_v46, %v3286_v7 }
0x1270   :  { %v3090_v35 = vpop.f32.mrf.mxu1 }
0x1271   :  { %v3091_v56 = vadd.f32 %v3286_v7, %v3090_v35  ;;  %v3100_v53 = vadd.f32 %v3096_v54, %v5023_v40 }
0x1273   :  { %v3099_v16 = vadd.f32 %v3091_v56, %v5018_v10  ;;  %v3106_v60 = vsel %vm38_vm0, %v3100_v53, 0.0 }
0x1275   :  { %v3103_v11 = vsel %vm38_vm0, %v3099_v16, 0.0 }
0x1276   :  { %3104 = vadd.xlane.f32.xlu0 %v3103_v11 }
0x127a   :  { %3107 = vadd.xlane.f32.xlu0 %v3106_v60 }
0x12ff   :  { %v3105_v63 = vpop.xlane.xlu0 %3104 }
0x1300   :  { %v3109_v57 = vmul.f32 0.03125, %v3105_v63 }
0x1302   :  { %v3111_v9 = vsub.f32 %v3099_v16, %v3109_v57 }
0x1303   :  { %v3108_v42 = vpop.xlane.xlu0 %3107 }
0x1304   :  { %v3110_v23 = vmul.f32 0.03125, %v3108_v42  ;;  %v3113_v8 = vmul.f32 %v3111_v9, %v3111_v9 }
0x1306   :  { %v3112_v39 = vsub.f32 %v3100_v53, %v3110_v23  ;;  %v3115_v31 = vsel %vm38_vm0, %v3113_v8, 0.0 }
0x1307   :  { %3116 = vadd.xlane.f32.xlu1 %v3115_v31 }
0x1308   :  { %v3114_v0 = vmul.f32 %v3112_v39, %v3112_v39 }
0x130a   :  { %v3118_v10 = vsel %vm38_vm0, %v3114_v0, 0.0 }
0x130b   :  { %3119 = vadd.xlane.f32.xlu1 %v3118_v10 }
0x1390   :  { %v3117_v22 = vpop.xlane.xlu1 %3116 }
0x1391   :  { %v3121_v40 = vmul.f32 0.03125, %v3117_v22 }
0x1393   :  { %v3123_v62 = vadd.f32 1e-05, %v3121_v40 }
0x1394   :  { %v3120_v21 = vpop.xlane.xlu1 %3119 }
0x1395   :  { %3776 = vrsqrt.f32 %v3123_v62  ;;  %v3122_v6 = vmul.f32 0.03125, %v3120_v21 }
0x1397   :  { %v3124_v13 = vadd.f32 1e-05, %v3122_v6 }
0x1399   :  { %3778 = vrsqrt.f32 %v3124_v13 }
0x13a2   :  { %v3777_v27 = vpop.eup %3776 }
0x13a3   :  { %v3127_v2 = vmul.f32 %v3777_v27, %v3111_v9 }
0x13a5   :  { %v3133_v30 = vmul.f32 %v3287_v59, %v3127_v2 }
0x13a6   :  { %v3779_v25 = vpop.eup %3778 }
0x13a7   :  { %v3128_v58 = vmul.f32 %v3779_v25, %v3112_v39  ;;  %v3139_v28 = vadd.f32 %v3288_v49, %v3133_v30 }
0x13a9   :  { %v3134_v5 = vmul.f32 %v3287_v59, %v3128_v58  ;;  %3141 = vst.msk [vmem:[#allocation4] sm:$0xff] %vm38_vm0, %v3139_v28 }
0x13ab   :  { %v3140_v44 = vadd.f32 %v3288_v49, %v3134_v5 }
0x13ad   :  { %3142 = vst.msk [vmem:[#allocation4 + $0x8] sm:$0xff] %vm38_vm0, %v3140_v44 }
0x13ae   :  { %3811 = shalt.err (!%p3808_p9)
}
0x13af   :  { %s3856_s1 = smov 128  }
0x13b0   :  { %3154 = dma.vmem_to_hbm [thread:$0]  %s3149_s6, 256, %s5103_s4, [#allocation5], %s3856_s1, %s3856_s1, %s3835_s17  }
0x13b1   :  { %3822 = dma.done.wait [#allocation5], 256  }
0x13b2   :  { %3823 = vsyncadd [#allocation5], 4294967040 }
0x13b3   :  { %3158 = vsyncpa [#allocation5], 1 }
0x13b4   :  { %3159 = vsyncmov [#allocation3] }
0x13b7   :  { %s3160_s10 = vpop.sfrf %3159 }
0x13b8   :  { %p3289_p10 = scmp.ne.s32.totalorder %s3160_s10, 0 }
0x13ba   :  { %3164 = shalt.err (%p3289_p10)  }

</bundles_post_ra>
